<compile_context>
chip_gen: v6e
topology: v6e:2x2x1
jax: 0.10.0
libtpu: 0.0.40
codegen_flags: <defaults>
</compile_context>

<pallas_src>
import functools

import jax
import jax.numpy as jnp
from jax import lax
from jax.experimental import pallas as pl
from jax.experimental.pallas import tpu as pltpu

_HIGHEST = lax.Precision.HIGHEST


def _pick_spatial_tile(p, n):
    """Largest lane-dense (multiple-of-128) tile of H*W, keeping >=4 grid steps."""
    candidates = [t for t in (2048, 1024, 512, 256, 128) if p % t == 0]
    if not candidates:
        return p  # fall back: full (possibly lane-sparse) spatial axis
    for t in candidates:
        if n * (p // t) >= 4:
            return t
    return candidates[-1]


def _mm(a, b):
    """(M, K) @ (K, N) on the MXU with f32 accumulation."""
    return lax.dot_general(a, b, dimension_numbers=(((1,), (0,)), ((), ())),
                           preferred_element_type=jnp.float32,
                           precision=_HIGHEST)


# -----------------------------------------------------------------------------
# Pass 1: per-tile channel Gram matrix (for analytic BN1 stats) + channel sums
#         (BN1 mean + global-average-pool partials).  Single pass over x.
# -----------------------------------------------------------------------------
def _xstats_kernel(x_ref, gram_ref, xsum_ref):
    xb = x_ref[0]                                            # (C, TP)
    gram_ref[0, 0] = lax.dot_general(                        # (C, C) = xb @ xb^T
        xb, xb, dimension_numbers=(((1,), (1,)), ((), ())),
        preferred_element_type=jnp.float32, precision=_HIGHEST)
    xsum_ref[0, 0] = jnp.sum(xb, axis=1, keepdims=True)      # (C, 1)


# -----------------------------------------------------------------------------
# Pass 2: conv1 (BN1 pre-folded) + ReLU -> conv2; emits BN2 partial sums only.
# -----------------------------------------------------------------------------
def _h2_stats_kernel(x_ref, w1s_ref, c1_ref, w2_ref, b2_ref, s2_ref, ss2_ref):
    a1 = jnp.maximum(_mm(w1s_ref[...], x_ref[0]) + c1_ref[...], 0.0)   # (Ci, TP)
    h2 = _mm(w2_ref[...], a1) + b2_ref[...]                            # (C, TP)
    s2_ref[0, 0] = jnp.sum(h2, axis=1, keepdims=True)
    ss2_ref[0, 0] = jnp.sum(h2 * h2, axis=1, keepdims=True)


# -----------------------------------------------------------------------------
# Global branch (post avg-pool): conv3 -> BN3 (over batch) -> ReLU -> conv4 -> BN4.
# Tiny (N, C) problem: one single-block kernel, BN stats computed in-kernel.
# -----------------------------------------------------------------------------
def _global_branch_kernel(g_ref, w3_ref, b3_ref, ga3_ref, be3_ref,
                          w4_ref, b4_ref, ga4_ref, be4_ref, xg_ref, *, eps):
    z1 = _mm(g_ref[...], w3_ref[...]) + b3_ref[...]          # (N, Ci)
    m1 = jnp.mean(z1, axis=0, keepdims=True)
    v1 = jnp.mean(jnp.square(z1 - m1), axis=0, keepdims=True)    # biased var over N
    a1 = jnp.maximum((z1 - m1) * lax.rsqrt(v1 + eps) * ga3_ref[...] + be3_ref[...],
                     0.0)
    z2 = _mm(a1, w4_ref[...]) + b4_ref[...]                  # (N, C)
    m2 = jnp.mean(z2, axis=0, keepdims=True)
    v2 = jnp.mean(jnp.square(z2 - m2), axis=0, keepdims=True)
    xg_ref[...] = (z2 - m2) * lax.rsqrt(v2 + eps) * ga4_ref[...] + be4_ref[...]


# -----------------------------------------------------------------------------
# Pass 3: recompute local branch with BN1/BN2 folded into the conv weights,
#         add global logits, sigmoid, gate.  Lane-dense output.
# -----------------------------------------------------------------------------
def _gate_kernel(x_ref, w1s_ref, c1_ref, w2s_ref, c2_ref, xg_ref, o_ref):
    xb = x_ref[0]                                            # (C, TP)
    a1 = jnp.maximum(_mm(w1s_ref[...], xb) + c1_ref[...], 0.0)
    xl = _mm(w2s_ref[...], a1) + c2_ref[...]                 # BN2 already folded
    z = xl + xg_ref[0]                                       # + global branch (C,1)
    wei = 1.0 / (1.0 + jnp.exp(-z))                          # sigmoid (EUP exp)
    o_ref[0] = xb * wei                                      # channel-attention gating


# -----------------------------------------------------------------------------
# Wrapper
# -----------------------------------------------------------------------------
def ms_cam_forward(x, params, *, eps=1e-5):
    """MS_CAM forward.  x: (N, C, H, W) float32.  Returns (N, C, H, W) float32."""
    N, C, H, W = x.shape
    Ci = params["w1"].shape[0]
    P = H * W
    TP = _pick_spatial_tile(P, N)
    NT = P // TP
    grid = (N, NT)
    par2 = pltpu.CompilerParams(dimension_semantics=("parallel", "parallel"))

    f32 = lambda a: a.astype(jnp.float32)
    x3 = f32(x.reshape(N, C, P))                             # free reshape, no transpose

    w1 = f32(params["w1"].reshape(Ci, C))
    b1 = f32(params["b1"])
    w2 = f32(params["w2"].reshape(C, Ci))
    b2 = f32(params["b2"])

    # ---- pass 1: channel Gram + channel sums (single pass over x) -------------
    gram_p, xs_p = pl.pallas_call(
        _xstats_kernel,
        out_shape=(jax.ShapeDtypeStruct((N, NT, C, C), jnp.float32),
                   jax.ShapeDtypeStruct((N, NT, C, 1), jnp.float32)),
        grid=grid,
        in_specs=[pl.BlockSpec((1, C, TP), lambda n, t: (n, 0, t))],
        out_specs=(pl.BlockSpec((1, 1, C, C), lambda n, t: (n, t, 0, 0)),
                   pl.BlockSpec((1, 1, C, 1), lambda n, t: (n, t, 0, 0))),
        compiler_params=par2,
    )(x3)

    cnt = float(N * P)
    gram = jnp.sum(gram_p, axis=(0, 1))                      # (C, C)   sum x x^T
    xsum_nc = jnp.sum(xs_p, axis=(1, 3))                     # (N, C)   per-sample sums
    xsum = jnp.sum(xsum_nc, axis=0)                          # (C,)     total sums

    # Analytic BN1 batch statistics of h1 = W1 x + b1 (h1 never materialized).
    # NOTE: E[h^2]-E[h]^2 can cancel for huge offsets; fine at these scales.
    w1x = jnp.dot(w1, xsum, precision=_HIGHEST)              # (Ci,) = sum(W1 x)
    mean1 = (w1x + b1 * cnt) / cnt
    ssq1 = (jnp.sum(jnp.dot(w1, gram, precision=_HIGHEST) * w1, axis=1)
            + 2.0 * b1 * w1x + b1 * b1 * cnt)                # sum(h1^2) per channel
    var1 = jnp.maximum(ssq1 / cnt - mean1 * mean1, 0.0)
    scale1 = f32(params["gamma1"]) * lax.rsqrt(var1 + eps)
    shift1 = f32(params["beta1"]) - mean1 * scale1
    w1s = w1 * scale1[:, None]                               # BN1 folded into conv1
    c1 = (scale1 * b1 + shift1)[:, None]                     # (Ci, 1)

    # ---- pass 2: folded conv1 + ReLU + conv2 -> BN2 partial sums (tiny) -------
    s2p, ss2p = pl.pallas_call(
        _h2_stats_kernel,
        out_shape=(jax.ShapeDtypeStruct((N, NT, C, 1), jnp.float32),
                   jax.ShapeDtypeStruct((N, NT, C, 1), jnp.float32)),
        grid=grid,
        in_specs=[pl.BlockSpec((1, C, TP), lambda n, t: (n, 0, t)),
                  pl.BlockSpec((Ci, C), lambda n, t: (0, 0)),
                  pl.BlockSpec((Ci, 1), lambda n, t: (0, 0)),
                  pl.BlockSpec((C, Ci), lambda n, t: (0, 0)),
                  pl.BlockSpec((C, 1), lambda n, t: (0, 0))],
        out_specs=(pl.BlockSpec((1, 1, C, 1), lambda n, t: (n, t, 0, 0)),
                   pl.BlockSpec((1, 1, C, 1), lambda n, t: (n, t, 0, 0))),
        compiler_params=par2,
    )(x3, w1s, c1, w2, b2.reshape(C, 1))

    mean2 = jnp.sum(s2p, axis=(0, 1, 3)) / cnt
    var2 = jnp.maximum(jnp.sum(ss2p, axis=(0, 1, 3)) / cnt - mean2 * mean2, 0.0)
    scale2 = f32(params["gamma2"]) * lax.rsqrt(var2 + eps)
    shift2 = f32(params["beta2"]) - mean2 * scale2
    w2s = w2 * scale2[:, None]                               # BN2 folded into conv2
    c2 = (scale2 * b2 + shift2)[:, None]                     # (C, 1)

    # ---- global branch: GAP from pass-1 sums -> tiny single-block kernel ------
    gavg = xsum_nc / P                                       # (N, C)
    w3t = f32(params["w3"].reshape(Ci, C)).T                 # (C, Ci)
    w4t = f32(params["w4"].reshape(C, Ci)).T                 # (Ci, C)
    xg = pl.pallas_call(
        functools.partial(_global_branch_kernel, eps=eps),
        out_shape=jax.ShapeDtypeStruct((N, C), jnp.float32),
    )(gavg, w3t, f32(params["b3"]).reshape(1, Ci),
      f32(params["gamma3"]).reshape(1, Ci), f32(params["beta3"]).reshape(1, Ci),
      w4t, f32(params["b4"]).reshape(1, C),
      f32(params["gamma4"]).reshape(1, C), f32(params["beta4"]).reshape(1, C))

    # ---- pass 3: local branch recompute (folded BNs) + sigmoid gate + multiply -
    out3 = pl.pallas_call(
        _gate_kernel,
        out_shape=jax.ShapeDtypeStruct((N, C, P), jnp.float32),
        grid=grid,
        in_specs=[pl.BlockSpec((1, C, TP), lambda n, t: (n, 0, t)),   # x
                  pl.BlockSpec((Ci, C), lambda n, t: (0, 0)),         # W1 (BN1 folded)
                  pl.BlockSpec((Ci, 1), lambda n, t: (0, 0)),         # c1
                  pl.BlockSpec((C, Ci), lambda n, t: (0, 0)),         # W2 (BN2 folded)
                  pl.BlockSpec((C, 1), lambda n, t: (0, 0)),          # c2
                  pl.BlockSpec((1, C, 1), lambda n, t: (n, 0, 0))],   # xg (per batch)
        out_specs=pl.BlockSpec((1, C, TP), lambda n, t: (n, 0, t)),
        compiler_params=par2,
    )(x3, w1s, c1, w2s, c2, xg.reshape(N, C, 1))

    return out3.reshape(N, C, H, W)


# -----------------------------------------------------------------------------
# Pure-JAX reference mirroring the PyTorch module (training-mode BN).
# -----------------------------------------------------------------------------
def _ref_forward(x, p, *, eps=1e-5):
    N, C, H, W = x.shape
    Ci = p["w1"].shape[0]
    w1 = p["w1"].reshape(Ci, C)
    w2 = p["w2"].reshape(C, Ci)
    w3 = p["w3"].reshape(Ci, C)
    w4 = p["w4"].reshape(C, Ci)

    def bn_nhw(y, gamma, beta):                              # BN2d over (N, H, W)
        m = jnp.mean(y, axis=(0, 2, 3), keepdims=True)
        v = jnp.var(y, axis=(0, 2, 3), keepdims=True)        # biased
        return (y - m) * lax.rsqrt(v + eps) * gamma[None, :, None, None] \
            + beta[None, :, None, None]

    def bn_n(y, gamma, beta):                                # BN2d on (N, C, 1, 1)
        m = jnp.mean(y, axis=0, keepdims=True)
        v = jnp.var(y, axis=0, keepdims=True)
        return (y - m) * lax.rsqrt(v + eps) * gamma[None, :] + beta[None, :]

    h1 = jnp.einsum("nchw,ic->nihw", x, w1, precision=_HIGHEST) \
        + p["b1"][None, :, None, None]
    a1 = jnp.maximum(bn_nhw(h1, p["gamma1"], p["beta1"]), 0.0)
    h2 = jnp.einsum("nihw,oi->nohw", a1, w2, precision=_HIGHEST) \
        + p["b2"][None, :, None, None]
    xl = bn_nhw(h2, p["gamma2"], p["beta2"])

    g = jnp.mean(x, axis=(2, 3))                             # AdaptiveAvgPool2d(1)
    z1 = jnp.einsum("nc,ic->ni", g, w3, precision=_HIGHEST) + p["b3"][None, :]
    ag = jnp.maximum(bn_n(z1, p["gamma3"], p["beta3"]), 0.0)
    z2 = jnp.einsum("ni,oi->no", ag, w4, precision=_HIGHEST) + p["b4"][None, :]
    xg = bn_n(z2, p["gamma4"], p["beta4"])

    wei = jax.nn.sigmoid(xl + xg[:, :, None, None])
    return x * wei


if __name__ == "__main__":
    # MS_CAM defaults: channels=64, r=1 -> inter_channels=64.  x is NCHW.
    N, C, r, H, W = 4, 64, 1, 16, 16
    Ci = C // r
    eps = 1e-5

    key = jax.random.PRNGKey(0)
    ks = jax.random.split(key, 9)
    x = jax.random.normal(ks[0], (N, C, H, W), dtype=jnp.float32)

    def conv_w(k, co, ci):                                   # 1x1 conv weight, ~kaiming scale
        return jax.random.normal(k, (co, ci, 1, 1), jnp.float32) / jnp.sqrt(ci)

    params = {
        # local branch: conv1 -> BN1 -> ReLU -> conv2 -> BN2
        "w1": conv_w(ks[1], Ci, C),
        "b1": 0.05 * jax.random.normal(ks[2], (Ci,), jnp.float32),
        "gamma1": jnp.ones((Ci,), jnp.float32), "beta1": jnp.zeros((Ci,), jnp.float32),
        "w2": conv_w(ks[3], C, Ci),
        "b2": 0.05 * jax.random.normal(ks[4], (C,), jnp.float32),
        "gamma2": jnp.ones((C,), jnp.float32), "beta2": jnp.zeros((C,), jnp.float32),
        # global branch: GAP -> conv3 -> BN3 -> ReLU -> conv4 -> BN4
        "w3": conv_w(ks[5], Ci, C),
        "b3": 0.05 * jax.random.normal(ks[6], (Ci,), jnp.float32),
        "gamma3": jnp.ones((Ci,), jnp.float32), "beta3": jnp.zeros((Ci,), jnp.float32),
        "w4": conv_w(ks[7], C, Ci),
        "b4": 0.05 * jax.random.normal(ks[8], (C,), jnp.float32),
        "gamma4": jnp.ones((C,), jnp.float32), "beta4": jnp.zeros((C,), jnp.float32),
    }

    fwd = jax.jit(functools.partial(ms_cam_forward, eps=eps))
    out = jax.block_until_ready(fwd(x, params))

    ref = _ref_forward(x, params, eps=eps)
    assert out.shape == (N, C, H, W), out.shape
    max_err = float(jnp.max(jnp.abs(out - ref)))
    assert jnp.allclose(out, ref, atol=2e-4, rtol=2e-4), max_err

    print("KERNEL_OK")
</pallas_src>

<mosaic_0001>
module attributes {stable_mosaic.version = 11 : i64} {
  func.func @_xstats_kernel(%arg0: i32, %arg1: i32, %arg2: memref<1x64x256xf32, #tpu.memory_space<vmem>>, %arg3: memref<1x1x64x64xf32, #tpu.memory_space<vmem>>, %arg4: memref<1x1x64x1xf32, #tpu.memory_space<vmem>>) attributes {dimension_semantics = [#tpu.dimension_semantics<parallel>, #tpu.dimension_semantics<parallel>], iteration_bounds = array<i64: 4, 1>, scalar_prefetch = 0 : i64, scratch_operands = 0 : i64, tpu.core_type = #tpu.core_type<tc>, window_params = [{transform_indices = @transform_0, window_bounds = array<i64: 1, 64, 256>}, {transform_indices = @transform_1, window_bounds = array<i64: 1, 1, 64, 64>}, {transform_indices = @transform_2, window_bounds = array<i64: 1, 1, 64, 1>}]} {
    %c0 = arith.constant 0 : index
    %c0_0 = arith.constant 0 : index
    %c0_1 = arith.constant 0 : index
    %0 = vector.load %arg2[%c0, %c0_0, %c0_1] : memref<1x64x256xf32, #tpu.memory_space<vmem>>, vector<1x64x256xf32>
    %1 = vector.shape_cast %0 : vector<1x64x256xf32> to vector<64x256xf32>
    %cst = arith.constant dense<0.000000e+00> : vector<64x64xf32>
    %2 = tpu.matmul %1, %1, %cst {dimension_numbers = #tpu.dot_dimension_numbers<[1], [1], [0], [0], [0, 0, 1, 0], [], []>, precision = #tpu.contract_precision<fp32>} : vector<64x256xf32>, vector<64x256xf32>, vector<64x64xf32> -> vector<64x64xf32>
    %c0_2 = arith.constant 0 : index
    %c0_3 = arith.constant 0 : index
    %c0_4 = arith.constant 0 : index
    %c0_5 = arith.constant 0 : index
    %3 = vector.load %arg3[%c0_2, %c0_3, %c0_4, %c0_5] : memref<1x1x64x64xf32, #tpu.memory_space<vmem>>, vector<1x1x64x64xf32>
    %4 = vector.shape_cast %3 : vector<1x1x64x64xf32> to vector<64x64xf32>
    %5 = vector.shape_cast %2 : vector<64x64xf32> to vector<1x1x64x64xf32>
    tpu.vector_store %arg3[%c0_2, %c0_3, %c0_4, %c0_5], %5 {strides = array<i32>} : memref<1x1x64x64xf32, #tpu.memory_space<vmem>>, vector<1x1x64x64xf32>,
    %cst_6 = arith.constant dense<0.000000e+00> : vector<64xf32>
    %6 = vector.multi_reduction <add>, %1, %cst_6 [1] : vector<64x256xf32> to vector<64xf32>
    %7 = vector.shape_cast %6 : vector<64xf32> to vector<64x1xf32>
    %c0_7 = arith.constant 0 : index
    %c0_8 = arith.constant 0 : index
    %c0_9 = arith.constant 0 : index
    %c0_10 = arith.constant 0 : index
    %8 = vector.load %arg4[%c0_7, %c0_8, %c0_9, %c0_10] : memref<1x1x64x1xf32, #tpu.memory_space<vmem>>, vector<1x1x64x1xf32>
    %9 = vector.shape_cast %8 : vector<1x1x64x1xf32> to vector<64x1xf32>
    %10 = vector.shape_cast %7 : vector<64x1xf32> to vector<1x1x64x1xf32>
    tpu.vector_store %arg4[%c0_7, %c0_8, %c0_9, %c0_10], %10 {strides = array<i32>} : memref<1x1x64x1xf32, #tpu.memory_space<vmem>>, vector<1x1x64x1xf32>,
    return
  }
  func.func @transform_0(%arg0: i32, %arg1: i32) -> (i32, i32, i32) {
    %c0_i32 = arith.constant 0 : i32
    %c0_i32_0 = arith.constant 0 : i32
    return %arg0, %c0_i32, %arg1 : i32, i32, i32
  }
  func.func @transform_1(%arg0: i32, %arg1: i32) -> (i32, i32, i32, i32) {
    %c0_i32 = arith.constant 0 : i32
    %c0_i32_0 = arith.constant 0 : i32
    %c0_i32_1 = arith.constant 0 : i32
    return %arg0, %arg1, %c0_i32, %c0_i32_0 : i32, i32, i32, i32
  }
  func.func @transform_2(%arg0: i32, %arg1: i32) -> (i32, i32, i32, i32) {
    %c0_i32 = arith.constant 0 : i32
    %c0_i32_0 = arith.constant 0 : i32
    %c0_i32_1 = arith.constant 0 : i32
    return %arg0, %arg1, %c0_i32, %c0_i32_0 : i32, i32, i32, i32
  }
}

module attributes {stable_mosaic.version = 11 : i64} {
  func.func @_global_branch_kernel(%arg0: memref<4x64xf32, #tpu.memory_space<vmem>>, %arg1: memref<64x64xf32, #tpu.memory_space<vmem>>, %arg2: memref<1x64xf32, #tpu.memory_space<vmem>>, %arg3: memref<1x64xf32, #tpu.memory_space<vmem>>, %arg4: memref<1x64xf32, #tpu.memory_space<vmem>>, %arg5: memref<64x64xf32, #tpu.memory_space<vmem>>, %arg6: memref<1x64xf32, #tpu.memory_space<vmem>>, %arg7: memref<1x64xf32, #tpu.memory_space<vmem>>, %arg8: memref<1x64xf32, #tpu.memory_space<vmem>>, %arg9: memref<4x64xf32, #tpu.memory_space<vmem>>) attributes {dimension_semantics = [], scalar_prefetch = 0 : i64, scratch_operands = 0 : i64, tpu.core_type = #tpu.core_type<tc>} {
    %c0 = arith.constant 0 : index
    %c0_0 = arith.constant 0 : index
    %0 = vector.load %arg0[%c0, %c0_0] : memref<4x64xf32, #tpu.memory_space<vmem>>, vector<4x64xf32>
    %c0_1 = arith.constant 0 : index
    %c0_2 = arith.constant 0 : index
    %1 = vector.load %arg1[%c0_1, %c0_2] : memref<64x64xf32, #tpu.memory_space<vmem>>, vector<64x64xf32>
    %cst = arith.constant dense<0.000000e+00> : vector<4x64xf32>
    %2 = tpu.matmul %0, %1, %cst {dimension_numbers = #tpu.dot_dimension_numbers<[1], [0], [0], [1], [0, 0, 1, 1], [], []>, precision = #tpu.contract_precision<fp32>} : vector<4x64xf32>, vector<64x64xf32>, vector<4x64xf32> -> vector<4x64xf32>
    %c0_3 = arith.constant 0 : index
    %c0_4 = arith.constant 0 : index
    %3 = vector.load %arg2[%c0_3, %c0_4] : memref<1x64xf32, #tpu.memory_space<vmem>>, vector<1x64xf32>
    %4 = vector.broadcast %3 : vector<1x64xf32> to vector<4x64xf32>
    %5 = arith.addf %2, %4 : vector<4x64xf32>
    %cst_5 = arith.constant dense<0.000000e+00> : vector<64xf32>
    %6 = vector.multi_reduction <add>, %5, %cst_5 [0] : vector<4x64xf32> to vector<64xf32>
    %7 = vector.shape_cast %6 : vector<64xf32> to vector<1x64xf32>
    %cst_6 = arith.constant 4.000000e+00 : f32
    %8 = vector.broadcast %cst_6 : f32 to vector<1x64xf32>
    %9 = arith.divf %7, %8 : vector<1x64xf32>
    %10 = vector.broadcast %9 : vector<1x64xf32> to vector<4x64xf32>
    %11 = arith.subf %5, %10 : vector<4x64xf32>
    %12 = arith.mulf %11, %11 : vector<4x64xf32>
    %cst_7 = arith.constant dense<0.000000e+00> : vector<64xf32>
    %13 = vector.multi_reduction <add>, %12, %cst_7 [0] : vector<4x64xf32> to vector<64xf32>
    %14 = vector.shape_cast %13 : vector<64xf32> to vector<1x64xf32>
    %cst_8 = arith.constant 4.000000e+00 : f32
    %15 = vector.broadcast %cst_8 : f32 to vector<1x64xf32>
    %16 = arith.divf %14, %15 : vector<1x64xf32>
    %17 = vector.broadcast %9 : vector<1x64xf32> to vector<4x64xf32>
    %18 = arith.subf %5, %17 : vector<4x64xf32>
    %cst_9 = arith.constant 9.99999974E-6 : f32
    %19 = vector.broadcast %cst_9 : f32 to vector<1x64xf32>
    %20 = arith.addf %16, %19 : vector<1x64xf32>
    %21 = math.rsqrt %20 : vector<1x64xf32>
    %22 = vector.broadcast %21 : vector<1x64xf32> to vector<4x64xf32>
    %23 = arith.mulf %18, %22 : vector<4x64xf32>
    %c0_10 = arith.constant 0 : index
    %c0_11 = arith.constant 0 : index
    %24 = vector.load %arg3[%c0_10, %c0_11] : memref<1x64xf32, #tpu.memory_space<vmem>>, vector<1x64xf32>
    %25 = vector.broadcast %24 : vector<1x64xf32> to vector<4x64xf32>
    %26 = arith.mulf %23, %25 : vector<4x64xf32>
    %c0_12 = arith.constant 0 : index
    %c0_13 = arith.constant 0 : index
    %27 = vector.load %arg4[%c0_12, %c0_13] : memref<1x64xf32, #tpu.memory_space<vmem>>, vector<1x64xf32>
    %28 = vector.broadcast %27 : vector<1x64xf32> to vector<4x64xf32>
    %29 = arith.addf %26, %28 : vector<4x64xf32>
    %cst_14 = arith.constant 0.000000e+00 : f32
    %30 = vector.broadcast %cst_14 : f32 to vector<4x64xf32>
    %31 = arith.maximumf %29, %30 : vector<4x64xf32>
    %c0_15 = arith.constant 0 : index
    %c0_16 = arith.constant 0 : index
    %32 = vector.load %arg5[%c0_15, %c0_16] : memref<64x64xf32, #tpu.memory_space<vmem>>, vector<64x64xf32>
    %cst_17 = arith.constant dense<0.000000e+00> : vector<4x64xf32>
    %33 = tpu.matmul %31, %32, %cst_17 {dimension_numbers = #tpu.dot_dimension_numbers<[1], [0], [0], [1], [0, 0, 1, 1], [], []>, precision = #tpu.contract_precision<fp32>} : vector<4x64xf32>, vector<64x64xf32>, vector<4x64xf32> -> vector<4x64xf32>
    %c0_18 = arith.constant 0 : index
    %c0_19 = arith.constant 0 : index
    %34 = vector.load %arg6[%c0_18, %c0_19] : memref<1x64xf32, #tpu.memory_space<vmem>>, vector<1x64xf32>
    %35 = vector.broadcast %34 : vector<1x64xf32> to vector<4x64xf32>
    %36 = arith.addf %33, %35 : vector<4x64xf32>
    %cst_20 = arith.constant dense<0.000000e+00> : vector<64xf32>
    %37 = vector.multi_reduction <add>, %36, %cst_20 [0] : vector<4x64xf32> to vector<64xf32>
    %38 = vector.shape_cast %37 : vector<64xf32> to vector<1x64xf32>
    %cst_21 = arith.constant 4.000000e+00 : f32
    %39 = vector.broadcast %cst_21 : f32 to vector<1x64xf32>
    %40 = arith.divf %38, %39 : vector<1x64xf32>
    %41 = vector.broadcast %40 : vector<1x64xf32> to vector<4x64xf32>
    %42 = arith.subf %36, %41 : vector<4x64xf32>
    %43 = arith.mulf %42, %42 : vector<4x64xf32>
    %cst_22 = arith.constant dense<0.000000e+00> : vector<64xf32>
    %44 = vector.multi_reduction <add>, %43, %cst_22 [0] : vector<4x64xf32> to vector<64xf32>
    %45 = vector.shape_cast %44 : vector<64xf32> to vector<1x64xf32>
    %cst_23 = arith.constant 4.000000e+00 : f32
    %46 = vector.broadcast %cst_23 : f32 to vector<1x64xf32>
    %47 = arith.divf %45, %46 : vector<1x64xf32>
    %48 = vector.broadcast %40 : vector<1x64xf32> to vector<4x64xf32>
    %49 = arith.subf %36, %48 : vector<4x64xf32>
    %cst_24 = arith.constant 9.99999974E-6 : f32
    %50 = vector.broadcast %cst_24 : f32 to vector<1x64xf32>
    %51 = arith.addf %47, %50 : vector<1x64xf32>
    %52 = math.rsqrt %51 : vector<1x64xf32>
    %53 = vector.broadcast %52 : vector<1x64xf32> to vector<4x64xf32>
    %54 = arith.mulf %49, %53 : vector<4x64xf32>
    %c0_25 = arith.constant 0 : index
    %c0_26 = arith.constant 0 : index
    %55 = vector.load %arg7[%c0_25, %c0_26] : memref<1x64xf32, #tpu.memory_space<vmem>>, vector<1x64xf32>
    %56 = vector.broadcast %55 : vector<1x64xf32> to vector<4x64xf32>
    %57 = arith.mulf %54, %56 : vector<4x64xf32>
    %c0_27 = arith.constant 0 : index
    %c0_28 = arith.constant 0 : index
    %58 = vector.load %arg8[%c0_27, %c0_28] : memref<1x64xf32, #tpu.memory_space<vmem>>, vector<1x64xf32>
    %59 = vector.broadcast %58 : vector<1x64xf32> to vector<4x64xf32>
    %60 = arith.addf %57, %59 : vector<4x64xf32>
    %c0_29 = arith.constant 0 : index
    %c0_30 = arith.constant 0 : index
    %61 = vector.load %arg9[%c0_29, %c0_30] : memref<4x64xf32, #tpu.memory_space<vmem>>, vector<4x64xf32>
    tpu.vector_store %arg9[%c0_29, %c0_30], %60 {strides = array<i32>} : memref<4x64xf32, #tpu.memory_space<vmem>>, vector<4x64xf32>,
    return
  }
}

module attributes {stable_mosaic.version = 11 : i64} {
  func.func @_h2_stats_kernel(%arg0: i32, %arg1: i32, %arg2: memref<1x64x256xf32, #tpu.memory_space<vmem>>, %arg3: memref<64x64xf32, #tpu.memory_space<vmem>>, %arg4: memref<64x1xf32, #tpu.memory_space<vmem>>, %arg5: memref<64x64xf32, #tpu.memory_space<vmem>>, %arg6: memref<64x1xf32, #tpu.memory_space<vmem>>, %arg7: memref<1x1x64x1xf32, #tpu.memory_space<vmem>>, %arg8: memref<1x1x64x1xf32, #tpu.memory_space<vmem>>) attributes {dimension_semantics = [#tpu.dimension_semantics<parallel>, #tpu.dimension_semantics<parallel>], iteration_bounds = array<i64: 4, 1>, scalar_prefetch = 0 : i64, scratch_operands = 0 : i64, tpu.core_type = #tpu.core_type<tc>, window_params = [{transform_indices = @transform_0, window_bounds = array<i64: 1, 64, 256>}, {pipeline_mode = #tpu.pipeline_mode<synchronous>, transform_indices = @transform_1, window_bounds = array<i64: 64, 64>}, {pipeline_mode = #tpu.pipeline_mode<synchronous>, transform_indices = @transform_2, window_bounds = array<i64: 64, 1>}, {pipeline_mode = #tpu.pipeline_mode<synchronous>, transform_indices = @transform_3, window_bounds = array<i64: 64, 64>}, {pipeline_mode = #tpu.pipeline_mode<synchronous>, transform_indices = @transform_4, window_bounds = array<i64: 64, 1>}, {transform_indices = @transform_5, window_bounds = array<i64: 1, 1, 64, 1>}, {transform_indices = @transform_6, window_bounds = array<i64: 1, 1, 64, 1>}]} {
    %c0 = arith.constant 0 : index
    %c0_0 = arith.constant 0 : index
    %0 = vector.load %arg3[%c0, %c0_0] : memref<64x64xf32, #tpu.memory_space<vmem>>, vector<64x64xf32>
    %c0_1 = arith.constant 0 : index
    %c0_2 = arith.constant 0 : index
    %c0_3 = arith.constant 0 : index
    %1 = vector.load %arg2[%c0_1, %c0_2, %c0_3] : memref<1x64x256xf32, #tpu.memory_space<vmem>>, vector<1x64x256xf32>
    %2 = vector.shape_cast %1 : vector<1x64x256xf32> to vector<64x256xf32>
    %cst = arith.constant dense<0.000000e+00> : vector<64x256xf32>
    %3 = tpu.matmul %0, %2, %cst {dimension_numbers = #tpu.dot_dimension_numbers<[1], [0], [0], [1], [0, 0, 1, 1], [], []>, precision = #tpu.contract_precision<fp32>} : vector<64x64xf32>, vector<64x256xf32>, vector<64x256xf32> -> vector<64x256xf32>
    %c0_4 = arith.constant 0 : index
    %c0_5 = arith.constant 0 : index
    %4 = vector.load %arg4[%c0_4, %c0_5] : memref<64x1xf32, #tpu.memory_space<vmem>>, vector<64x1xf32>
    %5 = vector.broadcast %4 : vector<64x1xf32> to vector<64x256xf32>
    %6 = arith.addf %3, %5 : vector<64x256xf32>
    %cst_6 = arith.constant 0.000000e+00 : f32
    %7 = vector.broadcast %cst_6 : f32 to vector<64x256xf32>
    %8 = arith.maximumf %6, %7 : vector<64x256xf32>
    %c0_7 = arith.constant 0 : index
    %c0_8 = arith.constant 0 : index
    %9 = vector.load %arg5[%c0_7, %c0_8] : memref<64x64xf32, #tpu.memory_space<vmem>>, vector<64x64xf32>
    %cst_9 = arith.constant dense<0.000000e+00> : vector<64x256xf32>
    %10 = tpu.matmul %9, %8, %cst_9 {dimension_numbers = #tpu.dot_dimension_numbers<[1], [0], [0], [1], [0, 0, 1, 1], [], []>, precision = #tpu.contract_precision<fp32>} : vector<64x64xf32>, vector<64x256xf32>, vector<64x256xf32> -> vector<64x256xf32>
    %c0_10 = arith.constant 0 : index
    %c0_11 = arith.constant 0 : index
    %11 = vector.load %arg6[%c0_10, %c0_11] : memref<64x1xf32, #tpu.memory_space<vmem>>, vector<64x1xf32>
    %12 = vector.broadcast %11 : vector<64x1xf32> to vector<64x256xf32>
    %13 = arith.addf %10, %12 : vector<64x256xf32>
    %cst_12 = arith.constant dense<0.000000e+00> : vector<64xf32>
    %14 = vector.multi_reduction <add>, %13, %cst_12 [1] : vector<64x256xf32> to vector<64xf32>
    %15 = vector.shape_cast %14 : vector<64xf32> to vector<64x1xf32>
    %c0_13 = arith.constant 0 : index
    %c0_14 = arith.constant 0 : index
    %c0_15 = arith.constant 0 : index
    %c0_16 = arith.constant 0 : index
    %16 = vector.load %arg7[%c0_13, %c0_14, %c0_15, %c0_16] : memref<1x1x64x1xf32, #tpu.memory_space<vmem>>, vector<1x1x64x1xf32>
    %17 = vector.shape_cast %16 : vector<1x1x64x1xf32> to vector<64x1xf32>
    %18 = vector.shape_cast %15 : vector<64x1xf32> to vector<1x1x64x1xf32>
    tpu.vector_store %arg7[%c0_13, %c0_14, %c0_15, %c0_16], %18 {strides = array<i32>} : memref<1x1x64x1xf32, #tpu.memory_space<vmem>>, vector<1x1x64x1xf32>,
    %19 = arith.mulf %13, %13 : vector<64x256xf32>
    %cst_17 = arith.constant dense<0.000000e+00> : vector<64xf32>
    %20 = vector.multi_reduction <add>, %19, %cst_17 [1] : vector<64x256xf32> to vector<64xf32>
    %21 = vector.shape_cast %20 : vector<64xf32> to vector<64x1xf32>
    %c0_18 = arith.constant 0 : index
    %c0_19 = arith.constant 0 : index
    %c0_20 = arith.constant 0 : index
    %c0_21 = arith.constant 0 : index
    %22 = vector.load %arg8[%c0_18, %c0_19, %c0_20, %c0_21] : memref<1x1x64x1xf32, #tpu.memory_space<vmem>>, vector<1x1x64x1xf32>
    %23 = vector.shape_cast %22 : vector<1x1x64x1xf32> to vector<64x1xf32>
    %24 = vector.shape_cast %21 : vector<64x1xf32> to vector<1x1x64x1xf32>
    tpu.vector_store %arg8[%c0_18, %c0_19, %c0_20, %c0_21], %24 {strides = array<i32>} : memref<1x1x64x1xf32, #tpu.memory_space<vmem>>, vector<1x1x64x1xf32>,
    return
  }
  func.func @transform_0(%arg0: i32, %arg1: i32) -> (i32, i32, i32) {
    %c0_i32 = arith.constant 0 : i32
    %c0_i32_0 = arith.constant 0 : i32
    return %arg0, %c0_i32, %arg1 : i32, i32, i32
  }
  func.func @transform_1(%arg0: i32, %arg1: i32) -> (i32, i32) {
    %c0_i32 = arith.constant 0 : i32
    %c0_i32_0 = arith.constant 0 : i32
    %c0_i32_1 = arith.constant 0 : i32
    return %c0_i32, %c0_i32_0 : i32, i32
  }
  func.func @transform_2(%arg0: i32, %arg1: i32) -> (i32, i32) {
    %c0_i32 = arith.constant 0 : i32
    %c0_i32_0 = arith.constant 0 : i32
    %c0_i32_1 = arith.constant 0 : i32
    return %c0_i32, %c0_i32_0 : i32, i32
  }
  func.func @transform_3(%arg0: i32, %arg1: i32) -> (i32, i32) {
    %c0_i32 = arith.constant 0 : i32
    %c0_i32_0 = arith.constant 0 : i32
    %c0_i32_1 = arith.constant 0 : i32
    return %c0_i32, %c0_i32_0 : i32, i32
  }
  func.func @transform_4(%arg0: i32, %arg1: i32) -> (i32, i32) {
    %c0_i32 = arith.constant 0 : i32
    %c0_i32_0 = arith.constant 0 : i32
    %c0_i32_1 = arith.constant 0 : i32
    return %c0_i32, %c0_i32_0 : i32, i32
  }
  func.func @transform_5(%arg0: i32, %arg1: i32) -> (i32, i32, i32, i32) {
    %c0_i32 = arith.constant 0 : i32
    %c0_i32_0 = arith.constant 0 : i32
    %c0_i32_1 = arith.constant 0 : i32
    return %arg0, %arg1, %c0_i32, %c0_i32_0 : i32, i32, i32, i32
  }
  func.func @transform_6(%arg0: i32, %arg1: i32) -> (i32, i32, i32, i32) {
    %c0_i32 = arith.constant 0 : i32
    %c0_i32_0 = arith.constant 0 : i32
    %c0_i32_1 = arith.constant 0 : i32
    return %arg0, %arg1, %c0_i32, %c0_i32_0 : i32, i32, i32, i32
  }
}

module attributes {stable_mosaic.version = 11 : i64} {
  func.func @_gate_kernel(%arg0: i32, %arg1: i32, %arg2: memref<1x64x256xf32, #tpu.memory_space<vmem>>, %arg3: memref<64x64xf32, #tpu.memory_space<vmem>>, %arg4: memref<64x1xf32, #tpu.memory_space<vmem>>, %arg5: memref<64x64xf32, #tpu.memory_space<vmem>>, %arg6: memref<64x1xf32, #tpu.memory_space<vmem>>, %arg7: memref<1x64x1xf32, #tpu.memory_space<vmem>>, %arg8: memref<1x64x256xf32, #tpu.memory_space<vmem>>) attributes {dimension_semantics = [#tpu.dimension_semantics<parallel>, #tpu.dimension_semantics<parallel>], iteration_bounds = array<i64: 4, 1>, scalar_prefetch = 0 : i64, scratch_operands = 0 : i64, tpu.core_type = #tpu.core_type<tc>, window_params = [{transform_indices = @transform_0, window_bounds = array<i64: 1, 64, 256>}, {pipeline_mode = #tpu.pipeline_mode<synchronous>, transform_indices = @transform_1, window_bounds = array<i64: 64, 64>}, {pipeline_mode = #tpu.pipeline_mode<synchronous>, transform_indices = @transform_2, window_bounds = array<i64: 64, 1>}, {pipeline_mode = #tpu.pipeline_mode<synchronous>, transform_indices = @transform_3, window_bounds = array<i64: 64, 64>}, {pipeline_mode = #tpu.pipeline_mode<synchronous>, transform_indices = @transform_4, window_bounds = array<i64: 64, 1>}, {transform_indices = @transform_5, window_bounds = array<i64: 1, 64, 1>}, {transform_indices = @transform_6, window_bounds = array<i64: 1, 64, 256>}]} {
    %c0 = arith.constant 0 : index
    %c0_0 = arith.constant 0 : index
    %c0_1 = arith.constant 0 : index
    %0 = vector.load %arg2[%c0, %c0_0, %c0_1] : memref<1x64x256xf32, #tpu.memory_space<vmem>>, vector<1x64x256xf32>
    %1 = vector.shape_cast %0 : vector<1x64x256xf32> to vector<64x256xf32>
    %c0_2 = arith.constant 0 : index
    %c0_3 = arith.constant 0 : index
    %2 = vector.load %arg3[%c0_2, %c0_3] : memref<64x64xf32, #tpu.memory_space<vmem>>, vector<64x64xf32>
    %cst = arith.constant dense<0.000000e+00> : vector<64x256xf32>
    %3 = tpu.matmul %2, %1, %cst {dimension_numbers = #tpu.dot_dimension_numbers<[1], [0], [0], [1], [0, 0, 1, 1], [], []>, precision = #tpu.contract_precision<fp32>} : vector<64x64xf32>, vector<64x256xf32>, vector<64x256xf32> -> vector<64x256xf32>
    %c0_4 = arith.constant 0 : index
    %c0_5 = arith.constant 0 : index
    %4 = vector.load %arg4[%c0_4, %c0_5] : memref<64x1xf32, #tpu.memory_space<vmem>>, vector<64x1xf32>
    %5 = vector.broadcast %4 : vector<64x1xf32> to vector<64x256xf32>
    %6 = arith.addf %3, %5 : vector<64x256xf32>
    %cst_6 = arith.constant 0.000000e+00 : f32
    %7 = vector.broadcast %cst_6 : f32 to vector<64x256xf32>
    %8 = arith.maximumf %6, %7 : vector<64x256xf32>
    %c0_7 = arith.constant 0 : index
    %c0_8 = arith.constant 0 : index
    %9 = vector.load %arg5[%c0_7, %c0_8] : memref<64x64xf32, #tpu.memory_space<vmem>>, vector<64x64xf32>
    %cst_9 = arith.constant dense<0.000000e+00> : vector<64x256xf32>
    %10 = tpu.matmul %9, %8, %cst_9 {dimension_numbers = #tpu.dot_dimension_numbers<[1], [0], [0], [1], [0, 0, 1, 1], [], []>, precision = #tpu.contract_precision<fp32>} : vector<64x64xf32>, vector<64x256xf32>, vector<64x256xf32> -> vector<64x256xf32>
    %c0_10 = arith.constant 0 : index
    %c0_11 = arith.constant 0 : index
    %11 = vector.load %arg6[%c0_10, %c0_11] : memref<64x1xf32, #tpu.memory_space<vmem>>, vector<64x1xf32>
    %12 = vector.broadcast %11 : vector<64x1xf32> to vector<64x256xf32>
    %13 = arith.addf %10, %12 : vector<64x256xf32>
    %c0_12 = arith.constant 0 : index
    %c0_13 = arith.constant 0 : index
    %c0_14 = arith.constant 0 : index
    %14 = vector.load %arg7[%c0_12, %c0_13, %c0_14] : memref<1x64x1xf32, #tpu.memory_space<vmem>>, vector<1x64x1xf32>
    %15 = vector.shape_cast %14 : vector<1x64x1xf32> to vector<64x1xf32>
    %16 = vector.broadcast %15 : vector<64x1xf32> to vector<64x256xf32>
    %17 = arith.addf %13, %16 : vector<64x256xf32>
    %cst_15 = arith.constant 0.000000e+00 : f32
    %18 = vector.broadcast %cst_15 : f32 to vector<64x256xf32>
    %19 = arith.subf %18, %17 : vector<64x256xf32>
    %20 = math.exp %19 : vector<64x256xf32>
    %cst_16 = arith.constant 1.000000e+00 : f32
    %21 = vector.broadcast %cst_16 : f32 to vector<64x256xf32>
    %22 = arith.addf %21, %20 : vector<64x256xf32>
    %cst_17 = arith.constant 1.000000e+00 : f32
    %23 = vector.broadcast %cst_17 : f32 to vector<64x256xf32>
    %24 = arith.divf %23, %22 : vector<64x256xf32>
    %25 = arith.mulf %1, %24 : vector<64x256xf32>
    %c0_18 = arith.constant 0 : index
    %c0_19 = arith.constant 0 : index
    %c0_20 = arith.constant 0 : index
    %26 = vector.load %arg8[%c0_18, %c0_19, %c0_20] : memref<1x64x256xf32, #tpu.memory_space<vmem>>, vector<1x64x256xf32>
    %27 = vector.shape_cast %26 : vector<1x64x256xf32> to vector<64x256xf32>
    %28 = vector.shape_cast %25 : vector<64x256xf32> to vector<1x64x256xf32>
    tpu.vector_store %arg8[%c0_18, %c0_19, %c0_20], %28 {strides = array<i32>} : memref<1x64x256xf32, #tpu.memory_space<vmem>>, vector<1x64x256xf32>,
    return
  }
  func.func @transform_0(%arg0: i32, %arg1: i32) -> (i32, i32, i32) {
    %c0_i32 = arith.constant 0 : i32
    %c0_i32_0 = arith.constant 0 : i32
    return %arg0, %c0_i32, %arg1 : i32, i32, i32
  }
  func.func @transform_1(%arg0: i32, %arg1: i32) -> (i32, i32) {
    %c0_i32 = arith.constant 0 : i32
    %c0_i32_0 = arith.constant 0 : i32
    %c0_i32_1 = arith.constant 0 : i32
    return %c0_i32, %c0_i32_0 : i32, i32
  }
  func.func @transform_2(%arg0: i32, %arg1: i32) -> (i32, i32) {
    %c0_i32 = arith.constant 0 : i32
    %c0_i32_0 = arith.constant 0 : i32
    %c0_i32_1 = arith.constant 0 : i32
    return %c0_i32, %c0_i32_0 : i32, i32
  }
  func.func @transform_3(%arg0: i32, %arg1: i32) -> (i32, i32) {
    %c0_i32 = arith.constant 0 : i32
    %c0_i32_0 = arith.constant 0 : i32
    %c0_i32_1 = arith.constant 0 : i32
    return %c0_i32, %c0_i32_0 : i32, i32
  }
  func.func @transform_4(%arg0: i32, %arg1: i32) -> (i32, i32) {
    %c0_i32 = arith.constant 0 : i32
    %c0_i32_0 = arith.constant 0 : i32
    %c0_i32_1 = arith.constant 0 : i32
    return %c0_i32, %c0_i32_0 : i32, i32
  }
  func.func @transform_5(%arg0: i32, %arg1: i32) -> (i32, i32, i32) {
    %c0_i32 = arith.constant 0 : i32
    %c0_i32_0 = arith.constant 0 : i32
    %c0_i32_1 = arith.constant 0 : i32
    return %arg0, %c0_i32, %c0_i32_0 : i32, i32, i32
  }
  func.func @transform_6(%arg0: i32, %arg1: i32) -> (i32, i32, i32) {
    %c0_i32 = arith.constant 0 : i32
    %c0_i32_0 = arith.constant 0 : i32
    return %arg0, %c0_i32, %arg1 : i32, i32, i32
  }
}

</mosaic_0001>

<bundles_post_ra>
// kernel: ms_cam_forward.4
= control target key start
LH: loop header
LB: loop body
LE: loop exit
PB: predicated region body
PF: predicated region fallthrough
CT: control target
= control target key end

     0   :  { %s1530_s9 = smov 0   ;;  %s1532_s10 = smov 0   ;;  %s2079_s0 = inlined_call_operand.vmem [shape: f32[4,64,256], index: 0, kind: input, shape index: {}]   ;;  %s2080_s1 = inlined_call_operand.vmem [shape: f32[4,1,64,64], index: 1, kind: output, shape index: {0}]   ;;  %s2081_s2 = inlined_call_operand.vmem [shape: f32[4,1,64,1], index: 2, kind: output, shape index: {1}]  }
   0x1   :  { %s1534_s11 = smov 0  }
   0x2 LB: > { %s25_s12 = sadd.s32 1, %s1509_s10  ;;  %p1455_p0 = scmp.ge.s32.totalorder %s1513_s11, 1  ;;  %s1513_s11 = sphi %s1534_s11, %s13_s11   ;;  %s1509_s10 = sphi %s1532_s10, %s2138_s10   ;;  %s1505_s9 = sphi %s1530_s9, %s2137_s9  }
   0x3   : > { %p27_p1 = scmp.ge.s32.totalorder %s25_s12, 4  ;;  %p138_p2 = scmp.lt.s32.totalorder %s1513_s11, 5 }
   0x5   : > { %s2140_s12 = smov (%p27_p1, %s25_s12), 0  ;;  %p139_p3 = pnand %p1455_p0, %p138_p2 }
   0x7   : > { %142 = sbr.rel (%p139_p3) target bundleno = 348 (0x15c), region = 24 }
   0xc   : > { %p178_p4 = scmp.lt.s32.totalorder %s1505_s9, 3  ;;  %vm1300_vm0 = vcmask 7168   ;;  %vm1267_vm1 = vcmask 523264  }
   0xe   : > { %s2142_s9 = smov (!%p178_p4, %s1505_s9), 3 }
   0xf   : > { %s1464_s13 = sshll.u32 %s2142_s9, 7  ;;  %s1465_s17 = sshll.u32 %s2142_s9, 6 }
  0x10   : > { %s1554_s16 = scalar_lea.vmem %s2079_s0, %s1464_s13  ;;  %s204_s20 = scalar_lea.vmem %s2081_s2, %s1465_s17 }
  0x11   : > { %v1557_v0 = vld [vmem:[%s1554_s16 + $0x78] sm:$0xff]  ;;  %v1560_v1 = vld [vmem:[%s1554_s16 + $0x70] sm:$0xff]  ;;  %v1563_v2 = vld [vmem:[%s1554_s16 + $0x68] sm:$0xff]  ;;  %s2035_s23 = scalar_lea.vmem %s2080_s1, %s1465_s17 }
  0x12   : > { %v1566_v3 = vand.u32 4294901760, %v1557_v0  ;;  %v1569_v4 = vand.u32 4294901760, %v1560_v1  ;;  %v1572_v5 = vand.u32 4294901760, %v1563_v2  ;;  %v1575_v6 = vld [vmem:[%s1554_s16 + $0x60] sm:$0xff]  ;;  %v1578_v7 = vld [vmem:[%s1554_s16 + $0x58] sm:$0xff]  ;;  %v1581_v8 = vld [vmem:[%s1554_s16 + $0x50] sm:$0xff] }
  0x13   : > { %v1584_v9 = vand.u32 4294901760, %v1575_v6  ;;  %v1587_v10 = vand.u32 4294901760, %v1578_v7  ;;  %v1590_v11 = vand.u32 4294901760, %v1581_v8  ;;  %v1593_v12 = vld [vmem:[%s1554_s16 + $0x48] sm:$0xff]  ;;  %v1596_v13 = vld [vmem:[%s1554_s16 + $0x40] sm:$0xff]  ;;  %v1599_v14 = vld [vmem:[%s1554_s16 + $0x38] sm:$0xff] }
  0x14   : > { %238 = vmatprep.subr.mxu0 %v1566_v3  ;;  %v1604_v15 = vsub.f32 %v1557_v0, %v1566_v3  ;;  %v1608_v16 = vsub.f32 %v1560_v1, %v1569_v4  ;;  %v1611_v17 = vand.u32 4294901760, %v1593_v12  ;;  %v1615_v18 = vsub.f32 %v1563_v2, %v1572_v5  ;;  %v1618_v19 = vld [vmem:[%s1554_s16 + $0x30] sm:$0xff]  ;;  %v1646_v27 = vld [vmem:[%s1554_s16 + $0x28] sm:$0xff]  ;;  %v209_v40 = vld [vmem:[%s1554_s16 + $0x20] sm:$0xff] }
  0x15   : > { %240 = vmatpush1.xpose.msra.mxu0 %v1569_v4  ;;  %v1622_v20 = vand.u32 4294901760, %v1596_v13  ;;  %v1626_v21 = vsub.f32 %v1575_v6, %v1584_v9  ;;  %v1630_v22 = vsub.f32 %v1578_v7, %v1587_v10  ;;  %v1643_v26 = vand.u32 4294901760, %v1599_v14  ;;  %v206_v45 = vld [vmem:[%s1554_s16 + $0x8] sm:$0xff]  ;;  %v208_v47 = vld [vmem:[%s1554_s16 + $0x18] sm:$0xff]  ;;  %v205_v56 = vld [vmem:[%s1554_s16] sm:$0xff] }
  0x16   : > { %242 = vmatprep.subr.mxu0 %v1572_v5  ;;  %v1634_v23 = vand.u32 4294901760, %v1604_v15  ;;  %v1637_v24 = vand.u32 4294901760, %v1608_v16  ;;  %v1640_v25 = vand.u32 4294901760, %v1615_v18  ;;  %v1655_v30 = vand.u32 4294901760, %v1618_v19  ;;  %v207_v60 = vld [vmem:[%s1554_s16 + $0x10] sm:$0xff] }
  0x17   : > { %v1649_v28 = vand.u32 4294901760, %v1626_v21  ;;  %v1652_v29 = vand.u32 4294901760, %v1630_v22  ;;  %v1659_v31 = vsub.f32 %v1581_v8, %v1590_v11  ;;  %v1669_v35 = vsub.f32 %v1593_v12, %v1611_v17 }
  0x18   : > { %2109 = vst [vmem:[#allocation2_spill] sm:$0xff] %v1634_v23  ;;  %2110 = vst [vmem:[#allocation3_spill] sm:$0xff] %v1637_v24  ;;  %v409_v32 = vsub.f32 %v1604_v15, %v1634_v23  ;;  %v415_v33 = vsub.f32 %v1608_v16, %v1637_v24  ;;  %v394_v34 = vsub.f32 %v1615_v18, %v1640_v25  ;;  %v1680_v39 = vand.u32 4294901760, %v1646_v27 }
  0x19   : > { %2111 = vst [vmem:[#allocation4_spill] sm:$0xff] %v1640_v25  ;;  %2112 = vst [vmem:[#allocation5_spill] sm:$0xff] %v1649_v28  ;;  %244 = vmatpush1.xpose.msra.mxu0 %v1584_v9  ;;  %v400_v36 = vsub.f32 %v1626_v21, %v1649_v28  ;;  %v379_v37 = vsub.f32 %v1630_v22, %v1652_v29  ;;  %v1677_v38 = vand.u32 4294901760, %v1659_v31  ;;  %v1691_v44 = vand.u32 4294901760, %v1669_v35 }
  0x1a   : > { %2113 = vst [vmem:[#allocation6_spill] sm:$0xff] %v1652_v29  ;;  %246 = vmatprep.subr.mxu0 %v1587_v10  ;;  %v1684_v41 = vand.u32 4294901760, %v409_v32  ;;  %v1686_v42 = vand.u32 4294901760, %v415_v33  ;;  %v1688_v43 = vand.u32 4294901760, %v394_v34  ;;  %v1696_v46 = vsub.f32 %v1596_v13, %v1622_v20 }
  0x1b   : > { %2114 = vst [vmem:[#allocation7_spill] sm:$0xff] %v1677_v38  ;;  %2116 = vst [vmem:[#allocation9_spill] sm:$0xff] %v1691_v44  ;;  %v1700_v48 = vand.u32 4294901760, %v400_v36  ;;  %v1702_v49 = vand.u32 4294901760, %v379_v37  ;;  %v1704_v50 = vand.u32 4294901760, %v209_v40  ;;  %v1708_v51 = vsub.f32 %v1599_v14, %v1643_v26 }
  0x1c   : > { %2115 = vst [vmem:[#allocation8_spill] sm:$0xff] %v1686_v42  ;;  %443 = vmatprep.subr.mxu1 %v1684_v41  ;;  %v385_v52 = vsub.f32 %v1659_v31, %v1677_v38  ;;  %v1715_v53 = vand.u32 4294901760, %v1696_v46  ;;  %v1719_v54 = vsub.f32 %v1618_v19, %v1655_v30  ;;  %v1721_v55 = vand.u32 4294901760, %v206_v45 }
  0x1d   : > { %248 = vmatpush1.xpose.msra.mxu0 %v1590_v11  ;;  %449 = vmatpush1.xpose.msra.mxu1 %v1686_v42  ;;  %v364_v57 = vsub.f32 %v1669_v35, %v1691_v44  ;;  %v1728_v58 = vand.u32 4294901760, %v208_v47  ;;  %v1731_v59 = vand.u32 4294901760, %v1708_v51  ;;  %v1736_v61 = vsub.f32 %v1646_v27, %v1680_v39 }
  0x1e   : > { %2117 = vst [vmem:[#allocation10_spill] sm:$0xff] %v1715_v53  ;;  %250 = vmatprep.subr.mxu0 %v1611_v17  ;;  %455 = vmatprep.subr.mxu1 %v1688_v43  ;;  %v1739_v62 = vsub.f32 %v206_v45, %v1721_v55  ;;  %v370_v63 = vsub.f32 %v1696_v46, %v1715_v53  ;;  %v1745_v32 = vand.u32 4294901760, %v1719_v54  ;;  %v1747_v33 = vand.u32 4294901760, %v205_v56 }
  0x1f   : > { %2118 = vst [vmem:[#allocation11_spill] sm:$0xff] %v1731_v59  ;;  %567 = vmatprep.mubr.f32.mxu1 %v1721_v55  ;;  %v1751_v34 = vand.u32 4294901760, %v385_v52  ;;  %v1753_v36 = vand.u32 4294901760, %v207_v60  ;;  %v1756_v37 = vsub.f32 %v209_v40, %v1704_v50  ;;  %v1763_v53 = vand.u32 4294901760, %v364_v57 }
  0x20   : > { %2119 = vst [vmem:[#allocation12_spill] sm:$0xff] %v1739_v62  ;;  %2120 = vst [vmem:[#allocation13_spill] sm:$0xff] %v1745_v32  ;;  %v1759_v44 = vand.u32 4294901760, %v1739_v62  ;;  %v349_v38 = vsub.f32 %v1708_v51, %v1731_v59  ;;  %v1768_v52 = vand.u32 4294901760, %v1736_v61  ;;  %v1771_v29 = vsub.f32 %v208_v47, %v1728_v58 }
  0x21   : > { %252 = vmatpush1.xpose.msra.mxu0 %v1622_v20  ;;  %461 = vmatpush1.xpose.msra.mxu1 %v1700_v48  ;;  %v1775_v25 = vand.u32 4294901760, %v370_v63  ;;  %v355_v24 = vsub.f32 %v1719_v54, %v1745_v32  ;;  %v1780_v57 = vsub.f32 %v205_v56, %v1747_v33  ;;  %v1282_v23 = vadd.f32 %v1646_v27, %v209_v40 }
  0x22   : > { %2121 = vst [vmem:[#allocation14_spill] sm:$0xff] %v1759_v44  ;;  %254 = vmatprep.subr.mxu0 %v1643_v26  ;;  %467 = vmatprep.subr.mxu1 %v1702_v49  ;;  %2122 = vst [vmem:[#allocation15_spill] sm:$0xff] %v1768_v52  ;;  %v304_v28 = vsub.f32 %v1739_v62, %v1759_v44  ;;  %v1786_v59 = vand.u32 4294901760, %v1756_v37  ;;  %v1789_v44 = vsub.f32 %v207_v60, %v1753_v36 }
  0x23   : > { %v1276_v63 = vadd.f32 %v206_v45, %v205_v56  ;;  %v350_v32 = vand.u32 4294901760, %v349_v38  ;;  %v334_v27 = vsub.f32 %v1736_v61, %v1768_v52  ;;  %v1796_v40 = vand.u32 4294901760, %v1771_v29  ;;  %1283 = vadd.xlane.f32.xlu1 %v1282_v23 }
  0x24   : > { %v305_v42 = vand.u32 4294901760, %v304_v28  ;;  %v1285_v28 = vadd.f32 %v1599_v14, %v1618_v19  ;;  %v1801_v62 = vand.u32 4294901760, %v1780_v57  ;;  %v1279_v45 = vadd.f32 %v208_v47, %v207_v60 }
  0x25   : > { %256 = vmatpush1.xpose.msra.mxu0 %v1655_v30  ;;  %473 = vmatpush1.xpose.msra.mxu1 %v1751_v34  ;;  %v356_v38 = vand.u32 4294901760, %v355_v24  ;;  %v340_v56 = vsub.f32 %v1756_v37, %v1786_v59  ;;  %v1808_v52 = vand.u32 4294901760, %v1789_v44  ;;  %v335_v14 = vand.u32 4294901760, %v334_v27 }
  0x26   : > { %258 = vmatprep.subr.mxu0 %v1680_v39  ;;  %479 = vmatprep.subr.mxu1 %v1763_v53  ;;  %v319_v19 = vsub.f32 %v1771_v29, %v1796_v40  ;;  %v1291_v23 = vadd.f32 %v1578_v7, %v1581_v8  ;;  %v310_v24 = vsub.f32 %v1780_v57, %v1801_v62 }
  0x27   : > { %306 = vmatprep.mubr.f32.mxu0 %v305_v42  ;;  %1277 = vadd.xlane.f32.xlu0 %v1276_v63  ;;  %v1288_v47 = vadd.f32 %v1593_v12, %v1596_v13  ;;  %v341_v60 = vand.u32 4294901760, %v340_v56  ;;  %v325_v63 = vsub.f32 %v1789_v44, %v1808_v52  ;;  %v1297_v7 = vadd.f32 %v1557_v0, %v1560_v1  ;;  %v2123_v0 = vld [vmem:[#allocation12_spill] sm:$0xff] }
  0x28   : > { %1286 = vadd.xlane.f32.xlu1 %v1285_v28  ;;  %v320_v27 = vand.u32 4294901760, %v319_v19  ;;  %v311_v8 = vand.u32 4294901760, %v310_v24  ;;  %v1294_v12 = vadd.f32 %v1563_v2, %v1575_v6  ;;  %v2124_v1 = vld [vmem:[#allocation8_spill] sm:$0xff]  ;;  %v2125_v2 = vld [vmem:[#allocation2_spill] sm:$0xff]  ;;  %v2126_v6 = vld [vmem:[#allocation3_spill] sm:$0xff] }
  0x29   : > { %260 = vmatpush1.xpose.msra.mxu0 %v1704_v50  ;;  %485 = vmatpush1.xpose.msra.mxu1 %v1775_v25  ;;  %v326_v13 = vand.u32 4294901760, %v325_v63 }
  0x2a   : > { %262 = vmatprep.subr.mxu0 %v1728_v58  ;;  %491 = vmatprep.subr.mxu1 %v350_v32 }
  0x2b   : > { %1280 = vadd.xlane.f32.xlu0 %v1279_v45 }
  0x2c   : > { %1292 = vadd.xlane.f32.xlu1 %v1291_v23 }
  0x2d   : > { %264 = vmatpush1.xpose.msra.mxu0 %v1753_v36  ;;  %497 = vmatpush1.xpose.msra.mxu1 %v356_v38 }
  0x2e   : > { %266 = vmatprep.subr.mxu0 %v1721_v55  ;;  %503 = vmatprep.subr.mxu1 %v335_v14 }
  0x2f   : > { %1289 = vadd.xlane.f32.xlu0 %v1288_v47 }
  0x30   : > { %1298 = vadd.xlane.f32.xlu1 %v1297_v7 }
  0x31   : > { %268 = vmatpush1.xpose.msra.mxu0 %v1747_v33  ;;  %509 = vmatpush1.xpose.msra.mxu1 %v341_v60 }
  0x32   : > { %515 = vmatprep.subr.mxu1 %v320_v27  ;;  %641 = vmatprep.subr.mxu0 %v1604_v15 }
  0x33   : > { %1295 = vadd.xlane.f32.xlu0 %v1294_v12 }
  0x34   : > { %312 = vmatmul.mubr.f32.vlgmr.msra.gmra.mxu0 %v311_v8 }
  0x35   : > { %521 = vmatpush1.xpose.msra.mxu1 %v326_v13  ;;  %644 = vmatpush1.xpose.msra.mxu0 %v1608_v16 }
  0x36   : > { %321 = vmatprep.mubr.f32.mxu0 %v320_v27  ;;  %527 = vmatprep.subr.mxu1 %v305_v42  ;;  %v2129_v42 = vld [vmem:[#allocation14_spill] sm:$0xff] }
  0x37   : > { %647 = vmatprep.subr.mxu0 %v1615_v18 }
  0x38   : > { %327 = vmatmul.mubr.f32.gmra.mxu0 %v326_v13 }
  0x39   : > { %533 = vmatpush1.xpose.msra.mxu1 %v311_v8  ;;  %650 = vmatpush1.xpose.msra.mxu0 %v1626_v21 }
  0x3a   : > { %336 = vmatprep.mubr.f32.mxu0 %v335_v14  ;;  %653 = vmatprep.subr.mxu0 %v1630_v22 }
  0x3b   : > { %809 = vmatprep.subr.mxu1 %v1566_v3 }
  0x3c   : > { %342 = vmatmul.mubr.f32.gmra.mxu0 %v341_v60  ;;  %569 = vmatmul.mubr.f32.vlgmr.msra.gmra.mxu1 %v1747_v33 }
  0x3d   : > { %656 = vmatpush1.xpose.msra.mxu0 %v1659_v31  ;;  %811 = vmatpush1.xpose.msra.mxu1 %v1569_v4 }
  0x3e   : > { %351 = vmatprep.mubr.f32.mxu0 %v350_v32  ;;  %574 = vmatprep.mubr.f32.mxu1 %v1728_v58 }
  0x3f   : > { %659 = vmatprep.subr.mxu0 %v1669_v35  ;;  %813 = vmatprep.subr.mxu1 %v1572_v5 }
  0x40   : > { %357 = vmatmul.mubr.f32.gmra.mxu0 %v356_v38  ;;  %576 = vmatmul.mubr.f32.gmra.mxu1 %v1753_v36 }
  0x41   : > { %662 = vmatpush1.xpose.msra.mxu0 %v1696_v46  ;;  %815 = vmatpush1.xpose.msra.mxu1 %v1584_v9 }
  0x42   : > { %366 = vmatprep.mubr.f32.mxu0 %v1763_v53  ;;  %581 = vmatprep.mubr.f32.mxu1 %v1680_v39  ;;  %v2135_v53 = vld [vmem:[#allocation11_spill] sm:$0xff] }
  0x43   : > { %665 = vmatprep.subr.mxu0 %v1708_v51  ;;  %817 = vmatprep.subr.mxu1 %v1587_v10 }
  0x44   : > { %372 = vmatmul.mubr.f32.gmra.mxu0 %v1775_v25  ;;  %583 = vmatmul.mubr.f32.gmra.mxu1 %v1704_v50  ;;  %v2127_v25 = vld [vmem:[#allocation4_spill] sm:$0xff] }
  0x45   : > { %668 = vmatpush1.xpose.msra.mxu0 %v1719_v54  ;;  %819 = vmatpush1.xpose.msra.mxu1 %v1590_v11 }
  0x46   : > { %381 = vmatprep.mubr.f32.mxu0 %v1702_v49  ;;  %588 = vmatprep.mubr.f32.mxu1 %v1643_v26  ;;  %v2134_v49 = vld [vmem:[#allocation15_spill] sm:$0xff] }
  0x47   : > { %671 = vmatprep.subr.mxu0 %v1736_v61  ;;  %821 = vmatprep.subr.mxu1 %v1611_v17 }
  0x48   : > { %387 = vmatmul.mubr.f32.gmra.mxu0 %v1751_v34  ;;  %590 = vmatmul.mubr.f32.gmra.mxu1 %v1655_v30 }
  0x49   : > { %674 = vmatpush1.xpose.msra.mxu0 %v1756_v37  ;;  %823 = vmatpush1.xpose.msra.mxu1 %v1622_v20 }
  0x4a   : > { %396 = vmatprep.mubr.f32.mxu0 %v1688_v43  ;;  %595 = vmatprep.mubr.f32.mxu1 %v1611_v17  ;;  %v2130_v43 = vld [vmem:[#allocation6_spill] sm:$0xff] }
  0x4b   : > { %677 = vmatprep.subr.mxu0 %v1771_v29  ;;  %825 = vmatprep.subr.mxu1 %v1643_v26 }
  0x4c   : > { %402 = vmatmul.mubr.f32.gmra.mxu0 %v1700_v48  ;;  %597 = vmatmul.mubr.f32.gmra.mxu1 %v1622_v20  ;;  %v2133_v48 = vld [vmem:[#allocation10_spill] sm:$0xff] }
  0x4d   : > { %680 = vmatpush1.xpose.msra.mxu0 %v1789_v44  ;;  %827 = vmatpush1.xpose.msra.mxu1 %v1655_v30 }
  0x4e   : > { %411 = vmatprep.mubr.f32.mxu0 %v1684_v41  ;;  %602 = vmatprep.mubr.f32.mxu1 %v1587_v10  ;;  %v2128_v41 = vld [vmem:[#allocation5_spill] sm:$0xff] }
  0x4f   : > { %683 = vmatprep.subr.mxu0 %v2123_v0  ;;  %829 = vmatprep.subr.mxu1 %v1680_v39 }
  0x50   : > { %417 = vmatmul.mubr.f32.gmra.mxu0 %v2124_v1  ;;  %604 = vmatmul.mubr.f32.gmra.mxu1 %v1590_v11 }
  0x51   : > { %686 = vmatpush1.xpose.msra.mxu0 %v1780_v57  ;;  %831 = vmatpush1.xpose.msra.mxu1 %v1704_v50 }
  0x52   : > { %609 = vmatprep.mubr.f32.mxu1 %v1572_v5  ;;  %721 = vmatprep.mubr.f32.mxu0 %v2123_v0 }
  0x53   : > { %833 = vmatprep.subr.mxu1 %v1728_v58  ;;  %980 = vmatprep.subr.mxu0 %v2125_v2 }
  0x54   : > { %611 = vmatmul.mubr.f32.gmra.mxu1 %v1584_v9  ;;  %724 = vmatmul.mubr.f32.vlgmr.msra.gmra.mxu0 %v1780_v57 }
  0x55   : > { %835 = vmatpush1.xpose.msra.mxu1 %v1753_v36  ;;  %984 = vmatpush1.xpose.msra.mxu0 %v2126_v6 }
  0x56   : > { %616 = vmatprep.mubr.f32.mxu1 %v1566_v3  ;;  %730 = vmatprep.mubr.f32.mxu0 %v1771_v29  ;;  %v2131_v29 = vld [vmem:[#allocation7_spill] sm:$0xff] }
  0x57   : > { %837 = vmatprep.subr.mxu1 %v1721_v55  ;;  %988 = vmatprep.subr.mxu0 %v2127_v25 }
  0x58   : > { %618 = vmatmul.mubr.f32.gmra.mxu1 %v1569_v4  ;;  %733 = vmatmul.mubr.f32.gmra.mxu0 %v1789_v44  ;;  %v2132_v44 = vld [vmem:[#allocation9_spill] sm:$0xff] }
  0x59   : > { %839 = vmatpush1.xpose.msra.mxu1 %v1747_v33  ;;  %992 = vmatpush1.xpose.msra.mxu0 %v2128_v41 }
  0x5a   : > { %739 = vmatprep.mubr.f32.mxu0 %v1736_v61  ;;  %875 = vmatprep.mubr.f32.mxu1 %v2129_v42 }
  0x5b   : > { %996 = vmatprep.subr.mxu0 %v2130_v43  ;;  %1147 = vmatprep.subr.mxu1 %v1566_v3 }
  0x5c   : > { %742 = vmatmul.mubr.f32.gmra.mxu0 %v1756_v37  ;;  %879 = vmatmul.mubr.f32.vlgmr.msra.gmra.mxu1 %v1801_v62 }
  0x5d   : > { %1000 = vmatpush1.xpose.msra.mxu0 %v2131_v29  ;;  %1149 = vmatpush1.xpose.msra.mxu1 %v1569_v4 }
  0x5e   : > { %748 = vmatprep.mubr.f32.mxu0 %v1708_v51  ;;  %886 = vmatprep.mubr.f32.mxu1 %v1796_v40  ;;  %v2136_v51 = vld [vmem:[#allocation13_spill] sm:$0xff] }
  0x5f   : > { %1004 = vmatprep.subr.mxu0 %v2132_v44  ;;  %1151 = vmatprep.subr.mxu1 %v1572_v5 }
  0x60   : > { %751 = vmatmul.mubr.f32.gmra.mxu0 %v1719_v54  ;;  %890 = vmatmul.mubr.f32.gmra.mxu1 %v1808_v52 }
  0x61   : > { %1008 = vmatpush1.xpose.msra.mxu0 %v2133_v48  ;;  %1153 = vmatpush1.xpose.msra.mxu1 %v1584_v9 }
  0x62   : > { %757 = vmatprep.mubr.f32.mxu0 %v1669_v35  ;;  %897 = vmatprep.mubr.f32.mxu1 %v2134_v49 }
  0x63   : > { %1012 = vmatprep.subr.mxu0 %v2135_v53  ;;  %1155 = vmatprep.subr.mxu1 %v1587_v10 }
  0x64   : > { %760 = vmatmul.mubr.f32.gmra.mxu0 %v1696_v46  ;;  %901 = vmatmul.mubr.f32.gmra.mxu1 %v1786_v59 }
  0x65   : > { %1016 = vmatpush1.xpose.msra.mxu0 %v2136_v51  ;;  %1157 = vmatpush1.xpose.msra.mxu1 %v1590_v11 }
  0x66   : > { %766 = vmatprep.mubr.f32.mxu0 %v1630_v22  ;;  %908 = vmatprep.mubr.f32.mxu1 %v2135_v53 }
  0x67   : > { %1020 = vmatprep.subr.mxu0 %v2134_v49  ;;  %1159 = vmatprep.subr.mxu1 %v1611_v17 }
  0x68   : > { %769 = vmatmul.mubr.f32.gmra.mxu0 %v1659_v31  ;;  %912 = vmatmul.mubr.f32.gmra.mxu1 %v2136_v51 }
  0x69   : > { %1024 = vmatpush1.xpose.msra.mxu0 %v1786_v59  ;;  %1161 = vmatpush1.xpose.msra.mxu1 %v1622_v20 }
  0x6a   : > { %775 = vmatprep.mubr.f32.mxu0 %v1615_v18  ;;  %919 = vmatprep.mubr.f32.mxu1 %v2132_v44 }
  0x6b   : > { %1028 = vmatprep.subr.mxu0 %v1796_v40  ;;  %1163 = vmatprep.subr.mxu1 %v1643_v26 }
  0x6c   : > { %778 = vmatmul.mubr.f32.gmra.mxu0 %v1626_v21  ;;  %923 = vmatmul.mubr.f32.gmra.mxu1 %v2133_v48 }
  0x6d   : > { %1032 = vmatpush1.xpose.msra.mxu0 %v1808_v52  ;;  %1165 = vmatpush1.xpose.msra.mxu1 %v1655_v30 }
  0x6e   : > { %784 = vmatprep.mubr.f32.mxu0 %v1604_v15  ;;  %930 = vmatprep.mubr.f32.mxu1 %v2130_v43 }
  0x6f   : > { %1036 = vmatprep.subr.mxu0 %v2129_v42  ;;  %1167 = vmatprep.subr.mxu1 %v1680_v39 }
  0x70   : > { %787 = vmatmul.mubr.f32.gmra.mxu0 %v1608_v16  ;;  %934 = vmatmul.mubr.f32.gmra.mxu1 %v2131_v29 }
  0x71   : > { %1040 = vmatpush1.xpose.msra.mxu0 %v1801_v62  ;;  %1169 = vmatpush1.xpose.msra.mxu1 %v1704_v50 }
  0x72   : > { %941 = vmatprep.mubr.f32.mxu1 %v2127_v25  ;;  %1074 = vmatprep.mubr.f32.mxu0 %v1721_v55 }
  0x73   : > { %1171 = vmatprep.subr.mxu1 %v1728_v58 }
  0x74   : > { %945 = vmatmul.mubr.f32.gmra.mxu1 %v2128_v41  ;;  %1076 = vmatmul.mubr.f32.vlgmr.msra.gmra.mxu0 %v1747_v33 }
  0x75   : > { %1173 = vmatpush1.xpose.msra.mxu1 %v1753_v36  ;;  %952 = vmatprep.mubr.f32.mxu1 %v2125_v2 }
  0x76   : > { %1081 = vmatprep.mubr.f32.mxu0 %v1728_v58  ;;  %1175 = vmatprep.subr.mxu1 %v1721_v55 }
  0x78   : > { %956 = vmatmul.mubr.f32.gmra.mxu1 %v2126_v6  ;;  %1083 = vmatmul.mubr.f32.gmra.mxu0 %v1753_v36 }
  0x79   : > { %1177 = vmatpush1.xpose.msra.mxu1 %v1747_v33  ;;  %1088 = vmatprep.mubr.f32.mxu0 %v1680_v39 }
  0x7a   : > { %1211 = vmatprep.mubr.f32.mxu1 %v1721_v55 }
  0x7c   : > { %1090 = vmatmul.mubr.f32.gmra.mxu0 %v1704_v50  ;;  %1213 = vmatmul.mubr.f32.vlgmr.msra.gmra.mxu1 %v1747_v33 }
  0x7d   : > { %1095 = vmatprep.mubr.f32.mxu0 %v1643_v26  ;;  %1218 = vmatprep.mubr.f32.mxu1 %v1728_v58 }
  0x80   : > { %1097 = vmatmul.mubr.f32.gmra.mxu0 %v1655_v30  ;;  %1220 = vmatmul.mubr.f32.gmra.mxu1 %v1753_v36 }
  0x81   : > { %1102 = vmatprep.mubr.f32.mxu0 %v1611_v17  ;;  %1225 = vmatprep.mubr.f32.mxu1 %v1680_v39 }
  0x84   : > { %1104 = vmatmul.mubr.f32.gmra.mxu0 %v1622_v20  ;;  %1227 = vmatmul.mubr.f32.gmra.mxu1 %v1704_v50 }
  0x85   : > { %1109 = vmatprep.mubr.f32.mxu0 %v1587_v10  ;;  %1232 = vmatprep.mubr.f32.mxu1 %v1643_v26 }
  0x88   : > { %1111 = vmatmul.mubr.f32.gmra.mxu0 %v1590_v11  ;;  %1234 = vmatmul.mubr.f32.gmra.mxu1 %v1655_v30 }
  0x89   : > { %1116 = vmatprep.mubr.f32.mxu0 %v1572_v5  ;;  %1239 = vmatprep.mubr.f32.mxu1 %v1611_v17 }
  0x8c   : > { %1118 = vmatmul.mubr.f32.gmra.mxu0 %v1584_v9  ;;  %1241 = vmatmul.mubr.f32.gmra.mxu1 %v1622_v20 }
  0x8d   : > { %1123 = vmatprep.mubr.f32.mxu0 %v1566_v3  ;;  %1246 = vmatprep.mubr.f32.mxu1 %v1587_v10 }
  0x90   : > { %1125 = vmatmul.mubr.f32.gmra.mxu0 %v1569_v4  ;;  %1248 = vmatmul.mubr.f32.gmra.mxu1 %v1590_v11 }
  0x91   : > { %1253 = vmatprep.mubr.f32.mxu1 %v1572_v5 }
  0x94   : > { %1255 = vmatmul.mubr.f32.gmra.mxu1 %v1584_v9 }
  0x95   : > { %1260 = vmatprep.mubr.f32.mxu1 %v1566_v3 }
  0x98   : > { %1262 = vmatmul.mubr.f32.gmra.mxu1 %v1569_v4 }
  0xac   : > { %v1284_v10 = vpop.xlane.xlu1 %1283 }
  0xad   : > { %1303 = vst.msk [vmem:[%s204_s20 + $0x10] sm:$0xff] %vm1300_vm0, %v1284_v10 }
  0xb0   : > { %v1278_v15 = vpop.xlane.xlu0 %1277 }
  0xb1   : > { %1301 = vst.msk [vmem:[%s204_s20] sm:$0xff] %vm1300_vm0, %v1278_v15  ;;  %v1287_v5 = vpop.xlane.xlu1 %1286 }
  0xb2   : > { %1304 = vst.msk [vmem:[%s204_s20 + $0x18] sm:$0xff] %vm1300_vm0, %v1287_v5 }
  0xb4   : > { %v1281_v11 = vpop.xlane.xlu0 %1280 }
  0xb5   : > { %1302 = vst.msk [vmem:[%s204_s20 + $0x8] sm:$0xff] %vm1300_vm0, %v1281_v11  ;;  %v1293_v3 = vpop.xlane.xlu1 %1292 }
  0xb6   : > { %1306 = vst.msk [vmem:[%s204_s20 + $0x28] sm:$0xff] %vm1300_vm0, %v1293_v3 }
  0xb8   : > { %v1290_v4 = vpop.xlane.xlu0 %1289 }
  0xb9   : > { %1305 = vst.msk [vmem:[%s204_s20 + $0x20] sm:$0xff] %vm1300_vm0, %v1290_v4  ;;  %v1299_v9 = vpop.xlane.xlu1 %1298 }
  0xba   : > { %1308 = vst.msk [vmem:[%s204_s20 + $0x38] sm:$0xff] %vm1300_vm0, %v1299_v9 }
  0xbc   : > { %v1296_v16 = vpop.xlane.xlu0 %1295 }
  0xbd   : > { %1307 = vst.msk [vmem:[%s204_s20 + $0x30] sm:$0xff] %vm1300_vm0, %v1296_v16 }
  0xf4   : > { %v313_v17 = vpop.f32.mrf.mxu0 }
  0xf6   : > { %v315_v18 = vpop.f32.mrf.mxu0 }
  0xf8   : > { %v1993_v20 = vpop.f32.mrf.mxu0 }
  0xfa   : > { %v330_v21 = vpop.f32.mrf.mxu0 }
  0xfc   : > { %v1995_v22 = vpop.f32.mrf.mxu0  ;;  %v570_v26 = vpop.f32.mrf.mxu1 }
  0xfd   : > { %v571_v9 = vadd.f32 %v570_v26, %v313_v17 }
  0xfe   : > { %v345_v30 = vpop.f32.mrf.mxu0  ;;  %v572_v31 = vpop.f32.mrf.mxu1 }
 0x100   : > { %v1997_v35 = vpop.f32.mrf.mxu0  ;;  %v577_v39 = vpop.f32.mrf.mxu1 }
 0x102   : > { %v360_v46 = vpop.f32.mrf.mxu0  ;;  %v579_v50 = vpop.f32.mrf.mxu1 }
 0x103   : > { %v578_v46 = vadd.f32 %v577_v39, %v1993_v20 }
 0x104   : > { %v1999_v54 = vpop.f32.mrf.mxu0  ;;  %v2001_v55 = vpop.f32.mrf.mxu1 }
 0x105   : > { %v585_v26 = vadd.f32 %v2001_v55, %v1995_v22 }
 0x106   : > { %v375_v58 = vpop.f32.mrf.mxu0  ;;  %v586_v59 = vpop.f32.mrf.mxu1 }
 0x108   : > { %v2003_v61 = vpop.f32.mrf.mxu0  ;;  %v2005_v62 = vpop.f32.mrf.mxu1 }
 0x10a   : > { %v390_v32 = vpop.f32.mrf.mxu0  ;;  %v593_v33 = vpop.f32.mrf.mxu1 }
 0x10c   : > { %v2007_v34 = vpop.f32.mrf.mxu0  ;;  %v2009_v36 = vpop.f32.mrf.mxu1 }
 0x10e   : > { %v405_v37 = vpop.f32.mrf.mxu0  ;;  %v600_v52 = vpop.f32.mrf.mxu1 }
 0x110   : > { %v2011_v57 = vpop.f32.mrf.mxu0  ;;  %v2013_v40 = vpop.f32.mrf.mxu1 }
 0x112   : > { %v420_v28 = vpop.f32.mrf.mxu0  ;;  %v607_v45 = vpop.f32.mrf.mxu1 }
 0x114   : > { %v2015_v38 = vpop.f32.mrf.mxu1  ;;  %v725_v56 = vpop.f32.mrf.mxu0 }
 0x115   : > { %v726_v21 = vadd.f32 %v725_v56, %v571_v9 }
 0x116   : > { %v614_v14 = vpop.f32.mrf.mxu1  ;;  %v727_v19 = vpop.f32.mrf.mxu0 }
 0x118   : > { %v2017_v23 = vpop.f32.mrf.mxu1  ;;  %v734_v24 = vpop.f32.mrf.mxu0 }
 0x119   : > { %v735_v32 = vadd.f32 %v734_v24, %v578_v46  ;;  %v592_v24 = vadd.f32 %v2005_v62, %v1997_v35 }
 0x11a   : > { %v621_v47 = vpop.f32.mrf.mxu1  ;;  %v736_v60 = vpop.f32.mrf.mxu0 }
 0x11c   : > { %v743_v63 = vpop.f32.mrf.mxu0  ;;  %v880_v27 = vpop.f32.mrf.mxu1 }
 0x11d   : > { %v881_v50 = vadd.f32 %v880_v27, %v726_v21  ;;  %v744_v45 = vadd.f32 %v743_v63, %v585_v26  ;;  %v599_v63 = vadd.f32 %v2009_v36, %v1999_v54  ;;  %v620_v21 = vadd.f32 %v2017_v23, %v2011_v57 }
 0x11e   : > { %v745_v7 = vpop.f32.mrf.mxu0  ;;  %v882_v8 = vpop.f32.mrf.mxu1 }
 0x120   : > { %v752_v12 = vpop.f32.mrf.mxu0  ;;  %v891_v13 = vpop.f32.mrf.mxu1 }
 0x121   : > { %v892_v52 = vadd.f32 %v891_v13, %v735_v32  ;;  %v753_v22 = vadd.f32 %v752_v12, %v592_v24  ;;  %v606_v12 = vadd.f32 %v2013_v40, %v2003_v61 }
 0x122   : > { %v754_v0 = vpop.f32.mrf.mxu0  ;;  %v893_v1 = vpop.f32.mrf.mxu1 }
 0x124   : > { %v761_v2 = vpop.f32.mrf.mxu0  ;;  %v902_v6 = vpop.f32.mrf.mxu1 }
 0x125   : > { %v903_v47 = vadd.f32 %v902_v6, %v744_v45  ;;  %v762_v35 = vadd.f32 %v761_v2, %v599_v63 }
 0x126   : > { %v763_v25 = vpop.f32.mrf.mxu0  ;;  %v904_v41 = vpop.f32.mrf.mxu1 }
 0x128   : > { %v2019_v42 = vpop.f32.mrf.mxu0  ;;  %v913_v43 = vpop.f32.mrf.mxu1 }
 0x129   : > { %v914_v0 = vadd.f32 %v913_v43, %v753_v22  ;;  %v771_v54 = vadd.f32 %v2019_v42, %v606_v12 }
 0x12a   : > { %v772_v29 = vpop.f32.mrf.mxu0  ;;  %v915_v44 = vpop.f32.mrf.mxu1 }
 0x12c   : > { %v2021_v48 = vpop.f32.mrf.mxu0  ;;  %v924_v49 = vpop.f32.mrf.mxu1 }
 0x12d   : > { %v925_v44 = vadd.f32 %v924_v49, %v762_v35 }
 0x12e   : > { %v781_v53 = vpop.f32.mrf.mxu0  ;;  %v926_v51 = vpop.f32.mrf.mxu1 }
 0x130   : > { %v2023_v10 = vpop.f32.mrf.mxu0  ;;  %v935_v15 = vpop.f32.mrf.mxu1 }
 0x131   : > { %v789_v46 = vadd.f32 %v2023_v10, %v620_v21 }
 0x132   : > { %v790_v5 = vpop.f32.mrf.mxu0  ;;  %v937_v11 = vpop.f32.mrf.mxu1 }
 0x133   : > { %v613_v11 = vadd.f32 %v2015_v38, %v2007_v34 }
 0x134   : > { %v2025_v3 = vpop.f32.mrf.mxu1  ;;  %v1077_v4 = vpop.f32.mrf.mxu0 }
 0x135   : > { %v1078_v33 = vadd.f32 %v1077_v4, %v881_v50  ;;  %v936_v4 = vadd.f32 %v935_v15, %v771_v54  ;;  %v780_v40 = vadd.f32 %v2021_v48, %v613_v11 }
 0x136   : > { %v948_v16 = vpop.f32.mrf.mxu1  ;;  %v1079_v18 = vpop.f32.mrf.mxu0 }
 0x138   : > { %v2027_v30 = vpop.f32.mrf.mxu1  ;;  %v1084_v31 = vpop.f32.mrf.mxu0 }
 0x139   : > { %v1085_v56 = vadd.f32 %v1084_v31, %v892_v52  ;;  %v947_v31 = vadd.f32 %v2025_v3, %v780_v40 }
 0x13a   : > { %v959_v58 = vpop.f32.mrf.mxu1  ;;  %v1086_v59 = vpop.f32.mrf.mxu0 }
 0x13b   : > { %v958_v58 = vadd.f32 %v2027_v30, %v789_v46 }
 0x13c   : > { %v1091_v37 = vpop.f32.mrf.mxu0  ;;  %v1214_v17 = vpop.f32.mrf.mxu1 }
 0x13d   : > { %v1215_v20 = vadd.f32 %v1214_v17, %v1078_v33  ;;  %v1092_v55 = vadd.f32 %v1091_v37, %v903_v47 }
 0x13e   : > { %v1093_v39 = vpop.f32.mrf.mxu0  ;;  %v1216_v28 = vpop.f32.mrf.mxu1 }
 0x13f   : > { %1268 = vst.msk [vmem:[%s2035_s23] sm:$0xff] %vm1267_vm1, %v1215_v20 }
 0x140   : > { %v1098_v14 = vpop.f32.mrf.mxu0  ;;  %v1221_v19 = vpop.f32.mrf.mxu1 }
 0x141   : > { %v1222_v60 = vadd.f32 %v1221_v19, %v1085_v56  ;;  %v1099_v62 = vadd.f32 %v1098_v14, %v914_v0 }
 0x142   : > { %v1100_v27 = vpop.f32.mrf.mxu0  ;;  %v1223_v7 = vpop.f32.mrf.mxu1 }
 0x143   : > { %1269 = vst.msk [vmem:[%s2035_s23 + $0x8] sm:$0xff] %vm1267_vm1, %v1222_v60 }
 0x144   : > { %v1105_v8 = vpop.f32.mrf.mxu0  ;;  %v1228_v13 = vpop.f32.mrf.mxu1 }
 0x145   : > { %v1229_v1 = vadd.f32 %v1228_v13, %v1092_v55  ;;  %v1106_v36 = vadd.f32 %v1105_v8, %v925_v44 }
 0x146   : > { %v1107_v25 = vpop.f32.mrf.mxu0  ;;  %v1230_v41 = vpop.f32.mrf.mxu1 }
 0x147   : > { %1270 = vst.msk [vmem:[%s2035_s23 + $0x10] sm:$0xff] %vm1267_vm1, %v1229_v1 }
 0x148   : > { %v1112_v6 = vpop.f32.mrf.mxu0  ;;  %v1235_v29 = vpop.f32.mrf.mxu1 }
 0x149   : > { %v1236_v53 = vadd.f32 %v1235_v29, %v1099_v62  ;;  %v1113_v49 = vadd.f32 %v1112_v6, %v936_v4 }
 0x14a   : > { %v1114_v51 = vpop.f32.mrf.mxu0  ;;  %v1237_v5 = vpop.f32.mrf.mxu1 }
 0x14b   : > { %1271 = vst.msk [vmem:[%s2035_s23 + $0x18] sm:$0xff] %vm1267_vm1, %v1236_v53 }
 0x14c   : > { %v1119_v43 = vpop.f32.mrf.mxu0  ;;  %v1242_v2 = vpop.f32.mrf.mxu1 }
 0x14d   : > { %v1243_v9 = vadd.f32 %v1242_v2, %v1106_v36  ;;  %v1120_v50 = vadd.f32 %v1119_v43, %v947_v31 }
 0x14e   : > { %v1121_v16 = vpop.f32.mrf.mxu0  ;;  %v1244_v61 = vpop.f32.mrf.mxu1 }
 0x14f   : > { %1272 = vst.msk [vmem:[%s2035_s23 + $0x20] sm:$0xff] %vm1267_vm1, %v1243_v9 }
 0x150   : > { %v1126_v42 = vpop.f32.mrf.mxu0  ;;  %v1249_v18 = vpop.f32.mrf.mxu1 }
 0x151   : > { %v1250_v34 = vadd.f32 %v1249_v18, %v1113_v49  ;;  %v1127_v33 = vadd.f32 %v1126_v42, %v958_v58 }
 0x152   : > { %v1251_v38 = vpop.f32.mrf.mxu1  ;;  %v1128_v15 = vpop.f32.mrf.mxu0 }
 0x153   : > { %1273 = vst.msk [vmem:[%s2035_s23 + $0x28] sm:$0xff] %vm1267_vm1, %v1250_v34 }
 0x154   : > { %v1256_v48 = vpop.f32.mrf.mxu1 }
 0x155   : > { %v1257_v59 = vadd.f32 %v1256_v48, %v1120_v50 }
 0x156   : > { %v1258_v32 = vpop.f32.mrf.mxu1 }
 0x157   : > { %1274 = vst.msk [vmem:[%s2035_s23 + $0x30] sm:$0xff] %vm1267_vm1, %v1257_v59 }
 0x158   : > { %v1263_v57 = vpop.f32.mrf.mxu1 }
 0x159   : > { %v1264_v23 = vadd.f32 %v1263_v57, %v1127_v33 }
 0x15a   : > { %v1265_v3 = vpop.f32.mrf.mxu1 }
 0x15b   : > { %1275 = vst.msk [vmem:[%s2035_s23 + $0x38] sm:$0xff] %vm1267_vm1, %v1264_v23 }
 0x15c PF: > { %s13_s11 = sadd.s32 1, %s1513_s11   ;;  %s2137_s9 = smov %s1509_s10 }
 0x15d   : > { %p10_p5 = scmp.ge.s32.totalorder %s13_s11, 6   ;;  %s2138_s10 = smov %s2140_s12 }
 0x15f   :  { %12 = sbr.rel (!%p10_p5) target bundleno = 2 (0x2), region = 66 }

// kernel: ms_cam_forward.6
= control target key start
LH: loop header
LB: loop body
LE: loop exit
PB: predicated region body
PF: predicated region fallthrough
CT: control target
= control target key end

     0   :  { %v1574_v0 = vmov 0.0   ;;  %vm48_vm0 = vcmask 523264   ;;  %vm1575_vm1 = vmmov 0   ;;  %vm589_vm2 = vcmask 519168   ;;  %s2086_s1 = inlined_call_operand.vmem [shape: f32[64,64], index: 1, kind: input, shape index: {}]   ;;  %s2087_s0 = inlined_call_operand.vmem [shape: f32[4,64], index: 0, kind: input, shape index: {}]   ;;  %s2088_s5 = inlined_call_operand.vmem [shape: f32[64,64], index: 5, kind: input, shape index: {}]   ;;  %s2089_s2 = inlined_call_operand.vmem [shape: f32[1,64], index: 2, kind: input, shape index: {}]   ;;  %s2090_s3 = inlined_call_operand.vmem [shape: f32[1,64], index: 3, kind: input, shape index: {}]   ;;  %s2091_s4 = inlined_call_operand.vmem [shape: f32[1,64], index: 4, kind: input, shape index: {}]   ;;  %s2092_s6 = inlined_call_operand.vmem [shape: f32[1,64], index: 6, kind: input, shape index: {}]   ;;  %s2093_s7 = inlined_call_operand.vmem [shape: f32[1,64], index: 7, kind: input, shape index: {}]   ;;  %s2094_s8 = inlined_call_operand.vmem [shape: f32[1,64], index: 8, kind: input, shape index: {}]   ;;  %s2095_s9 = inlined_call_operand.vmem [shape: f32[4,64], index: 9, kind: output, shape index: {}]  }
   0x1   :  { %1340 = vmatprep.subr.mxu0 %v1574_v0  ;;  %v40_v1 = vld [vmem:[%s2086_s1 + $0x38] sm:$0xff]  ;;  %v39_v2 = vld [vmem:[%s2086_s1 + $0x30] sm:$0xff]  ;;  %v38_v3 = vld [vmem:[%s2086_s1 + $0x28] sm:$0xff]  ;;  %1359 = vmatprep.subr.mxu1 %v1574_v0 }
   0x2   :  { %v1637_v4 = vand.u32 4294901760, %v40_v1  ;;  %v1639_v5 = vand.u32 4294901760, %v39_v2  ;;  %v1641_v6 = vand.u32 4294901760, %v38_v3  ;;  %v37_v7 = vld [vmem:[%s2086_s1 + $0x20] sm:$0xff]  ;;  %v36_v8 = vld [vmem:[%s2086_s1 + $0x18] sm:$0xff]  ;;  %v35_v9 = vld [vmem:[%s2086_s1 + $0x10] sm:$0xff]  ;;  %1356 = vmatprep.mubr.msk.f32.mxu0 %vm1575_vm1, %v1574_v0  ;;  %1375 = vmatprep.mubr.msk.f32.mxu1 %vm1575_vm1, %v1574_v0 }
   0x3   :  { %v1656_v10 = vand.u32 4294901760, %v37_v7  ;;  %v1658_v11 = vand.u32 4294901760, %v36_v8  ;;  %v1660_v12 = vand.u32 4294901760, %v35_v9  ;;  %v34_v13 = vld [vmem:[%s2086_s1 + $0x8] sm:$0xff]  ;;  %v33_v14 = vld [vmem:[%s2086_s1] sm:$0xff]  ;;  %v636_v56 = vld [vmem:[%s2088_s5 + $0x38] sm:$0xff] }
   0x4   :  { %1341 = vmatpush3.msra.mxu0 %v1637_v4  ;;  %v1670_v15 = vsub.f32 %v40_v1, %v1637_v4  ;;  %v1673_v16 = vsub.f32 %v39_v2, %v1639_v5  ;;  %v1675_v17 = vand.u32 4294901760, %v34_v13  ;;  %v1678_v18 = vsub.f32 %v38_v3, %v1641_v6  ;;  %v32_v19 = vld [vmem:[%s2087_s0] sm:$0xf]  ;;  %v635_v58 = vld [vmem:[%s2088_s5 + $0x30] sm:$0xff]  ;;  %v634_v61 = vld [vmem:[%s2088_s5 + $0x28] sm:$0xff] }
   0x5   :  { %1342 = vmatprep.subr.mxu0 %v1574_v0  ;;  %v1684_v20 = vand.u32 4294901760, %v33_v14  ;;  %v1687_v21 = vsub.f32 %v37_v7, %v1656_v10  ;;  %v50_v22 = vsel %vm48_vm0, %v32_v19, 0  ;;  %v1691_v23 = vsub.f32 %v36_v8, %v1658_v11  ;;  %v633_v2 = vld [vmem:[%s2088_s5 + $0x20] sm:$0xff]  ;;  %v632_v7 = vld [vmem:[%s2088_s5 + $0x18] sm:$0xff]  ;;  %v630_v19 = vld [vmem:[%s2088_s5 + $0x8] sm:$0xff] }
   0x6   :  { %1343 = vmatpush3.msra.mxu0 %v1639_v5  ;;  %v154_v24 = vand.u32 4294901760, %v1670_v15  ;;  %v161_v25 = vand.u32 4294901760, %v1673_v16  ;;  %v168_v26 = vand.u32 4294901760, %v1678_v18  ;;  %v1697_v27 = vand.u32 4294901760, %v50_v22 }
   0x7   :  { %1344 = vmatprep.subr.mxu0 %v1574_v0  ;;  %v175_v28 = vand.u32 4294901760, %v1687_v21  ;;  %v182_v29 = vand.u32 4294901760, %v1691_v23  ;;  %v1703_v30 = vsub.f32 %v35_v9, %v1660_v12  ;;  %v1706_v31 = vsub.f32 %v34_v13, %v1675_v17  ;;  %v631_v13 = vld [vmem:[%s2088_s5 + $0x10] sm:$0xff] }
   0x8   :  { %1345 = vmatpush3.msra.mxu0 %v1641_v6  ;;  %v155_v32 = vsub.f32 %v1670_v15, %v154_v24  ;;  %v162_v33 = vsub.f32 %v1673_v16, %v161_v25  ;;  %v169_v34 = vsub.f32 %v1678_v18, %v168_v26  ;;  %v1719_v35 = vsub.f32 %v50_v22, %v1697_v27 }
   0x9   :  { %1346 = vmatprep.subr.mxu0 %v1574_v0  ;;  %v176_v36 = vsub.f32 %v1687_v21, %v175_v28  ;;  %v189_v40 = vand.u32 4294901760, %v1703_v30  ;;  %v183_v41 = vsub.f32 %v1691_v23, %v182_v29  ;;  %v196_v44 = vand.u32 4294901760, %v1706_v31 }
   0xa   :  { %1347 = vmatpush3.msra.mxu0 %v1656_v10  ;;  %v156_v37 = vand.u32 4294901760, %v155_v32  ;;  %v163_v38 = vand.u32 4294901760, %v162_v33  ;;  %v127_v39 = vand.u32 4294901760, %v1719_v35  ;;  %v170_v42 = vand.u32 4294901760, %v169_v34 }
   0xb   :  { %1348 = vmatprep.subr.mxu0 %v1574_v0  ;;  %v1738_v45 = vsub.f32 %v33_v14, %v1684_v20  ;;  %v177_v46 = vand.u32 4294901760, %v176_v36  ;;  %v190_v47 = vsub.f32 %v1703_v30, %v189_v40  ;;  %v184_v50 = vand.u32 4294901760, %v183_v41 }
   0xc   :  { %1349 = vmatpush3.msra.mxu0 %v1658_v11  ;;  %1360 = vmatpush3.msra.mxu1 %v156_v37  ;;  %v128_v43 = vsub.f32 %v1719_v35, %v127_v39  ;;  %v197_v51 = vsub.f32 %v1706_v31, %v196_v44  ;;  %v1858_v57 = vand.u32 4294901760, %v636_v56  ;;  %v1866_v60 = vand.u32 4294901760, %v635_v58 }
   0xd   :  { %1350 = vmatprep.subr.mxu0 %v1574_v0  ;;  %1361 = vmatprep.subr.mxu1 %v1574_v0  ;;  %v203_v48 = vand.u32 4294901760, %v1738_v45  ;;  %v191_v52 = vand.u32 4294901760, %v190_v47  ;;  %v1877_v1 = vand.u32 4294901760, %v634_v61 }
   0xe   :  { %1351 = vmatpush3.msra.mxu0 %v1660_v12  ;;  %1362 = vmatpush3.msra.mxu1 %v163_v38  ;;  %v129_v49 = vand.u32 4294901760, %v128_v43  ;;  %v198_v54 = vand.u32 4294901760, %v197_v51  ;;  %v1864_v59 = vsub.f32 %v636_v56, %v1858_v57  ;;  %v1875_v63 = vsub.f32 %v635_v58, %v1866_v60 }
   0xf   :  { %1352 = vmatprep.subr.mxu0 %v1574_v0  ;;  %1363 = vmatprep.subr.mxu1 %v1574_v0  ;;  %v204_v53 = vsub.f32 %v1738_v45, %v203_v48 }
  0x10   :  { %1353 = vmatpush3.msra.mxu0 %v1675_v17  ;;  %1364 = vmatpush3.msra.mxu1 %v170_v42  ;;  %v749_v62 = vand.u32 4294901760, %v1864_v59 }
  0x11   :  { %1354 = vmatprep.subr.mxu0 %v1574_v0  ;;  %1365 = vmatprep.subr.mxu1 %v1574_v0  ;;  %v205_v55 = vand.u32 4294901760, %v204_v53 }
  0x12   :  { %1355 = vmatpush3.msra.mxu0 %v1684_v20  ;;  %1366 = vmatpush3.msra.mxu1 %v177_v46  ;;  %v750_v3 = vsub.f32 %v1864_v59, %v749_v62 }
  0x13   :  { %1367 = vmatprep.subr.mxu1 %v1574_v0  ;;  %1378 = vmatprep.subr.mxu0 %v1574_v0 }
  0x14   :  { %1357 = vmatmul.mubr.f32.vlgmr.msra.gmra.mxu0 %v129_v49  ;;  %1368 = vmatpush3.msra.mxu1 %v184_v50  ;;  %v751_v8 = vand.u32 4294901760, %v750_v3  ;;  %v1226_v49 = vld [vmem:[%s2089_s2] ss:$0 sm:$0xff] }
  0x15   :  { %1379 = vmatpush3.msra.mxu0 %v1670_v15  ;;  %1369 = vmatprep.subr.mxu1 %v1574_v0 }
  0x16   :  { %1380 = vmatprep.subr.mxu0 %v1574_v0  ;;  %1370 = vmatpush3.msra.mxu1 %v191_v52 }
  0x17   :  { %1381 = vmatpush3.msra.mxu0 %v1673_v16  ;;  %1371 = vmatprep.subr.mxu1 %v1574_v0 }
  0x18   :  { %1382 = vmatprep.subr.mxu0 %v1574_v0  ;;  %1372 = vmatpush3.msra.mxu1 %v198_v54 }
  0x19   :  { %1383 = vmatpush3.msra.mxu0 %v1678_v18  ;;  %1373 = vmatprep.subr.mxu1 %v1574_v0 }
  0x1a   :  { %1384 = vmatprep.subr.mxu0 %v1574_v0  ;;  %1374 = vmatpush3.msra.mxu1 %v205_v55 }
  0x1b   :  { %1385 = vmatpush3.msra.mxu0 %v1687_v21  ;;  %1376 = vmatmul.mubr.f32.vlgmr.msra.gmra.mxu1 %v1697_v27 }
  0x1c   :  { %1386 = vmatprep.subr.mxu0 %v1574_v0  ;;  %1397 = vmatprep.subr.mxu1 %v1574_v0 }
  0x1d   :  { %1387 = vmatpush3.msra.mxu0 %v1691_v23  ;;  %1398 = vmatpush3.msra.mxu1 %v1637_v4  ;;  %v1932_v23 = vand.u32 4294901760, %v630_v19 }
  0x1e   :  { %1388 = vmatprep.subr.mxu0 %v1574_v0  ;;  %1399 = vmatprep.subr.mxu1 %v1574_v0 }
  0x1f   :  { %1389 = vmatpush3.msra.mxu0 %v1703_v30  ;;  %1400 = vmatpush3.msra.mxu1 %v1639_v5 }
  0x20   :  { %1390 = vmatprep.subr.mxu0 %v1574_v0  ;;  %1401 = vmatprep.subr.mxu1 %v1574_v0 }
  0x21   :  { %1391 = vmatpush3.msra.mxu0 %v1706_v31  ;;  %1402 = vmatpush3.msra.mxu1 %v1641_v6 }
  0x22   :  { %1392 = vmatprep.subr.mxu0 %v1574_v0  ;;  %1403 = vmatprep.subr.mxu1 %v1574_v0 }
  0x23   :  { %1393 = vmatpush3.msra.mxu0 %v1738_v45  ;;  %1394 = vmatprep.mubr.msk.f32.mxu0 %vm1575_vm1, %v1574_v0 }
  0x24   :  { %1404 = vmatpush3.msra.mxu1 %v1656_v10  ;;  %1395 = vmatmul.mubr.f32.vlgmr.msra.gmra.mxu0 %v1719_v35 }
  0x25   :  { %1405 = vmatprep.subr.mxu1 %v1574_v0  ;;  %1416 = vmatprep.subr.mxu0 %v1574_v0 }
  0x26   :  { %1406 = vmatpush3.msra.mxu1 %v1658_v11  ;;  %1417 = vmatpush3.msra.mxu0 %v154_v24 }
  0x27   :  { %1407 = vmatprep.subr.mxu1 %v1574_v0  ;;  %1418 = vmatprep.subr.mxu0 %v1574_v0 }
  0x28   :  { %1408 = vmatpush3.msra.mxu1 %v1660_v12  ;;  %1419 = vmatpush3.msra.mxu0 %v161_v25  ;;  %v629_v25 = vld [vmem:[%s2088_s5] sm:$0xff] }
  0x29   :  { %1409 = vmatprep.subr.mxu1 %v1574_v0  ;;  %1420 = vmatprep.subr.mxu0 %v1574_v0 }
  0x2a   :  { %1410 = vmatpush3.msra.mxu1 %v1675_v17  ;;  %1421 = vmatpush3.msra.mxu0 %v168_v26 }
  0x2b   :  { %1411 = vmatprep.subr.mxu1 %v1574_v0  ;;  %1422 = vmatprep.subr.mxu0 %v1574_v0 }
  0x2c   :  { %1412 = vmatpush3.msra.mxu1 %v1684_v20  ;;  %1413 = vmatprep.mubr.msk.f32.mxu1 %vm1575_vm1, %v1574_v0 }
  0x2d   :  { %1423 = vmatpush3.msra.mxu0 %v175_v28  ;;  %1414 = vmatmul.mubr.f32.vlgmr.msra.gmra.mxu1 %v127_v39  ;;  %v1943_v28 = vsub.f32 %v630_v19, %v1932_v23 }
  0x2e   :  { %1424 = vmatprep.subr.mxu0 %v1574_v0  ;;  %1435 = vmatprep.subr.mxu1 %v1574_v0 }
  0x2f   :  { %1425 = vmatpush3.msra.mxu0 %v182_v29  ;;  %1436 = vmatpush3.msra.mxu1 %v1637_v4  ;;  %v756_v4 = vand.u32 4294901760, %v1875_v63  ;;  %v1945_v29 = vand.u32 4294901760, %v629_v25  ;;  %v791_v32 = vand.u32 4294901760, %v1943_v28 }
  0x30   :  { %1426 = vmatprep.subr.mxu0 %v1574_v0  ;;  %1437 = vmatprep.subr.mxu1 %v1574_v0 }
  0x31   :  { %1427 = vmatpush3.msra.mxu0 %v189_v40  ;;  %1438 = vmatpush3.msra.mxu1 %v1639_v5  ;;  %v1889_v5 = vsub.f32 %v634_v61, %v1877_v1  ;;  %v757_v9 = vsub.f32 %v1875_v63, %v756_v4  ;;  %v1958_v33 = vsub.f32 %v629_v25, %v1945_v29 }
  0x32   :  { %1428 = vmatprep.subr.mxu0 %v1574_v0  ;;  %1439 = vmatprep.subr.mxu1 %v1574_v0  ;;  %v792_v36 = vsub.f32 %v1943_v28, %v791_v32 }
  0x33   :  { %1429 = vmatpush3.msra.mxu0 %v196_v44  ;;  %1440 = vmatpush3.msra.mxu1 %v1641_v6  ;;  %v1891_v6 = vand.u32 4294901760, %v633_v2  ;;  %v758_v14 = vand.u32 4294901760, %v757_v9  ;;  %v798_v37 = vand.u32 4294901760, %v1958_v33 }
  0x34   :  { %1430 = vmatprep.subr.mxu0 %v1574_v0  ;;  %1441 = vmatprep.subr.mxu1 %v1574_v0  ;;  %v793_v38 = vand.u32 4294901760, %v792_v36 }
  0x35   :  { %1431 = vmatpush3.msra.mxu0 %v203_v48  ;;  %1432 = vmatprep.mubr.msk.f32.mxu0 %vm1575_vm1, %v1574_v0  ;;  %v799_v39 = vsub.f32 %v1958_v33, %v798_v37 }
  0x36   :  { %1442 = vmatpush3.msra.mxu1 %v1656_v10  ;;  %1433 = vmatmul.mubr.f32.vlgmr.msra.gmra.mxu0 %v1697_v27  ;;  %v763_v10 = vand.u32 4294901760, %v1889_v5 }
  0x37   :  { %1443 = vmatprep.subr.mxu1 %v1574_v0  ;;  %1451 = vmatprep.mubr.msk.f32.mxu1 %vm1575_vm1, %v1574_v0  ;;  %v800_v40 = vand.u32 4294901760, %v799_v39 }
  0x38   :  { %1444 = vmatpush3.msra.mxu1 %v1658_v11  ;;  %1454 = vmatprep.subr.mxu0 %v1574_v0  ;;  %v1903_v11 = vsub.f32 %v633_v2, %v1891_v6  ;;  %v764_v15 = vsub.f32 %v1889_v5, %v763_v10 }
  0x39   :  { %1445 = vmatprep.subr.mxu1 %v1574_v0  ;;  %1470 = vmatprep.mubr.msk.f32.mxu0 %vm1575_vm1, %v1574_v0 }
  0x3a   :  { %1446 = vmatpush3.msra.mxu1 %v1660_v12  ;;  %1455 = vmatpush3.msra.mxu0 %v1858_v57  ;;  %v1906_v12 = vand.u32 4294901760, %v632_v7  ;;  %v770_v16 = vand.u32 4294901760, %v1903_v11 }
  0x3b   :  { %1447 = vmatprep.subr.mxu1 %v1574_v0  ;;  %1456 = vmatprep.subr.mxu0 %v1574_v0 }
  0x3c   :  { %1448 = vmatpush3.msra.mxu1 %v1675_v17  ;;  %1457 = vmatpush3.msra.mxu0 %v1866_v60  ;;  %v1916_v17 = vand.u32 4294901760, %v631_v13  ;;  %v1920_v18 = vsub.f32 %v632_v7, %v1906_v12  ;;  %v771_v21 = vsub.f32 %v1903_v11, %v770_v16 }
  0x3d   :  { %1449 = vmatprep.subr.mxu1 %v1574_v0  ;;  %1458 = vmatprep.subr.mxu0 %v1574_v0 }
  0x3e   :  { %1450 = vmatpush3.msra.mxu1 %v1684_v20  ;;  %1459 = vmatpush3.msra.mxu0 %v1877_v1  ;;  %v765_v20 = vand.u32 4294901760, %v764_v15  ;;  %v1930_v22 = vsub.f32 %v631_v13, %v1916_v17  ;;  %v777_v24 = vand.u32 4294901760, %v1920_v18  ;;  %v772_v26 = vand.u32 4294901760, %v771_v21 }
  0x3f   :  { %1452 = vmatmul.mubr.f32.vlgmr.msra.gmra.mxu1 %v1697_v27  ;;  %1473 = vmatprep.subr.mxu1 %v1574_v0 }
  0x40   :  { %1489 = vmatprep.mubr.msk.f32.mxu1 %vm1575_vm1, %v1574_v0  ;;  %1460 = vmatprep.subr.mxu0 %v1574_v0  ;;  %v784_v27 = vand.u32 4294901760, %v1930_v22  ;;  %v778_v30 = vsub.f32 %v1920_v18, %v777_v24 }
  0x41   :  { %1461 = vmatpush3.msra.mxu0 %v1891_v6  ;;  %1474 = vmatpush3.msra.mxu1 %v751_v8 }
  0x42   :  { %1462 = vmatprep.subr.mxu0 %v1574_v0  ;;  %1475 = vmatprep.subr.mxu1 %v1574_v0  ;;  %v785_v31 = vsub.f32 %v1930_v22, %v784_v27  ;;  %v779_v34 = vand.u32 4294901760, %v778_v30 }
  0x43   :  { %1463 = vmatpush3.msra.mxu0 %v1906_v12  ;;  %1476 = vmatpush3.msra.mxu1 %v758_v14 }
  0x44   :  { %1464 = vmatprep.subr.mxu0 %v1574_v0  ;;  %1477 = vmatprep.subr.mxu1 %v1574_v0  ;;  %v786_v35 = vand.u32 4294901760, %v785_v31 }
  0x45   :  { %1465 = vmatpush3.msra.mxu0 %v1916_v17  ;;  %1478 = vmatpush3.msra.mxu1 %v765_v20 }
  0x46   :  { %1466 = vmatprep.subr.mxu0 %v1574_v0  ;;  %1479 = vmatprep.subr.mxu1 %v1574_v0 }
  0x47   :  { %1467 = vmatpush3.msra.mxu0 %v1932_v23  ;;  %1480 = vmatpush3.msra.mxu1 %v772_v26 }
  0x48   :  { %1468 = vmatprep.subr.mxu0 %v1574_v0  ;;  %1481 = vmatprep.subr.mxu1 %v1574_v0 }
  0x49   :  { %1469 = vmatpush3.msra.mxu0 %v1945_v29  ;;  %1482 = vmatpush3.msra.mxu1 %v779_v34 }
  0x4a   :  { %1492 = vmatprep.subr.mxu0 %v1574_v0  ;;  %1483 = vmatprep.subr.mxu1 %v1574_v0 }
  0x4b   :  { %1484 = vmatpush3.msra.mxu1 %v786_v35 }
  0x4c   :  { %1485 = vmatprep.subr.mxu1 %v1574_v0 }
  0x4d   :  { %1486 = vmatpush3.msra.mxu1 %v793_v38 }
  0x4e   :  { %1487 = vmatprep.subr.mxu1 %v1574_v0 }
  0x4f   :  { %1488 = vmatpush3.msra.mxu1 %v800_v40 }
  0x50   :  { %1511 = vmatprep.subr.mxu1 %v1574_v0 }
  0xd4   :  { %v131_v41 = vpop.f32.mrf.mxu0 }
  0xd5   :  { %v132_v50 = vadd.f32 %v1226_v49, %v131_v41  ;;  %v1227_v41 = vld [vmem:[%s2090_s3] ss:$0 sm:$0xff] }
  0xd6   :  { %v1358_v42 = vpop.f32.mrf.mxu0 }
  0xdb   :  { %v242_v43 = vpop.f32.mrf.mxu1 }
  0xdc   :  { %v243_v52 = vadd.f32 %v242_v43, %v132_v50  ;;  %v1228_v43 = vld [vmem:[%s2091_s4] ss:$0 sm:$0xff] }
  0xdd   :  { %v1377_v44 = vpop.f32.mrf.mxu1 }
  0xe4   :  { %v330_v45 = vpop.f32.mrf.mxu0 }
  0xe5   :  { %v331_v54 = vadd.f32 %v330_v45, %v243_v52 }
  0xe6   :  { %v1396_v46 = vpop.f32.mrf.mxu0 }
  0xed   :  { %v411_v47 = vpop.f32.mrf.mxu1 }
  0xee   :  { %v412_v55 = vadd.f32 %v411_v47, %v331_v54 }
  0xef   :  { %v1415_v48 = vpop.f32.mrf.mxu1 }
  0xf6   :  { %v506_v51 = vpop.f32.mrf.mxu0 }
  0xf7   :  { %v507_v56 = vadd.f32 %v506_v51, %v412_v55 }
  0xf8   :  { %v1434_v53 = vpop.f32.mrf.mxu0 }
  0xff   :  { %v585_v58 = vpop.f32.mrf.mxu1 }
 0x100   :  { %v586_v61 = vadd.f32 %v585_v58, %v507_v56 }
 0x101   :  { %v1453_v2 = vpop.f32.mrf.mxu1 }
 0x102   :  { %v590_v3 = vsel %vm589_vm2, %v586_v61, 0.0 }
 0x103   :  { %v591_v7 = vrot.slane %v590_v3, 4 }
 0x105   :  { %v592_v8 = vadd.f32 %v591_v7, %v590_v3 }
 0x107   :  { %v593_v9 = vrot.slane %v592_v8, 2 }
 0x109   :  { %v594_v13 = vadd.f32 %v593_v9, %v592_v8 }
 0x10b   :  { %v595_v14 = vrot.slane %v594_v13, 1 }
 0x10d   :  { %v596_v15 = vadd.f32 %v595_v14, %v594_v13 }
 0x10f   :  { %v598_v19 = vmul.f32 0.25, %v596_v15 }
 0x111   :  { %v599_v20 = vsub.f32 %v586_v61, %v598_v19  ;;  %v1230_v19 = vld [vmem:[%s2093_s7] ss:$0 sm:$0xff] }
 0x113   :  { %v600_v21 = vmul.f32 %v599_v20, %v599_v20 }
 0x115   :  { %v601_v25 = vsel %vm589_vm2, %v600_v21, 0.0  ;;  %v1231_v21 = vld [vmem:[%s2094_s8] ss:$0 sm:$0xff] }
 0x116   :  { %v602_v26 = vrot.slane %v601_v25, 4 }
 0x118   :  { %v603_v30 = vadd.f32 %v602_v26, %v601_v25 }
 0x11a   :  { %v604_v31 = vrot.slane %v603_v30, 2 }
 0x11c   :  { %v605_v34 = vadd.f32 %v604_v31, %v603_v30 }
 0x11e   :  { %v606_v35 = vrot.slane %v605_v34, 1 }
 0x120   :  { %v607_v36 = vadd.f32 %v606_v35, %v605_v34 }
 0x122   :  { %v608_v38 = vmul.f32 0.25, %v607_v36 }
 0x124   :  { %v609_v39 = vadd.f32 1e-05, %v608_v38 }
 0x126   :  { %1570 = vrsqrt.f32 %v609_v39 }
 0x133   :  { %v1571_v40 = vpop.eup %1570 }
 0x134   :  { %v611_v42 = vmul.f32 %v1571_v40, %v599_v20 }
 0x136   :  { %v619_v44 = vmul.f32 %v1227_v41, %v611_v42 }
 0x138   :  { %v627_v45 = vadd.f32 %v1228_v43, %v619_v44 }
 0x13a   :  { %v628_v46 = vmax.f32 %v627_v45, 0.0 }
 0x13c   :  { %v645_v47 = vsel %vm48_vm0, %v628_v46, 0 }
 0x13d   :  { %v1987_v48 = vand.u32 4294901760, %v645_v47 }
 0x13f   :  { %v721_v49 = vsub.f32 %v645_v47, %v1987_v48  ;;  %1490 = vmatmul.mubr.f32.vlgmr.msra.gmra.mxu1 %v1987_v48 }
 0x140   :  { %1512 = vmatpush3.msra.mxu1 %v1858_v57  ;;  %1527 = vmatprep.mubr.msk.f32.mxu1 %vm1575_vm1, %v1574_v0 }
 0x141   :  { %1513 = vmatprep.subr.mxu1 %v1574_v0  ;;  %v722_v50 = vand.u32 4294901760, %v721_v49 }
 0x142   :  { %1514 = vmatpush3.msra.mxu1 %v1866_v60 }
 0x143   :  { %1515 = vmatprep.subr.mxu1 %v1574_v0  ;;  %v723_v51 = vsub.f32 %v721_v49, %v722_v50 }
 0x144   :  { %1516 = vmatpush3.msra.mxu1 %v1877_v1 }
 0x145   :  { %1517 = vmatprep.subr.mxu1 %v1574_v0  ;;  %v724_v52 = vand.u32 4294901760, %v723_v51 }
 0x146   :  { %1518 = vmatpush3.msra.mxu1 %v1891_v6 }
 0x147   :  { %1519 = vmatprep.subr.mxu1 %v1574_v0  ;;  %1471 = vmatmul.mubr.f32.vlgmr.msra.gmra.mxu0 %v724_v52 }
 0x148   :  { %1493 = vmatpush3.msra.mxu0 %v1864_v59  ;;  %1520 = vmatpush3.msra.mxu1 %v1906_v12 }
 0x149   :  { %1494 = vmatprep.subr.mxu0 %v1574_v0  ;;  %1521 = vmatprep.subr.mxu1 %v1574_v0 }
 0x14a   :  { %1495 = vmatpush3.msra.mxu0 %v1875_v63  ;;  %1522 = vmatpush3.msra.mxu1 %v1916_v17 }
 0x14b   :  { %1496 = vmatprep.subr.mxu0 %v1574_v0  ;;  %1523 = vmatprep.subr.mxu1 %v1574_v0 }
 0x14c   :  { %1497 = vmatpush3.msra.mxu0 %v1889_v5  ;;  %1524 = vmatpush3.msra.mxu1 %v1932_v23 }
 0x14d   :  { %1498 = vmatprep.subr.mxu0 %v1574_v0  ;;  %1525 = vmatprep.subr.mxu1 %v1574_v0 }
 0x14e   :  { %1499 = vmatpush3.msra.mxu0 %v1903_v11  ;;  %1526 = vmatpush3.msra.mxu1 %v1945_v29 }
 0x14f   :  { %1500 = vmatprep.subr.mxu0 %v1574_v0  ;;  %1528 = vmatmul.mubr.f32.vlgmr.msra.gmra.mxu1 %v722_v50 }
 0x150   :  { %1549 = vmatprep.subr.mxu1 %v1574_v0  ;;  %1501 = vmatpush3.msra.mxu0 %v1920_v18 }
 0x151   :  { %1550 = vmatpush3.msra.mxu1 %v1858_v57  ;;  %1502 = vmatprep.subr.mxu0 %v1574_v0 }
 0x152   :  { %1551 = vmatprep.subr.mxu1 %v1574_v0  ;;  %1503 = vmatpush3.msra.mxu0 %v1930_v22 }
 0x153   :  { %1552 = vmatpush3.msra.mxu1 %v1866_v60  ;;  %1504 = vmatprep.subr.mxu0 %v1574_v0 }
 0x154   :  { %1553 = vmatprep.subr.mxu1 %v1574_v0  ;;  %1505 = vmatpush3.msra.mxu0 %v1943_v28 }
 0x155   :  { %1554 = vmatpush3.msra.mxu1 %v1877_v1  ;;  %1506 = vmatprep.subr.mxu0 %v1574_v0 }
 0x156   :  { %1555 = vmatprep.subr.mxu1 %v1574_v0  ;;  %1507 = vmatpush3.msra.mxu0 %v1958_v33 }
 0x157   :  { %1508 = vmatprep.mubr.msk.f32.mxu0 %vm1575_vm1, %v1574_v0  ;;  %1556 = vmatpush3.msra.mxu1 %v1891_v6  ;;  %v1229_v6 = vld [vmem:[%s2092_s6] ss:$0 sm:$0xff] }
 0x158   :  { %1509 = vmatmul.mubr.f32.vlgmr.msra.gmra.mxu0 %v721_v49  ;;  %1530 = vmatprep.subr.mxu0 %v1574_v0 }
 0x159   :  { %1557 = vmatprep.subr.mxu1 %v1574_v0  ;;  %1531 = vmatpush3.msra.mxu0 %v749_v62 }
 0x15a   :  { %1558 = vmatpush3.msra.mxu1 %v1906_v12  ;;  %1532 = vmatprep.subr.mxu0 %v1574_v0 }
 0x15b   :  { %1559 = vmatprep.subr.mxu1 %v1574_v0  ;;  %1533 = vmatpush3.msra.mxu0 %v756_v4 }
 0x15c   :  { %1560 = vmatpush3.msra.mxu1 %v1916_v17  ;;  %1534 = vmatprep.subr.mxu0 %v1574_v0 }
 0x15d   :  { %1561 = vmatprep.subr.mxu1 %v1574_v0  ;;  %1535 = vmatpush3.msra.mxu0 %v763_v10 }
 0x15e   :  { %1562 = vmatpush3.msra.mxu1 %v1932_v23  ;;  %1536 = vmatprep.subr.mxu0 %v1574_v0 }
 0x15f   :  { %1563 = vmatprep.subr.mxu1 %v1574_v0  ;;  %1537 = vmatpush3.msra.mxu0 %v770_v16 }
 0x160   :  { %1564 = vmatpush3.msra.mxu1 %v1945_v29  ;;  %1565 = vmatprep.mubr.msk.f32.mxu1 %vm1575_vm1, %v1574_v0 }
 0x161   :  { %1538 = vmatprep.subr.mxu0 %v1574_v0  ;;  %1566 = vmatmul.mubr.f32.vlgmr.msra.gmra.mxu1 %v1987_v48 }
 0x162   :  { %1539 = vmatpush3.msra.mxu0 %v777_v24  ;;  %1546 = vmatprep.mubr.msk.f32.mxu0 %vm1575_vm1, %v1574_v0 }
 0x163   :  { %1540 = vmatprep.subr.mxu0 %v1574_v0 }
 0x164   :  { %1541 = vmatpush3.msra.mxu0 %v784_v27 }
 0x165   :  { %1542 = vmatprep.subr.mxu0 %v1574_v0 }
 0x166   :  { %1543 = vmatpush3.msra.mxu0 %v791_v32 }
 0x167   :  { %1544 = vmatprep.subr.mxu0 %v1574_v0 }
 0x168   :  { %1545 = vmatpush3.msra.mxu0 %v798_v37 }
 0x169   :  { %1547 = vmatmul.mubr.f32.vlgmr.msra.gmra.mxu0 %v1987_v48 }
 0x1ff   :  { %v837_v57 = vpop.f32.mrf.mxu1 }
 0x201   :  { %v1491_v59 = vpop.f32.mrf.mxu1 }
 0x207   :  { %v726_v60 = vpop.f32.mrf.mxu0 }
 0x208   :  { %v727_v10 = vadd.f32 %v1229_v6, %v726_v60 }
 0x209   :  { %v1472_v62 = vpop.f32.mrf.mxu0 }
 0x20a   :  { %v838_v0 = vadd.f32 %v837_v57, %v727_v10 }
 0x20f   :  { %v1006_v63 = vpop.f32.mrf.mxu1 }
 0x211   :  { %v1529_v1 = vpop.f32.mrf.mxu1 }
 0x218   :  { %v925_v4 = vpop.f32.mrf.mxu0 }
 0x219   :  { %v926_v16 = vadd.f32 %v925_v4, %v838_v0 }
 0x21a   :  { %v1510_v5 = vpop.f32.mrf.mxu0 }
 0x21b   :  { %v1007_v17 = vadd.f32 %v1006_v63, %v926_v16 }
 0x221   :  { %v1180_v11 = vpop.f32.mrf.mxu1 }
 0x223   :  { %v1567_v12 = vpop.f32.mrf.mxu1 }
 0x229   :  { %v1101_v18 = vpop.f32.mrf.mxu0 }
 0x22a   :  { %v1102_v22 = vadd.f32 %v1101_v18, %v1007_v17 }
 0x22b   :  { %v1548_v23 = vpop.f32.mrf.mxu0 }
 0x22c   :  { %v1181_v24 = vadd.f32 %v1180_v11, %v1102_v22 }
 0x22e   :  { %v1184_v27 = vsel %vm589_vm2, %v1181_v24, 0.0 }
 0x22f   :  { %v1185_v28 = vrot.slane %v1184_v27, 4 }
 0x231   :  { %v1186_v29 = vadd.f32 %v1185_v28, %v1184_v27 }
 0x233   :  { %v1187_v32 = vrot.slane %v1186_v29, 2 }
 0x235   :  { %v1188_v33 = vadd.f32 %v1187_v32, %v1186_v29 }
 0x237   :  { %v1189_v37 = vrot.slane %v1188_v33, 1 }
 0x239   :  { %v1190_v53 = vadd.f32 %v1189_v37, %v1188_v33 }
 0x23b   :  { %v1191_v54 = vmul.f32 0.25, %v1190_v53 }
 0x23d   :  { %v1192_v55 = vsub.f32 %v1181_v24, %v1191_v54 }
 0x23f   :  { %v1193_v56 = vmul.f32 %v1192_v55, %v1192_v55 }
 0x241   :  { %v1194_v58 = vsel %vm589_vm2, %v1193_v56, 0.0 }
 0x242   :  { %v1195_v61 = vrot.slane %v1194_v58, 4 }
 0x244   :  { %v1196_v2 = vadd.f32 %v1195_v61, %v1194_v58 }
 0x246   :  { %v1197_v3 = vrot.slane %v1196_v2, 2 }
 0x248   :  { %v1198_v7 = vadd.f32 %v1197_v3, %v1196_v2 }
 0x24a   :  { %v1199_v8 = vrot.slane %v1198_v7, 1 }
 0x24c   :  { %v1200_v9 = vadd.f32 %v1199_v8, %v1198_v7 }
 0x24e   :  { %v1201_v13 = vmul.f32 0.25, %v1200_v9 }
 0x250   :  { %v1202_v14 = vadd.f32 1e-05, %v1201_v13 }
 0x252   :  { %1572 = vrsqrt.f32 %v1202_v14 }
 0x25f   :  { %v1573_v15 = vpop.eup %1572 }
 0x260   :  { %v1204_v20 = vmul.f32 %v1573_v15, %v1192_v55 }
 0x262   :  { %v1212_v25 = vmul.f32 %v1230_v19, %v1204_v20 }
 0x264   :  { %v1220_v26 = vadd.f32 %v1231_v21, %v1212_v25 }
 0x266   :  { %1221 = vst.msk [vmem:[%s2095_s9] sm:$0xf] %vm589_vm2, %v1220_v26 }

// kernel: ms_cam_forward.5
= control target key start
LH: loop header
LB: loop body
LE: loop exit
PB: predicated region body
PF: predicated region fallthrough
CT: control target
= control target key end

     0   :  { %s2814_s21 = smov 0   ;;  %s2816_s22 = smov 0   ;;  %s4221_s0 = inlined_call_operand.vmem [shape: f32[4,64,256], index: 0, kind: input, shape index: {}]   ;;  %s4222_s1 = inlined_call_operand.vmem [shape: f32[64,64], index: 1, kind: input, shape index: {}]   ;;  %s4223_s2 = inlined_call_operand.vmem [shape: f32[64,1], index: 2, kind: input, shape index: {}]   ;;  %s4224_s3 = inlined_call_operand.vmem [shape: f32[64,64], index: 3, kind: input, shape index: {}]   ;;  %s4225_s4 = inlined_call_operand.vmem [shape: f32[64,1], index: 4, kind: input, shape index: {}]   ;;  %s4226_s5 = inlined_call_operand.vmem [shape: f32[4,1,64,1], index: 5, kind: output, shape index: {0}]   ;;  %s4227_s6 = inlined_call_operand.vmem [shape: f32[4,1,64,1], index: 6, kind: output, shape index: {1}]  }
   0x1   :  { %s2818_s23 = smov 0  }
   0x2 LB: > { %s29_s24 = sadd.s32 1, %s2771_s22  ;;  %p2713_p0 = scmp.ge.s32.totalorder %s2775_s23, 1  ;;  %s2775_s23 = sphi %s2818_s23, %s17_s23   ;;  %s2771_s22 = sphi %s2816_s22, %s4352_s22   ;;  %s2767_s21 = sphi %s2814_s21, %s4351_s21  }
   0x3   : > { %p31_p1 = scmp.ge.s32.totalorder %s29_s24, 4  ;;  %p238_p2 = scmp.lt.s32.totalorder %s2775_s23, 5 }
   0x5   : > { %s4354_s24 = smov (%p31_p1, %s29_s24), 0  ;;  %p239_p3 = pnand %p2713_p0, %p238_p2 }
   0x7   : > { %242 = sbr.rel (%p239_p3) target bundleno = 810 (0x32a), region = 40 }
   0xc   : > { %p286_p4 = scmp.lt.s32.totalorder %s2767_s21, 3  ;;  %v313_v0 = vld [vmem:[%s4222_s1] sm:$0xff]  ;;  %vm385_vm0 = vcmask 523264   ;;  %v314_v1 = vld [vmem:[%s4222_s1 + $0x8] sm:$0xff]  ;;  %v315_v2 = vld [vmem:[%s4222_s1 + $0x10] sm:$0xff]  ;;  %v4244_v3 = vmov 0.0  }
   0xd   : > { %490 = vmatprep.mubr.f32.mxu0 %v4244_v3  ;;  %v387_v4 = vsel %vm385_vm0, %v313_v0, 0  ;;  %v390_v5 = vsel %vm385_vm0, %v314_v1, 0  ;;  %723 = vmatprep.mubr.f32.mxu1 %v4244_v3  ;;  %v393_v6 = vsel %vm385_vm0, %v315_v2, 0  ;;  %v316_v7 = vld [vmem:[%s4222_s1 + $0x18] sm:$0xff]  ;;  %v317_v8 = vld [vmem:[%s4222_s1 + $0x20] sm:$0xff]  ;;  %v318_v9 = vld [vmem:[%s4222_s1 + $0x28] sm:$0xff] }
   0xe   : > { %s4356_s21 = smov (!%p286_p4, %s2767_s21), 3  ;;  %v2858_v10 = vand.u32 4294901760, %v387_v4  ;;  %v2860_v11 = vand.u32 4294901760, %v390_v5  ;;  %v2862_v12 = vand.u32 4294901760, %v393_v6  ;;  %v396_v13 = vsel %vm385_vm0, %v316_v7, 0  ;;  %v319_v14 = vld [vmem:[%s4222_s1 + $0x30] sm:$0xff] }
   0xf   : > { %v2868_v15 = vand.u32 4294901760, %v396_v13  ;;  %v399_v16 = vsel %vm385_vm0, %v317_v8, 0  ;;  %v2872_v17 = vsel %vm385_vm0, %v318_v9, 0  ;;  %s2722_s15 = sshll.u32 %s4356_s21, 7  ;;  %v2895_v23 = vsel %vm385_vm0, %v319_v14, 0  ;;  %s2723_s9 = sshll.u32 %s4356_s21, 6 }
  0x10   : > { %v2876_v18 = vsub.f32 %v387_v4, %v2858_v10  ;;  %v2879_v19 = vsub.f32 %v390_v5, %v2860_v11  ;;  %v2882_v20 = vsub.f32 %v393_v6, %v2862_v12  ;;  %v2884_v21 = vand.u32 4294901760, %v399_v16  ;;  %s2889_s18 = scalar_lea.vmem %s4221_s0, %s2722_s15  ;;  %s4173_s12 = scalar_lea.vmem %s4226_s5, %s2723_s9 }
  0x11   : > { %v2892_v22 = vand.u32 4294901760, %v2872_v17  ;;  %v336_v24 = vld [vmem:[%s2889_s18 + $0x78] sm:$0xff]  ;;  %v335_v25 = vld [vmem:[%s2889_s18 + $0x70] sm:$0xff]  ;;  %v334_v26 = vld [vmem:[%s2889_s18 + $0x68] sm:$0xff]  ;;  %v2904_v30 = vsub.f32 %v396_v13, %v2868_v15  ;;  %vm2510_vm1 = vcmask 7168   ;;  %s4178_s15 = scalar_lea.vmem %s4227_s6, %s2723_s9 }
  0x12   : > { %v4228_v27 = vand.u32 4294901760, %v2876_v18  ;;  %v4236_v28 = vand.u32 4294901760, %v2879_v19  ;;  %v515_v29 = vand.u32 4294901760, %v2882_v20  ;;  %v2906_v31 = vand.u32 4294901760, %v336_v24  ;;  %v333_v34 = vld [vmem:[%s2889_s18 + $0x60] sm:$0xff]  ;;  %v332_v35 = vld [vmem:[%s2889_s18 + $0x58] sm:$0xff] }
  0x13   : > { %v2908_v32 = vand.u32 4294901760, %v335_v25  ;;  %v2910_v33 = vand.u32 4294901760, %v334_v26  ;;  %v331_v36 = vld [vmem:[%s2889_s18 + $0x50] sm:$0xff]  ;;  %v2916_v37 = vsub.f32 %v399_v16, %v2884_v21  ;;  %v2918_v38 = vand.u32 4294901760, %v333_v34  ;;  %v330_v41 = vld [vmem:[%s2889_s18 + $0x48] sm:$0xff]  ;;  %v329_v42 = vld [vmem:[%s2889_s18 + $0x40] sm:$0xff] }
  0x14   : > { %v2920_v39 = vand.u32 4294901760, %v332_v35  ;;  %v2922_v40 = vand.u32 4294901760, %v331_v36  ;;  %v328_v43 = vld [vmem:[%s2889_s18 + $0x38] sm:$0xff]  ;;  %v2930_v44 = vsub.f32 %v2876_v18, %v4228_v27  ;;  %427 = vmatprep.subr.mxu0 %v2906_v31  ;;  %v2933_v45 = vand.u32 4294901760, %v330_v41  ;;  %v327_v49 = vld [vmem:[%s2889_s18 + $0x30] sm:$0xff]  ;;  %v326_v50 = vld [vmem:[%s2889_s18 + $0x28] sm:$0xff] }
  0x15   : > { %v2935_v46 = vand.u32 4294901760, %v329_v42  ;;  %v2937_v47 = vand.u32 4294901760, %v328_v43  ;;  %v2940_v48 = vsub.f32 %v336_v24, %v2906_v31  ;;  %v325_v51 = vld [vmem:[%s2889_s18 + $0x20] sm:$0xff]  ;;  %429 = vmatpush1.msra.mxu0 %v2908_v32  ;;  %v2946_v52 = vand.u32 4294901760, %v327_v49  ;;  %v2957_v56 = vld [vmem:[%s2889_s18 + $0x18] sm:$0xff]  ;;  %v2960_v57 = vld [vmem:[%s2889_s18 + $0x10] sm:$0xff] }
  0x16   : > { %v2949_v53 = vsub.f32 %v335_v25, %v2908_v32  ;;  %v2951_v54 = vand.u32 4294901760, %v326_v50  ;;  %v2954_v55 = vsub.f32 %v334_v26, %v2910_v33  ;;  %v2963_v58 = vld [vmem:[%s2889_s18 + $0x8] sm:$0xff]  ;;  %431 = vmatprep.subr.mxu0 %v2910_v33  ;;  %v2967_v60 = vand.u32 4294901760, %v325_v51  ;;  %v2985_v4 = vld [vmem:[%s2889_s18] sm:$0xff] }
  0x17   : > { %v597_v59 = vand.u32 4294901760, %v2940_v48  ;;  %v2970_v61 = vsub.f32 %v333_v34, %v2918_v38  ;;  %v2973_v62 = vand.u32 4294901760, %v2957_v56  ;;  %433 = vmatpush1.msra.mxu0 %v2918_v38  ;;  %v2979_v1 = vsub.f32 %v332_v35, %v2920_v39 }
  0x18   : > { %v4240_v63 = vand.u32 4294901760, %v2949_v53  ;;  %v4230_v0 = vand.u32 4294901760, %v2954_v55  ;;  %v2982_v2 = vand.u32 4294901760, %v2960_v57  ;;  %435 = vmatprep.subr.mxu0 %v2920_v39  ;;  %v2993_v7 = vsub.f32 %v331_v36, %v2922_v40 }
  0x19   : > { %v598_v5 = vsub.f32 %v2940_v48, %v597_v59  ;;  %v4229_v6 = vand.u32 4294901760, %v2970_v61  ;;  %v2996_v8 = vand.u32 4294901760, %v2963_v58  ;;  %437 = vmatpush1.msra.mxu0 %v2922_v40  ;;  %v4231_v14 = vand.u32 4294901760, %v2979_v1 }
  0x1a   : > { %v604_v9 = vsub.f32 %v2949_v53, %v4240_v63  ;;  %v610_v13 = vsub.f32 %v2954_v55, %v4230_v0  ;;  %v3007_v16 = vsub.f32 %v330_v41, %v2933_v45  ;;  %439 = vmatprep.subr.mxu0 %v2933_v45  ;;  %v4232_v26 = vand.u32 4294901760, %v2993_v7 }
  0x1b   : > { %v599_v24 = vand.u32 4294901760, %v598_v5  ;;  %v616_v25 = vsub.f32 %v2970_v61, %v4229_v6  ;;  %v3015_v34 = vand.u32 4294901760, %v2985_v4  ;;  %441 = vmatpush1.msra.mxu0 %v2935_v46  ;;  %v622_v41 = vsub.f32 %v2979_v1, %v4231_v14 }
  0x1c   : > { %v605_v35 = vand.u32 4294901760, %v604_v9  ;;  %v611_v36 = vand.u32 4294901760, %v610_v13  ;;  %v4234_v27 = vand.u32 4294901760, %v3007_v16  ;;  %443 = vmatprep.subr.mxu0 %v2937_v47  ;;  %v628_v6 = vsub.f32 %v2993_v7, %v4232_v26 }
  0x1d   : > { %600 = vmatprep.subr.mxu1 %v599_v24  ;;  %v617_v5 = vand.u32 4294901760, %v616_v25  ;;  %v3027_v0 = vsub.f32 %v329_v42, %v2935_v46  ;;  %v495_v9 = vand.u32 4294901760, %v2930_v44  ;;  %445 = vmatpush1.msra.mxu0 %v2946_v52  ;;  %v623_v13 = vand.u32 4294901760, %v622_v41 }
  0x1e   : > { %606 = vmatpush1.msra.mxu1 %v605_v35  ;;  %v634_v14 = vsub.f32 %v3007_v16, %v4234_v27  ;;  %v3035_v24 = vsub.f32 %v328_v43, %v2937_v47  ;;  %v3038_v25 = vsub.f32 %v327_v49, %v2946_v52  ;;  %447 = vmatprep.subr.mxu0 %v2951_v54  ;;  %v629_v42 = vand.u32 4294901760, %v628_v6 }
  0x1f   : > { %612 = vmatprep.subr.mxu1 %v611_v36  ;;  %v4233_v44 = vand.u32 4294901760, %v3027_v0  ;;  %v3043_v26 = vsub.f32 %v326_v50, %v2951_v54  ;;  %v3046_v35 = vsub.f32 %v325_v51, %v2967_v60  ;;  %449 = vmatpush1.msra.mxu0 %v2967_v60  ;;  %v505_v6 = vsub.f32 %v2879_v19, %v4236_v28 }
  0x20   : > { %618 = vmatpush1.msra.mxu1 %v617_v5  ;;  %v635_v43 = vand.u32 4294901760, %v634_v14  ;;  %v4235_v41 = vand.u32 4294901760, %v3035_v24  ;;  %v4237_v49 = vand.u32 4294901760, %v3038_v25  ;;  %451 = vmatprep.subr.mxu0 %v2973_v62  ;;  %v3062_v14 = vsub.f32 %v2957_v56, %v2973_v62 }
  0x21   : > { %624 = vmatprep.subr.mxu1 %v623_v13  ;;  %v640_v50 = vsub.f32 %v3027_v0, %v4233_v44  ;;  %v4238_v51 = vand.u32 4294901760, %v3043_v26  ;;  %v4239_v36 = vand.u32 4294901760, %v3046_v35  ;;  %453 = vmatpush1.msra.mxu0 %v2982_v2  ;;  %v506_v44 = vand.u32 4294901760, %v505_v6 }
  0x22   : > { %630 = vmatpush1.msra.mxu1 %v629_v42  ;;  %v646_v5 = vsub.f32 %v3035_v24, %v4235_v41  ;;  %v652_v13 = vsub.f32 %v3038_v25, %v4237_v49  ;;  %v3073_v27 = vsub.f32 %v2960_v57, %v2982_v2  ;;  %455 = vmatprep.subr.mxu0 %v2996_v8  ;;  %v4243_v28 = vand.u32 4294901760, %v3062_v14 }
  0x23   : > { %636 = vmatprep.subr.mxu1 %v635_v43  ;;  %v641_v56 = vand.u32 4294901760, %v640_v50  ;;  %v658_v42 = vsub.f32 %v3043_v26, %v4238_v51  ;;  %v664_v41 = vsub.f32 %v3046_v35, %v4239_v36  ;;  %457 = vmatpush1.msra.mxu0 %v3015_v34  ;;  %v3087_v43 = vsub.f32 %v2963_v58, %v2996_v8 }
  0x24   : > { %v647_v6 = vand.u32 4294901760, %v646_v5  ;;  %v653_v49 = vand.u32 4294901760, %v652_v13  ;;  %v4242_v57 = vand.u32 4294901760, %v3073_v27  ;;  %496 = vmatmul.mubr.f32.vlgmr.msra.gmra.mxu0 %v495_v9  ;;  %v670_v36 = vsub.f32 %v3062_v14, %v4243_v28  ;;  %798 = vmatprep.subr.mxu0 %v2940_v48 }
  0x25   : > { %642 = vmatpush1.msra.mxu1 %v641_v56  ;;  %v659_v50 = vand.u32 4294901760, %v658_v42  ;;  %v665_v51 = vand.u32 4294901760, %v664_v41  ;;  %v3094_v63 = vsub.f32 %v2985_v4, %v3015_v34  ;;  %501 = vmatprep.mubr.f32.mxu0 %v4244_v3  ;;  %v4241_v5 = vand.u32 4294901760, %v3087_v43  ;;  %v320_v56 = vld [vmem:[%s4222_s1 + $0x38] sm:$0xff] }
  0x26   : > { %648 = vmatprep.subr.mxu1 %v647_v6  ;;  %v676_v58 = vsub.f32 %v3073_v27, %v4242_v57  ;;  %v516_v9 = vsub.f32 %v2882_v20, %v515_v29  ;;  %v526_v41 = vand.u32 4294901760, %v2904_v30  ;;  %v671_v13 = vand.u32 4294901760, %v670_v36  ;;  %801 = vmatpush1.msra.mxu0 %v2949_v53 }
  0x27   : > { %654 = vmatpush1.msra.mxu1 %v653_v49  ;;  %v687_v4 = vand.u32 4294901760, %v3094_v63  ;;  %v682_v6 = vsub.f32 %v3087_v43, %v4241_v5  ;;  %v3116_v49 = vsub.f32 %v2872_v17, %v2892_v22  ;;  %v3119_v36 = vand.u32 4294901760, %v2895_v23  ;;  %804 = vmatprep.subr.mxu0 %v2954_v55 }
  0x28   : > { %660 = vmatprep.subr.mxu1 %v659_v50  ;;  %v677_v42 = vand.u32 4294901760, %v676_v58  ;;  %507 = vmatmul.mubr.f32.gmra.mxu0 %v506_v44  ;;  %v517_v58 = vand.u32 4294901760, %v516_v9  ;;  %v527_v5 = vsub.f32 %v2904_v30, %v526_v41  ;;  %v537_v57 = vand.u32 4294901760, %v2916_v37 }
  0x29   : > { %666 = vmatpush1.msra.mxu1 %v665_v51  ;;  %v688_v50 = vsub.f32 %v3094_v63, %v687_v4  ;;  %v683_v28 = vand.u32 4294901760, %v682_v6  ;;  %512 = vmatprep.mubr.f32.mxu0 %v4244_v3  ;;  %v408_v17 = vsel %vm385_vm0, %v320_v56, 0  ;;  %v548_v44 = vand.u32 4294901760, %v3116_v49 }
  0x2a   : > { %672 = vmatprep.subr.mxu1 %v671_v13  ;;  %807 = vmatpush1.msra.mxu0 %v2970_v61  ;;  %v528_v9 = vand.u32 4294901760, %v527_v5  ;;  %v538_v13 = vsub.f32 %v2916_v37, %v537_v57  ;;  %v3138_v6 = vsub.f32 %v2895_v23, %v3119_v36  ;;  %v3140_v56 = vand.u32 4294901760, %v408_v17 }
  0x2b   : > { %678 = vmatpush1.msra.mxu1 %v677_v42  ;;  %v689_v51 = vand.u32 4294901760, %v688_v50  ;;  %810 = vmatprep.subr.mxu0 %v2979_v1  ;;  %v549_v23 = vsub.f32 %v3116_v49, %v548_v44  ;;  %v4265_v48 = vand.u32 4294901760, %v2954_v55  ;;  %v4271_v55 = vand.u32 4294901760, %v3007_v16 }
  0x2c   : > { %684 = vmatprep.subr.mxu1 %v683_v28  ;;  %518 = vmatmul.mubr.f32.gmra.mxu0 %v517_v58  ;;  %v539_v28 = vand.u32 4294901760, %v538_v13  ;;  %v559_v5 = vand.u32 4294901760, %v3138_v6  ;;  %v3154_v42 = vsub.f32 %v408_v17, %v3140_v56 }
  0x2d   : > { %690 = vmatpush1.msra.mxu1 %v689_v51  ;;  %523 = vmatprep.mubr.f32.mxu0 %v4244_v3  ;;  %v550_v50 = vand.u32 4294901760, %v549_v23  ;;  %v4268_v23 = vand.u32 4294901760, %v2979_v1 }
  0x2e   : > { %725 = vmatmul.mubr.f32.vlgmr.msra.gmra.mxu1 %v2858_v10  ;;  %813 = vmatpush1.msra.mxu0 %v2993_v7  ;;  %v560_v58 = vsub.f32 %v3138_v6, %v559_v5  ;;  %v570_v17 = vand.u32 4294901760, %v3154_v42 }
  0x2f   : > { %730 = vmatprep.mubr.f32.mxu1 %v4244_v3  ;;  %958 = vmatprep.subr.mxu1 %v2906_v31 }
  0x30   : > { %529 = vmatmul.mubr.f32.gmra.mxu0 %v528_v9  ;;  %816 = vmatprep.subr.mxu0 %v3007_v16  ;;  %v561_v51 = vand.u32 4294901760, %v560_v58  ;;  %v571_v9 = vsub.f32 %v3154_v42, %v570_v17 }
  0x31   : > { %534 = vmatprep.mubr.f32.mxu0 %v4244_v3  ;;  %819 = vmatpush1.msra.mxu0 %v3027_v0 }
  0x32   : > { %732 = vmatmul.mubr.f32.gmra.mxu1 %v2860_v11  ;;  %822 = vmatprep.subr.mxu0 %v3035_v24  ;;  %v572_v13 = vand.u32 4294901760, %v571_v9 }
  0x33   : > { %737 = vmatprep.mubr.f32.mxu1 %v4244_v3  ;;  %960 = vmatpush1.msra.mxu1 %v2908_v32 }
  0x34   : > { %540 = vmatmul.mubr.f32.gmra.mxu0 %v539_v28  ;;  %962 = vmatprep.subr.mxu1 %v2910_v33  ;;  %v4264_v28 = vand.u32 4294901760, %v2949_v53  ;;  %v4266_v53 = vand.u32 4294901760, %v2876_v18 }
  0x35   : > { %545 = vmatprep.mubr.f32.mxu0 %v4244_v3  ;;  %825 = vmatpush1.msra.mxu0 %v3038_v25 }
  0x36   : > { %739 = vmatmul.mubr.f32.gmra.mxu1 %v2862_v12  ;;  %828 = vmatprep.subr.mxu0 %v3043_v26 }
  0x37   : > { %744 = vmatprep.mubr.f32.mxu1 %v4244_v3  ;;  %964 = vmatpush1.msra.mxu1 %v2918_v38 }
  0x38   : > { %551 = vmatmul.mubr.f32.gmra.mxu0 %v550_v50  ;;  %966 = vmatprep.subr.mxu1 %v2920_v39 }
  0x39   : > { %556 = vmatprep.mubr.f32.mxu0 %v4244_v3  ;;  %831 = vmatpush1.msra.mxu0 %v3046_v35 }
  0x3a   : > { %746 = vmatmul.mubr.f32.gmra.mxu1 %v2868_v15  ;;  %834 = vmatprep.subr.mxu0 %v3062_v14 }
  0x3b   : > { %751 = vmatprep.mubr.f32.mxu1 %v4244_v3  ;;  %968 = vmatpush1.msra.mxu1 %v2922_v40 }
  0x3c   : > { %562 = vmatmul.mubr.f32.gmra.mxu0 %v561_v51  ;;  %970 = vmatprep.subr.mxu1 %v2933_v45 }
  0x3d   : > { %567 = vmatprep.mubr.f32.mxu0 %v4244_v3  ;;  %837 = vmatpush1.msra.mxu0 %v3073_v27 }
  0x3e   : > { %753 = vmatmul.mubr.f32.gmra.mxu1 %v2884_v21  ;;  %840 = vmatprep.subr.mxu0 %v3087_v43 }
  0x3f   : > { %758 = vmatprep.mubr.f32.mxu1 %v4244_v3  ;;  %972 = vmatpush1.msra.mxu1 %v2935_v46 }
  0x40   : > { %573 = vmatmul.mubr.f32.gmra.mxu0 %v572_v13  ;;  %974 = vmatprep.subr.mxu1 %v2937_v47 }
  0x41   : > { %843 = vmatpush1.msra.mxu0 %v3094_v63  ;;  %876 = vmatprep.mubr.f32.mxu0 %v4244_v3  ;;  %v1429_v63 = vld [vmem:[%s4225_s4 + $0x28] sm:$0xff] }
  0x42   : > { %760 = vmatmul.mubr.f32.gmra.mxu1 %v2892_v22  ;;  %1113 = vmatprep.subr.mxu0 %v597_v59  ;;  %v4267_v59 = vand.u32 4294901760, %v2970_v61  ;;  %v1425_v61 = vld [vmem:[%s4225_s4 + $0x8] sm:$0xff] }
  0x43   : > { %765 = vmatprep.mubr.f32.mxu1 %v4244_v3  ;;  %976 = vmatpush1.msra.mxu1 %v2946_v52 }
  0x44   : > { %879 = vmatmul.mubr.f32.vlgmr.msra.gmra.mxu0 %v2876_v18  ;;  %978 = vmatprep.subr.mxu1 %v2951_v54  ;;  %v4270_v18 = vand.u32 4294901760, %v2993_v7 }
  0x45   : > { %884 = vmatprep.mubr.f32.mxu0 %v4244_v3  ;;  %980 = vmatpush1.msra.mxu1 %v2967_v60 }
  0x46   : > { %767 = vmatmul.mubr.f32.gmra.mxu1 %v3119_v36  ;;  %982 = vmatprep.subr.mxu1 %v2973_v62 }
  0x47   : > { %772 = vmatprep.mubr.f32.mxu1 %v4244_v3  ;;  %1117 = vmatpush1.msra.mxu0 %v4264_v28 }
  0x48   : > { %887 = vmatmul.mubr.f32.gmra.mxu0 %v2879_v19  ;;  %984 = vmatpush1.msra.mxu1 %v2982_v2 }
  0x49   : > { %986 = vmatprep.subr.mxu1 %v2996_v8  ;;  %892 = vmatprep.mubr.f32.mxu0 %v4244_v3 }
  0x4a   : > { %774 = vmatmul.mubr.f32.gmra.mxu1 %v3140_v56  ;;  %1121 = vmatprep.subr.mxu0 %v4265_v48 }
  0x4b   : > { %988 = vmatpush1.msra.mxu1 %v3015_v34  ;;  %1021 = vmatprep.mubr.f32.mxu1 %v4244_v3 }
  0x4c   : > { %895 = vmatmul.mubr.f32.gmra.mxu0 %v2882_v20  ;;  %1280 = vmatprep.subr.mxu1 %v2906_v31  ;;  %v4269_v31 = vand.u32 4294901760, %v2879_v19  ;;  %v4272_v19 = vand.u32 4294901760, %v3027_v0  ;;  %v342_v20 = vld [vmem:[%s4223_s2 + $0x28] sm:$0xff]  ;;  %v1431_v0 = vld [vmem:[%s4225_s4 + $0x38] sm:$0xff] }
  0x4d   : > { %900 = vmatprep.mubr.f32.mxu0 %v4244_v3  ;;  %1125 = vmatpush1.msra.mxu0 %v4267_v59 }
  0x4e   : > { %1025 = vmatmul.mubr.f32.vlgmr.msra.gmra.mxu1 %v4266_v53  ;;  %1129 = vmatprep.subr.mxu0 %v4268_v23 }
  0x4f   : > { %1030 = vmatprep.mubr.f32.mxu1 %v4244_v3  ;;  %1282 = vmatpush1.msra.mxu1 %v2908_v32  ;;  %v4273_v32 = vand.u32 4294901760, %v3035_v24 }
  0x50   : > { %903 = vmatmul.mubr.f32.gmra.mxu0 %v2904_v30  ;;  %1284 = vmatprep.subr.mxu1 %v2910_v33  ;;  %v2778_v33 = vmov 0   ;;  %v4276_v30 = vand.u32 4294901760, %v3046_v35 }
  0x51   : > { %908 = vmatprep.mubr.f32.mxu0 %v4244_v3  ;;  %1133 = vmatpush1.msra.mxu0 %v4270_v18 }
  0x52   : > { %1034 = vmatmul.mubr.f32.gmra.mxu1 %v4269_v31  ;;  %1137 = vmatprep.subr.mxu0 %v4271_v55 }
  0x53   : > { %1039 = vmatprep.mubr.f32.mxu1 %v4244_v3  ;;  %1286 = vmatpush1.msra.mxu1 %v2918_v38  ;;  %v4275_v38 = vand.u32 4294901760, %v3043_v26 }
  0x54   : > { %911 = vmatmul.mubr.f32.gmra.mxu0 %v2916_v37  ;;  %1288 = vmatprep.subr.mxu1 %v2920_v39  ;;  %v4277_v39 = vand.u32 4294901760, %v3062_v14  ;;  %v4278_v37 = vand.u32 4294901760, %v3073_v27  ;;  %v341_v27 = vld [vmem:[%s4223_s2 + $0x20] sm:$0xff] }
  0x55   : > { %916 = vmatprep.mubr.f32.mxu0 %v4244_v3  ;;  %1141 = vmatpush1.msra.mxu0 %v4272_v19 }
  0x56   : > { %1043 = vmatmul.mubr.f32.gmra.mxu1 %v515_v29  ;;  %1145 = vmatprep.subr.mxu0 %v4273_v32  ;;  %v4274_v29 = vand.u32 4294901760, %v3038_v25 }
  0x57   : > { %1048 = vmatprep.mubr.f32.mxu1 %v4244_v3  ;;  %1290 = vmatpush1.msra.mxu1 %v2922_v40  ;;  %v4279_v40 = vand.u32 4294901760, %v3087_v43 }
  0x58   : > { %919 = vmatmul.mubr.f32.gmra.mxu0 %v3116_v49  ;;  %2752 = vset.pattern.permute.xlu1 %v2778_v33 }
  0x59   : > { %924 = vmatprep.mubr.f32.mxu0 %v4244_v3  ;;  %1149 = vmatpush1.msra.mxu0 %v4274_v29 }
  0x5a   : > { %1052 = vmatmul.mubr.f32.gmra.mxu1 %v526_v41  ;;  %1153 = vmatprep.subr.mxu0 %v4275_v38 }
  0x5b   : > { %1057 = vmatprep.mubr.f32.mxu1 %v4244_v3  ;;  %1292 = vmatprep.subr.mxu1 %v2933_v45  ;;  %v344_v45 = vld [vmem:[%s4223_s2 + $0x38] sm:$0xff] }
  0x5c   : > { %927 = vmatmul.mubr.f32.gmra.mxu0 %v3138_v6  ;;  %372 = vperm.xlu1 %2752, %v342_v20  }
  0x5d   : > { %932 = vmatprep.mubr.f32.mxu0 %v4244_v3  ;;  %1157 = vmatpush1.msra.mxu0 %v4276_v30 }
  0x5e   : > { %1061 = vmatmul.mubr.f32.gmra.mxu1 %v537_v57  ;;  %1161 = vmatprep.subr.mxu0 %v4277_v39 }
  0x5f   : > { %1066 = vmatprep.mubr.f32.mxu1 %v4244_v3  ;;  %1294 = vmatpush1.msra.mxu1 %v2935_v46  ;;  %v343_v46 = vld [vmem:[%s4223_s2 + $0x30] sm:$0xff] }
  0x60   : > { %935 = vmatmul.mubr.f32.gmra.mxu0 %v3154_v42  ;;  %1296 = vmatprep.subr.mxu1 %v2937_v47  ;;  %v339_v47 = vld [vmem:[%s4223_s2 + $0x10] sm:$0xff] }
  0x61   : > { %1165 = vmatpush1.msra.mxu0 %v4278_v37  ;;  %1206 = vmatprep.mubr.f32.mxu0 %v4244_v3 }
  0x62   : > { %1070 = vmatmul.mubr.f32.gmra.mxu1 %v548_v44  ;;  %1169 = vmatprep.subr.mxu0 %v4279_v40 }
  0x63   : > { %1075 = vmatprep.mubr.f32.mxu1 %v4244_v3  ;;  %1173 = vmatpush1.msra.mxu0 %v687_v4 }
  0x64   : > { %1208 = vmatmul.mubr.f32.vlgmr.msra.gmra.mxu0 %v2858_v10  ;;  %1298 = vmatpush1.msra.mxu1 %v2946_v52  ;;  %v340_v52 = vld [vmem:[%s4223_s2 + $0x18] sm:$0xff] }
  0x65   : > { %2751 = vset.pattern.permute.xlu0 %v2778_v33  ;;  %1300 = vmatprep.subr.mxu1 %v2951_v54  ;;  %v337_v54 = vld [vmem:[%s4223_s2] sm:$0xff] }
  0x66   : > { %1079 = vmatmul.mubr.f32.gmra.mxu1 %v559_v5  ;;  %382 = vperm.xlu0 %2751, %v344_v45  }
  0x67   : > { %367 = vperm.xlu1 %2752, %v341_v27   ;;  %1084 = vmatprep.mubr.f32.mxu1 %v4244_v3 }
  0x68   : > { %1213 = vmatprep.mubr.f32.mxu0 %v4244_v3  ;;  %1302 = vmatpush1.msra.mxu1 %v2967_v60  ;;  %v338_v60 = vld [vmem:[%s4223_s2 + $0x8] sm:$0xff] }
  0x69   : > { %1215 = vmatmul.mubr.f32.gmra.mxu0 %v2860_v11  ;;  %1304 = vmatprep.subr.mxu1 %v2973_v62  ;;  %v1427_v62 = vld [vmem:[%s4225_s4 + $0x18] sm:$0xff] }
  0x6a   : > { %1088 = vmatmul.mubr.f32.gmra.mxu1 %v570_v17  ;;  %377 = vperm.xlu0 %2751, %v343_v46  }
  0x6b   : > { %1306 = vmatpush1.msra.mxu1 %v2982_v2  ;;  %357 = vperm.xlu1 %2752, %v339_v47  }
  0x6c   : > { %1308 = vmatprep.subr.mxu1 %v2996_v8  ;;  %1220 = vmatprep.mubr.f32.mxu0 %v4244_v3 }
  0x6d   : > { %1310 = vmatpush1.msra.mxu1 %v3015_v34  ;;  %1343 = vmatprep.mubr.f32.mxu1 %v4244_v3 }
  0x6e   : > { %1222 = vmatmul.mubr.f32.gmra.mxu0 %v2862_v12  ;;  %1345 = vmatmul.mubr.f32.vlgmr.msra.gmra.mxu1 %v2858_v10  ;;  %v1424_v10 = vld [vmem:[%s4225_s4] sm:$0xff] }
  0x6f   : > { %362 = vperm.xlu0 %2751, %v340_v52   ;;  %347 = vperm.xlu1 %2752, %v337_v54  }
  0x70   : > { %1227 = vmatprep.mubr.f32.mxu0 %v4244_v3  ;;  %1350 = vmatprep.mubr.f32.mxu1 %v4244_v3 }
  0x72   : > { %1229 = vmatmul.mubr.f32.gmra.mxu0 %v2868_v15  ;;  %1352 = vmatmul.mubr.f32.gmra.mxu1 %v2860_v11  ;;  %v1426_v11 = vld [vmem:[%s4225_s4 + $0x10] sm:$0xff] }
  0x73   : > { %352 = vperm.xlu0 %2751, %v338_v60   ;;  %1234 = vmatprep.mubr.f32.mxu0 %v4244_v3 }
  0x74   : > { %1357 = vmatprep.mubr.f32.mxu1 %v4244_v3  ;;  %1439 = vperm.xlu1 %2752, %v1425_v61  }
  0x76   : > { %1236 = vmatmul.mubr.f32.gmra.mxu0 %v2884_v21  ;;  %1359 = vmatmul.mubr.f32.gmra.mxu1 %v2862_v12  ;;  %v1428_v12 = vld [vmem:[%s4225_s4 + $0x20] sm:$0xff] }
  0x77   : > { %1241 = vmatprep.mubr.f32.mxu0 %v4244_v3  ;;  %1364 = vmatprep.mubr.f32.mxu1 %v4244_v3 }
  0x78   : > { %1434 = vperm.xlu0 %2751, %v1424_v10   ;;  %1449 = vperm.xlu1 %2752, %v1427_v62  }
  0x7a   : > { %1243 = vmatmul.mubr.f32.gmra.mxu0 %v2892_v22  ;;  %1366 = vmatmul.mubr.f32.gmra.mxu1 %v2868_v15  ;;  %v1430_v15 = vld [vmem:[%s4225_s4 + $0x30] sm:$0xff] }
  0x7b   : > { %1248 = vmatprep.mubr.f32.mxu0 %v4244_v3  ;;  %1371 = vmatprep.mubr.f32.mxu1 %v4244_v3 }
  0x7c   : > { %1444 = vperm.xlu0 %2751, %v1426_v11   ;;  %1459 = vperm.xlu1 %2752, %v1429_v63  }
  0x7e   : > { %1250 = vmatmul.mubr.f32.gmra.mxu0 %v3119_v36  ;;  %1373 = vmatmul.mubr.f32.gmra.mxu1 %v2884_v21 }
  0x7f   : > { %1255 = vmatprep.mubr.f32.mxu0 %v4244_v3  ;;  %1378 = vmatprep.mubr.f32.mxu1 %v4244_v3 }
  0x80   : > { %1454 = vperm.xlu0 %2751, %v1428_v12   ;;  %1469 = vperm.xlu1 %2752, %v1431_v0  }
  0x82   : > { %1257 = vmatmul.mubr.f32.gmra.mxu0 %v3140_v56  ;;  %1380 = vmatmul.mubr.f32.gmra.mxu1 %v2892_v22 }
  0x83   : > { %1385 = vmatprep.mubr.f32.mxu1 %v4244_v3  ;;  %1576 = vmatprep.mubr.f32.mxu0 %v4244_v3 }
  0x84   : > { %1464 = vperm.xlu0 %2751, %v1430_v15  }
  0x86   : > { %1387 = vmatmul.mubr.f32.gmra.mxu1 %v3119_v36 }
  0x87   : > { %1392 = vmatprep.mubr.f32.mxu1 %v4244_v3 }
  0x8a   : > { %1394 = vmatmul.mubr.f32.gmra.mxu1 %v3140_v56 }
  0x8b   : > { %1809 = vmatprep.mubr.f32.mxu1 %v4244_v3 }
  0xd7   : > { %v373_v21 = vpop.permute.xlu1 %372 }
  0xe1   : > { %v3374_v1 = vpop.permute.xlu0 %382 }
  0xe2   : > { %v368_v2 = vpop.permute.xlu1 %367 }
  0xe4   : > { %v497_v7 = vpop.f32.mrf.mxu0 }
  0xe5   : > { %v3376_v8 = vpop.permute.xlu0 %377 }
  0xe6   : > { %v358_v22 = vpop.permute.xlu1 %357  ;;  %v499_v16 = vpop.f32.mrf.mxu0 }
  0xe8   : > { %v508_v26 = vpop.f32.mrf.mxu0 }
  0xea   : > { %v363_v34 = vpop.permute.xlu0 %362  ;;  %v348_v24 = vpop.permute.xlu1 %347 }
  0xeb   : > { %v498_v25 = vadd.f32 %v497_v7, %v348_v24  ;;  %v510_v35 = vpop.f32.mrf.mxu0  ;;  %v500_v43 = vadd.f32 %v499_v16, %v348_v24 }
  0xed   : > { %v519_v14 = vpop.f32.mrf.mxu0 }
  0xee   : > { %v726_v57 = vpop.f32.mrf.mxu1  ;;  %v353_v4 = vpop.permute.xlu0 %352  ;;  %v520_v42 = vadd.f32 %v519_v14, %v358_v22 }
  0xef   : > { %v727_v41 = vadd.f32 %v726_v57, %v498_v25  ;;  %v509_v49 = vadd.f32 %v508_v26, %v353_v4  ;;  %v521_v36 = vpop.f32.mrf.mxu0  ;;  %v511_v50 = vadd.f32 %v510_v35, %v353_v4 }
  0xf0   : > { %v728_v44 = vpop.f32.mrf.mxu1  ;;  %v522_v48 = vadd.f32 %v521_v36, %v358_v22 }
  0xf1   : > { %v729_v6 = vadd.f32 %v728_v44, %v500_v43  ;;  %v530_v56 = vpop.f32.mrf.mxu0 }
  0xf2   : > { %v733_v5 = vpop.f32.mrf.mxu1  ;;  %v531_v53 = vadd.f32 %v530_v56, %v363_v34 }
  0xf3   : > { %v734_v58 = vadd.f32 %v733_v5, %v509_v49  ;;  %v532_v17 = vpop.f32.mrf.mxu0 }
  0xf4   : > { %v735_v51 = vpop.f32.mrf.mxu1  ;;  %v533_v32 = vadd.f32 %v532_v17, %v363_v34 }
  0xf5   : > { %v736_v9 = vadd.f32 %v735_v51, %v511_v50  ;;  %v541_v13 = vpop.f32.mrf.mxu0 }
  0xf6   : > { %v740_v28 = vpop.f32.mrf.mxu1  ;;  %v542_v33 = vadd.f32 %v541_v13, %v368_v2 }
  0xf7   : > { %v3378_v59 = vadd.f32 %v740_v28, %v520_v42  ;;  %v543_v23 = vpop.f32.mrf.mxu0 }
  0xf8   : > { %v742_v31 = vpop.f32.mrf.mxu1  ;;  %v544_v40 = vadd.f32 %v543_v23, %v368_v2 }
  0xf9   : > { %v3380_v18 = vadd.f32 %v742_v31, %v522_v48  ;;  %v552_v55 = vpop.f32.mrf.mxu0 }
  0xfa   : > { %v747_v19 = vpop.f32.mrf.mxu1  ;;  %v553_v45 = vadd.f32 %v552_v55, %v373_v21 }
  0xfb   : > { %v3382_v20 = vadd.f32 %v747_v19, %v531_v53  ;;  %v554_v29 = vpop.f32.mrf.mxu0 }
  0xfc   : > { %v749_v38 = vpop.f32.mrf.mxu1  ;;  %v555_v61 = vadd.f32 %v554_v29, %v373_v21 }
  0xfd   : > { %v3384_v30 = vadd.f32 %v749_v38, %v533_v32  ;;  %v563_v39 = vpop.f32.mrf.mxu0 }
  0xfe   : > { %v754_v37 = vpop.f32.mrf.mxu1  ;;  %v564_v10 = vadd.f32 %v563_v39, %v3376_v8 }
  0xff   : > { %v3386_v27 = vadd.f32 %v754_v37, %v542_v33  ;;  %v3388_v46 = vpop.f32.mrf.mxu0 }
 0x100   : > { %v756_v47 = vpop.f32.mrf.mxu1 }
 0x101   : > { %v3390_v52 = vadd.f32 %v756_v47, %v544_v40  ;;  %v3392_v54 = vpop.f32.mrf.mxu0  ;;  %v1416_v40 = vld [vmem:[%s4224_s3] sm:$0xff] }
 0x102   : > { %v761_v60 = vpop.f32.mrf.mxu1 }
 0x103   : > { %v3395_v62 = vadd.f32 %v761_v60, %v553_v45  ;;  %v3397_v11 = vpop.f32.mrf.mxu0  ;;  %v1473_v60 = vsel %vm385_vm0, %v1416_v40, 0 }
 0x104   : > { %v763_v63 = vpop.f32.mrf.mxu1 }
 0x105   : > { %v3399_v12 = vadd.f32 %v763_v63, %v555_v61  ;;  %v880_v15 = vpop.f32.mrf.mxu0 }
 0x106   : > { %v768_v0 = vpop.f32.mrf.mxu1  ;;  %v881_v7 = vadd.f32 %v880_v15, %v727_v41  ;;  %v3475_v15 = vand.u32 4294901760, %v1473_v60 }
 0x107   : > { %v3401_v2 = vadd.f32 %v768_v0, %v564_v10  ;;  %v882_v16 = vpop.f32.mrf.mxu0 }
 0x108   : > { %v3403_v22 = vpop.f32.mrf.mxu1  ;;  %v883_v26 = vadd.f32 %v882_v16, %v729_v6  ;;  %4281 = vst [vmem:[#allocation3_spill] sm:$0xff] %v3475_v15 }
 0x109   : > { %v888_v21 = vpop.f32.mrf.mxu0 }
 0x10a   : > { %v3405_v34 = vpop.f32.mrf.mxu1  ;;  %v889_v24 = vadd.f32 %v888_v21, %v734_v58  ;;  %v3483_v21 = vsub.f32 %v1473_v60, %v3475_v15 }
 0x10b   : > { %v890_v35 = vpop.f32.mrf.mxu0 }
 0x10c   : > { %v3407_v25 = vpop.f32.mrf.mxu1  ;;  %v891_v14 = vadd.f32 %v890_v35, %v736_v9  ;;  %4283 = vst [vmem:[#allocation5_spill] sm:$0xff] %v3483_v21 }
 0x10d   : > { %v3409_v57 = vpop.f32.mrf.mxu0 }
 0x10e   : > { %v1026_v43 = vpop.f32.mrf.mxu1 }
 0x10f   : > { %v3411_v4 = vadd.f32 %v1026_v43, %v881_v7  ;;  %v3413_v49 = vpop.f32.mrf.mxu0 }
 0x110   : > { %v1028_v41 = vpop.f32.mrf.mxu1 }
 0x111   : > { %v3415_v36 = vadd.f32 %v1028_v41, %v883_v26  ;;  %v3417_v44 = vpop.f32.mrf.mxu0  ;;  %v1417_v26 = vld [vmem:[%s4224_s3 + $0x8] sm:$0xff] }
 0x112   : > { %v1035_v6 = vpop.f32.mrf.mxu1 }
 0x113   : > { %v3419_v56 = vadd.f32 %v1035_v6, %v889_v24  ;;  %v3421_v5 = vpop.f32.mrf.mxu0  ;;  %v4248_v6 = vand.u32 4294901760, %v3483_v21 }
 0x114   : > { %v1037_v42 = vpop.f32.mrf.mxu1 }
 0x115   : > { %v3423_v50 = vadd.f32 %v1037_v42, %v891_v14  ;;  %v3425_v58 = vpop.f32.mrf.mxu0  ;;  %v1476_v14 = vsel %vm385_vm0, %v1417_v26, 0  ;;  %v1418_v26 = vld [vmem:[%s4224_s3 + $0x10] sm:$0xff] }
 0x116   : > { %v3427_v17 = vpop.f32.mrf.mxu1  ;;  %v3499_v3 = vand.u32 4294901760, %v1476_v14 }
 0x117   : > { %v3429_v51 = vpop.f32.mrf.mxu0 }
 0x118   : > { %v3431_v9 = vpop.f32.mrf.mxu1  ;;  %4290 = vst [vmem:[#allocation12_spill] sm:$0xff] %v3499_v3 }
 0x119   : > { %v3433_v13 = vpop.f32.mrf.mxu0 }
 0x11a   : > { %v3435_v28 = vpop.f32.mrf.mxu1 }
 0x11b   : > { %v3437_v48 = vpop.f32.mrf.mxu0 }
 0x11c   : > { %v3439_v53 = vpop.f32.mrf.mxu1 }
 0x11d   : > { %v3441_v23 = vpop.f32.mrf.mxu0 }
 0x11e   : > { %v3443_v31 = vpop.f32.mrf.mxu1 }
 0x11f   : > { %v3445_v55 = vpop.f32.mrf.mxu0 }
 0x120   : > { %v3447_v19 = vpop.f32.mrf.mxu1 }
 0x121   : > { %v3449_v32 = vpop.f32.mrf.mxu0 }
 0x122   : > { %v3451_v33 = vpop.f32.mrf.mxu1 }
 0x123   : > { %v3453_v29 = vpop.f32.mrf.mxu0 }
 0x124   : > { %v3455_v38 = vpop.f32.mrf.mxu1 }
 0x125   : > { %v1209_v37 = vpop.f32.mrf.mxu0 }
 0x126   : > { %v3457_v39 = vpop.f32.mrf.mxu1 }
 0x127   : > { %v3464_v47 = vpop.f32.mrf.mxu0 }
 0x128   : > { %v3462_v45 = vpop.f32.mrf.mxu1 }
 0x129   : > { %v3469_v10 = vpop.f32.mrf.mxu0 }
 0x12a   : > { %v3467_v61 = vpop.f32.mrf.mxu1 }
 0x12b   : > { %v3473_v0 = vpop.f32.mrf.mxu0 }
 0x12c   : > { %v3471_v63 = vpop.f32.mrf.mxu1  ;;  %4280 = vst [vmem:[#allocation2_spill] sm:$0xff] %v3473_v0 }
 0x12e   : > { %v3477_v7 = vpop.f32.mrf.mxu0  ;;  %v1346_v16 = vpop.f32.mrf.mxu1 }
 0x12f   : > { %4282 = vst [vmem:[#allocation4_spill] sm:$0xff] %v3477_v7 }
 0x130   : > { %v3485_v24 = vpop.f32.mrf.mxu0  ;;  %v3487_v35 = vpop.f32.mrf.mxu1 }
 0x131   : > { %4284 = vst [vmem:[#allocation6_spill] sm:$0xff] %v3485_v24  ;;  %4285 = vst [vmem:[#allocation7_spill] sm:$0xff] %v3487_v35  ;;  %v575_v24 = vadd.f32 %v3392_v54, %v3374_v1 }
 0x132   : > { %v3490_v43 = vpop.f32.mrf.mxu0  ;;  %v3492_v41 = vpop.f32.mrf.mxu1 }
 0x133   : > { %4286 = vst [vmem:[#allocation8_spill] sm:$0xff] %v3490_v43  ;;  %4287 = vst [vmem:[#allocation9_spill] sm:$0xff] %v3492_v41  ;;  %v3511_v41 = vsub.f32 %v3483_v21, %v4248_v6  ;;  %v577_v6 = vadd.f32 %v3397_v11, %v3374_v1  ;;  %v899_v1 = vadd.f32 %v3413_v49, %v3380_v18 }
 0x134   : > { %v3495_v42 = vpop.f32.mrf.mxu0  ;;  %v3497_v40 = vpop.f32.mrf.mxu1  ;;  %v905_v11 = vadd.f32 %v3417_v44, %v3382_v20  ;;  %v921_v18 = vadd.f32 %v3433_v13, %v3395_v62  ;;  %v1210_v49 = vadd.f32 %v1209_v37, %v3411_v4 }
 0x135   : > { %4288 = vst [vmem:[#allocation10_spill] sm:$0xff] %v3495_v42  ;;  %4289 = vst [vmem:[#allocation11_spill] sm:$0xff] %v3497_v40  ;;  %v3516_v40 = vsub.f32 %v1476_v14, %v3499_v3  ;;  %v1581_v21 = vand.u32 4294901760, %v3511_v41  ;;  %v897_v3 = vadd.f32 %v3409_v57, %v3378_v59  ;;  %v907_v59 = vadd.f32 %v3421_v5, %v3384_v30 }
 0x136   : > { %v3501_v60 = vpop.f32.mrf.mxu0  ;;  %v3503_v15 = vpop.f32.mrf.mxu1  ;;  %v1054_v20 = vadd.f32 %v3435_v28, %v905_v11  ;;  %v923_v30 = vadd.f32 %v3437_v48, %v3399_v12  ;;  %v1072_v4 = vadd.f32 %v3451_v33, %v921_v18  ;;  %v1212_v48 = vadd.f32 %v3464_v47, %v3415_v36 }
 0x137   : > { %4291 = vst [vmem:[#allocation13_spill] sm:$0xff] %v3501_v60  ;;  %4292 = vst [vmem:[#allocation14_spill] sm:$0xff] %v3503_v15  ;;  %v3521_v15 = vsel %vm385_vm0, %v1418_v26, 0  ;;  %v566_v60 = vadd.f32 %v3388_v46, %v3376_v8  ;;  %v4257_v26 = vand.u32 4294901760, %v3516_v40  ;;  %v776_v8 = vadd.f32 %v3405_v34, %v575_v24 }
 0x138   : > { %v1239_v43 = vpop.f32.mrf.mxu0  ;;  %v3513_v35 = vpop.f32.mrf.mxu1  ;;  %v3535_v0 = vand.u32 4294901760, %v3521_v15  ;;  %v778_v46 = vadd.f32 %v3407_v25, %v577_v6  ;;  %v1045_v57 = vadd.f32 %v3427_v17, %v897_v3  ;;  %v1047_v25 = vadd.f32 %v3431_v9, %v899_v1  ;;  %v4299_v1 = vld [vmem:[#allocation7_spill] sm:$0xff] }
 0x139   : > { %4293 = vst [vmem:[#allocation15_spill] sm:$0xff] %v3513_v35  ;;  %v771_v14 = vadd.f32 %v3403_v22, %v566_v60  ;;  %v913_v22 = vadd.f32 %v3425_v58, %v3386_v27  ;;  %v915_v60 = vadd.f32 %v3429_v51, %v3390_v52  ;;  %v1056_v27 = vadd.f32 %v3439_v53, %v907_v59 }
 0x13a   : > { %v1244_v42 = vpop.f32.mrf.mxu0  ;;  %v3525_v7 = vpop.f32.mrf.mxu1  ;;  %v929_v3 = vadd.f32 %v3441_v23, %v3401_v2  ;;  %v937_v17 = vadd.f32 %v3449_v32, %v776_v8  ;;  %v3564_v51 = vadd.f32 %v1346_v16, %v1210_v49  ;;  %v939_v12 = vadd.f32 %v3453_v29, %v778_v46  ;;  %v4298_v8 = vld [vmem:[#allocation6_spill] sm:$0xff]  ;;  %v4300_v59 = vld [vmem:[#allocation8_spill] sm:$0xff] }
 0x13b   : > { %v1063_v52 = vadd.f32 %v3443_v31, %v913_v22  ;;  %v931_v58 = vadd.f32 %v3445_v55, %v771_v14  ;;  %v1065_v62 = vadd.f32 %v3447_v19, %v915_v60  ;;  %v1074_v9 = vadd.f32 %v3455_v38, %v923_v30  ;;  %v4294_v55 = vld [vmem:[#allocation2_spill] sm:$0xff] }
 0x13c   : > { %v1246_v54 = vpop.f32.mrf.mxu0  ;;  %v1369_v35 = vpop.f32.mrf.mxu1  ;;  %v1081_v2 = vadd.f32 %v3457_v39, %v929_v3  ;;  %v1090_v53 = vadd.f32 %v3467_v61, %v937_v17  ;;  %v1217_v23 = vadd.f32 %v3469_v10, %v3419_v56  ;;  %v1092_v31 = vadd.f32 %v3471_v63, %v939_v12  ;;  %v4295_v39 = vld [vmem:[#allocation4_spill] sm:$0xff]  ;;  %v4296_v47 = vld [vmem:[#allocation10_spill] sm:$0xff]  ;;  %v4301_v3 = vld [vmem:[#allocation9_spill] sm:$0xff] }
 0x13d   : > { %v1083_v28 = vadd.f32 %v3462_v45, %v931_v58  ;;  %v1219_v19 = vadd.f32 %v4294_v55, %v3423_v50  ;;  %v1245_v32 = vadd.f32 %v1244_v42, %v1072_v4  ;;  %v1247_v33 = vadd.f32 %v1246_v54, %v1074_v9 }
 0x13e   : > { %v1251_v34 = vpop.f32.mrf.mxu0  ;;  %v1374_v24 = vpop.f32.mrf.mxu1  ;;  %v1224_v37 = vadd.f32 %v4295_v39, %v1045_v57  ;;  %v1400_v45 = vmax.f32 %v3564_v51, 0.0  ;;  %v1240_v16 = vadd.f32 %v1239_v43, %v1065_v62  ;;  %v1233_v61 = vadd.f32 %v4296_v47, %v1056_v27  ;;  %v4297_v6 = vld [vmem:[#allocation13_spill] sm:$0xff] }
 0x13f   : > { %v1252_v36 = vadd.f32 %v1251_v34, %v1081_v2  ;;  %v1238_v14 = vadd.f32 %v4297_v6, %v1063_v52  ;;  %v1226_v46 = vadd.f32 %v4298_v8, %v1047_v25  ;;  %v3585_v11 = vadd.f32 %v4299_v1, %v1212_v48 }
 0x140   : > { %v1253_v44 = vpop.f32.mrf.mxu0  ;;  %v1376_v5 = vpop.f32.mrf.mxu1  ;;  %v1231_v22 = vadd.f32 %v4300_v59, %v1054_v20  ;;  %v1370_v57 = vadd.f32 %v1369_v35, %v1233_v61  ;;  %v3589_v52 = vadd.f32 %v4301_v3, %v1217_v23  ;;  %v4302_v25 = vld [vmem:[#allocation15_spill] sm:$0xff] }
 0x141   : > { %v1254_v50 = vadd.f32 %v1253_v44, %v1083_v28  ;;  %v1377_v42 = vadd.f32 %v1376_v5, %v1240_v16  ;;  %v1375_v43 = vadd.f32 %v1374_v24, %v1238_v14  ;;  %v1363_v44 = vadd.f32 %v4302_v25, %v1226_v46  ;;  %v4303_v24 = vld [vmem:[#allocation14_spill] sm:$0xff] }
 0x142   : > { %v1381_v13 = vpop.f32.mrf.mxu1  ;;  %v1258_v29 = vpop.f32.mrf.mxu0  ;;  %v1368_v5 = vadd.f32 %v3525_v7, %v1231_v22  ;;  %v1361_v12 = vadd.f32 %v4303_v24, %v1224_v37  ;;  %v1407_v9 = vmax.f32 %v1370_v57, 0.0  ;;  %v4304_v7 = vld [vmem:[#allocation11_spill] sm:$0xff]  ;;  %v1401_v22 = vmax.f32 %v3585_v11, 0.0 }
 0x143   : > { %v1382_v56 = vadd.f32 %v1381_v13, %v1245_v32  ;;  %v1259_v18 = vadd.f32 %v1258_v29, %v1090_v53  ;;  %v1409_v17 = vmax.f32 %v1377_v42, 0.0  ;;  %v1408_v2 = vmax.f32 %v1375_v43, 0.0 }
 0x144   : > { %v1383_v38 = vpop.f32.mrf.mxu1  ;;  %v1260_v60 = vpop.f32.mrf.mxu0  ;;  %v1356_v32 = vadd.f32 %v4304_v7, %v1219_v19  ;;  %v1406_v29 = vmax.f32 %v1368_v5, 0.0  ;;  %v1404_v47 = vmax.f32 %v1361_v12, 0.0  ;;  %v3616_v19 = vand.u32 4294901760, %v1407_v9 }
 0x145   : > { %v1384_v10 = vadd.f32 %v1383_v38, %v1247_v33  ;;  %v1410_v58 = vmax.f32 %v1382_v56, 0.0  ;;  %v1261_v4 = vadd.f32 %v1260_v60, %v1092_v31  ;;  %v1405_v33 = vmax.f32 %v1363_v44, 0.0 }
 0x146   : > { %v1388_v63 = vpop.f32.mrf.mxu1  ;;  %v3603_v38 = vand.u32 4294901760, %v1409_v17  ;;  %v3611_v61 = vand.u32 4294901760, %v1408_v2  ;;  %v3628_v46 = vand.u32 4294901760, %v1406_v29 }
 0x147   : > { %v1389_v54 = vadd.f32 %v1388_v63, %v1252_v36  ;;  %v1411_v49 = vmax.f32 %v1384_v10, 0.0  ;;  %v3601_v31 = vand.u32 4294901760, %v1410_v58  ;;  %v1402_v36 = vmax.f32 %v3589_v52, 0.0 }
 0x148   : > { %v1390_v34 = vpop.f32.mrf.mxu1  ;;  %v1403_v63 = vmax.f32 %v1356_v32, 0.0  ;;  %v3626_v8 = vand.u32 4294901760, %v1405_v33  ;;  %v3634_v42 = vsub.f32 %v1409_v17, %v3603_v38  ;;  %v3646_v43 = vsub.f32 %v1408_v2, %v3611_v61  ;;  %v1419_v2 = vld [vmem:[%s4224_s3 + $0x18] sm:$0xff] }
 0x149   : > { %v1412_v30 = vmax.f32 %v1389_v54, 0.0  ;;  %v1391_v27 = vadd.f32 %v1390_v34, %v1254_v50  ;;  %v3596_v48 = vand.u32 4294901760, %v1411_v49  ;;  %v3631_v50 = vsub.f32 %v1410_v58, %v3601_v31 }
 0x14a   : > { %v1395_v62 = vpop.f32.mrf.mxu1  ;;  %v3643_v57 = vand.u32 4294901760, %v1402_v36  ;;  %v3650_v34 = vand.u32 4294901760, %v1404_v47  ;;  %v3669_v25 = vsub.f32 %v1405_v33, %v3626_v8  ;;  %v1719_v58 = vand.u32 4294901760, %v3634_v42 }
 0x14b   : > { %v1413_v20 = vmax.f32 %v1391_v27, 0.0  ;;  %v1396_v35 = vadd.f32 %v1395_v62, %v1259_v18  ;;  %v3594_v13 = vand.u32 4294901760, %v1412_v30  ;;  %v3619_v14 = vsub.f32 %v1411_v49, %v3596_v48 }
 0x14c   : > { %v1397_v28 = vpop.f32.mrf.mxu1  ;;  %v3653_v18 = vsub.f32 %v1407_v9, %v3616_v19  ;;  %v3661_v27 = vsub.f32 %v1406_v29, %v3628_v46  ;;  %v1713_v3 = vand.u32 4294901760, %v3631_v50  ;;  %v3681_v62 = vand.u32 4294901760, %v1400_v45 }
 0x14d   : > { %v3598_v53 = vand.u32 4294901760, %v1413_v20  ;;  %v1414_v23 = vmax.f32 %v1396_v35, 0.0  ;;  %v1398_v55 = vadd.f32 %v1397_v28, %v1261_v4  ;;  %v3614_v6 = vsub.f32 %v1412_v30, %v3594_v13 }
 0x14e   : > { %v1707_v11 = vand.u32 4294901760, %v3619_v14  ;;  %v3658_v30 = vand.u32 4294901760, %v1403_v63  ;;  %v3683_v17 = vand.u32 4294901760, %v1401_v22  ;;  %v4256_v4 = vand.u32 4294901760, %v3646_v43 }
 0x14f   : > { %v3606_v39 = vsub.f32 %v1413_v20, %v3598_v53  ;;  %v3608_v37 = vand.u32 4294901760, %v1414_v23  ;;  %v1415_v16 = vmax.f32 %v1398_v55, 0.0  ;;  %v1701_v60 = vand.u32 4294901760, %v3614_v6 }
 0x150   : > { %v3691_v35 = vsub.f32 %v1404_v47, %v3650_v34  ;;  %v1708_v12 = vsub.f32 %v3619_v14, %v1707_v11  ;;  %v4255_v9 = vand.u32 4294901760, %v3653_v18  ;;  %v3702_v28 = vsub.f32 %v1403_v63, %v3658_v30 }
 0x151   : > { %v3622_v56 = vsub.f32 %v1414_v23, %v3608_v37  ;;  %v3624_v10 = vand.u32 4294901760, %v1415_v16  ;;  %v1695_v59 = vand.u32 4294901760, %v3606_v39  ;;  %v1702_v20 = vsub.f32 %v3614_v6, %v1701_v60 }
 0x152   : > { %v4253_v23 = vand.u32 4294901760, %v3661_v27  ;;  %v1714_v55 = vsub.f32 %v3631_v50, %v1713_v3  ;;  %v3710_v32 = vsub.f32 %v1402_v36, %v3643_v57  ;;  %v1720_v29 = vsub.f32 %v3634_v42, %v1719_v58 }
 0x153   : > { %v1689_v54 = vand.u32 4294901760, %v3622_v56  ;;  %v3638_v1 = vsub.f32 %v1415_v16, %v3624_v10  ;;  %1513 = vmatprep.subr.mxu0 %v3624_v10  ;;  %v1696_v5 = vsub.f32 %v3606_v39, %v1695_v59  ;;  %v4254_v16 = vand.u32 4294901760, %v3669_v25 }
 0x154   : > { %1515 = vmatpush1.msra.mxu0 %v3608_v37  ;;  %v3718_v47 = vsub.f32 %v1401_v22, %v3683_v17  ;;  %v1726_v63 = vsub.f32 %v3646_v43, %v4256_v4  ;;  %v1703_v36 = vand.u32 4294901760, %v1702_v20  ;;  %v1732_v22 = vsub.f32 %v3653_v18, %v4255_v9 }
 0x155   : > { %1517 = vmatprep.subr.mxu0 %v3598_v53  ;;  %v1683_v49 = vand.u32 4294901760, %v3638_v1  ;;  %v1690_v52 = vsub.f32 %v3622_v56, %v1689_v54  ;;  %v1697_v33 = vand.u32 4294901760, %v1696_v5  ;;  %v1709_v5 = vand.u32 4294901760, %v1708_v12 }
 0x156   : > { %1519 = vmatpush1.msra.mxu0 %v3594_v13  ;;  %v3737_v20 = vsub.f32 %v1400_v45, %v3681_v62  ;;  %v1715_v12 = vand.u32 4294901760, %v1714_v55  ;;  %v1744_v51 = vsub.f32 %v3669_v25, %v4254_v16  ;;  %v1727_v55 = vand.u32 4294901760, %v1726_v63 }
 0x157   : > { %1521 = vmatprep.subr.mxu0 %v3596_v48  ;;  %v1684_v44 = vsub.f32 %v3638_v1, %v1683_v49  ;;  %v1691_v7 = vand.u32 4294901760, %v1690_v52  ;;  %v1482_v52 = vsel %vm385_vm0, %v1419_v2, 0  ;;  %v1738_v2 = vsub.f32 %v3661_v27, %v4253_v23  ;;  %v1420_v23 = vld [vmem:[%s4224_s3 + $0x20] sm:$0xff] }
 0x158   : > { %1523 = vmatpush1.msra.mxu0 %v3601_v31  ;;  %v3749_v45 = vand.u32 4294901760, %v1482_v52  ;;  %v1733_v16 = vand.u32 4294901760, %v1732_v22  ;;  %v4260_v4 = vand.u32 4294901760, %v3737_v20  ;;  %v1745_v22 = vand.u32 4294901760, %v1744_v51 }
 0x159   : > { %1525 = vmatprep.subr.mxu0 %v3603_v38  ;;  %v1685_v24 = vand.u32 4294901760, %v1684_v44  ;;  %v4258_v44 = vand.u32 4294901760, %v3691_v35  ;;  %v1739_v63 = vand.u32 4294901760, %v1738_v2  ;;  %v1421_v2 = vld [vmem:[%s4224_s3 + $0x28] sm:$0xff]  ;;  %v4305_v51 = vmov 0.0  }
 0x15a   : > { %1527 = vmatpush1.msra.mxu0 %v3611_v61 }
 0x15b   : > { %1529 = vmatprep.subr.mxu0 %v3616_v19  ;;  %1686 = vmatprep.subr.mxu1 %v1685_v24  ;;  %v3732_v24 = vsub.f32 %v3521_v15, %v3535_v0  ;;  %v1721_v15 = vand.u32 4294901760, %v1720_v29  ;;  %v4261_v29 = vand.u32 4294901760, %v3718_v47 }
 0x15c   : > { %1531 = vmatpush1.msra.mxu0 %v3628_v46  ;;  %1692 = vmatpush1.msra.mxu1 %v1691_v7  ;;  %v1755_v7 = vand.u32 4294901760, %v3702_v28 }
 0x15d   : > { %1533 = vmatprep.subr.mxu0 %v3626_v8  ;;  %1698 = vmatprep.subr.mxu1 %v1697_v33  ;;  %v1761_v33 = vand.u32 4294901760, %v3710_v32  ;;  %v4259_v9 = vand.u32 4294901760, %v3732_v24 }
 0x15e   : > { %1535 = vmatpush1.msra.mxu0 %v3650_v34  ;;  %1704 = vmatpush1.msra.mxu1 %v1703_v36  ;;  %v1591_v36 = vsub.f32 %v3516_v40, %v4257_v26  ;;  %v1485_v26 = vsel %vm385_vm0, %v1420_v23, 0 }
 0x15f   : > { %1537 = vmatprep.subr.mxu0 %v3658_v30  ;;  %1710 = vmatprep.subr.mxu1 %v1709_v5  ;;  %v1750_v5 = vsub.f32 %v3691_v35, %v4258_v44  ;;  %v1762_v44 = vsub.f32 %v3710_v32, %v1761_v33  ;;  %v1602_v41 = vsub.f32 %v3732_v24, %v4259_v9  ;;  %v1422_v9 = vld [vmem:[%s4224_s3 + $0x30] sm:$0xff] }
 0x160   : > { %1539 = vmatpush1.msra.mxu0 %v3643_v57  ;;  %1716 = vmatpush1.msra.mxu1 %v1715_v12  ;;  %v1756_v12 = vsub.f32 %v3702_v28, %v1755_v7  ;;  %v1592_v23 = vand.u32 4294901760, %v1591_v36 }
 0x161   : > { %1541 = vmatprep.subr.mxu0 %v3683_v17  ;;  %1722 = vmatprep.subr.mxu1 %v1721_v15  ;;  %v3776_v15 = vsub.f32 %v1482_v52, %v3749_v45  ;;  %v1774_v52 = vsub.f32 %v3737_v20, %v4260_v4 }
 0x162   : > { %1543 = vmatpush1.msra.mxu0 %v3681_v62  ;;  %1728 = vmatpush1.msra.mxu1 %v1727_v55  ;;  %v1768_v55 = vsub.f32 %v3718_v47, %v4261_v29  ;;  %v1757_v36 = vand.u32 4294901760, %v1756_v12  ;;  %v1603_v29 = vand.u32 4294901760, %v1602_v41 }
 0x163   : > { %1582 = vmatmul.mubr.f32.vlgmr.msra.gmra.mxu0 %v1581_v21  ;;  %1734 = vmatprep.subr.mxu1 %v1733_v16  ;;  %v1751_v21 = vand.u32 4294901760, %v1750_v5  ;;  %v3789_v16 = vand.u32 4294901760, %v1485_v26  ;;  %v1763_v5 = vand.u32 4294901760, %v1762_v44  ;;  %v1775_v44 = vand.u32 4294901760, %v1774_v52 }
 0x164   : > { %1884 = vmatprep.subr.mxu0 %v3638_v1  ;;  %1740 = vmatpush1.msra.mxu1 %v1739_v63  ;;  %v1488_v63 = vsel %vm385_vm0, %v1421_v2, 0  ;;  %v1769_v4 = vand.u32 4294901760, %v1768_v55 }
 0x165   : > { %1887 = vmatpush1.msra.mxu0 %v3622_v56  ;;  %1746 = vmatprep.subr.mxu1 %v1745_v22  ;;  %v4263_v22 = vand.u32 4294901760, %v3776_v15  ;;  %v3804_v12 = vsub.f32 %v1485_v26, %v3789_v16  ;;  %v3806_v2 = vand.u32 4294901760, %v1488_v63  ;;  %v1423_v26 = vld [vmem:[%s4224_s3 + $0x38] sm:$0xff]  ;;  %v4312_v56 = vand.u32 4294901760, %v3661_v27 }
 0x166   : > { %1890 = vmatprep.subr.mxu0 %v3606_v39  ;;  %1587 = vmatprep.mubr.f32.mxu0 %v4305_v51  ;;  %v1494_v52 = vsel %vm385_vm0, %v1423_v26, 0  ;;  %v4309_v39 = vand.u32 4294901760, %v3646_v43 }
 0x167   : > { %1752 = vmatpush1.msra.mxu1 %v1751_v21  ;;  %1893 = vmatpush1.msra.mxu0 %v3614_v6  ;;  %v1491_v21 = vsel %vm385_vm0, %v1422_v9, 0  ;;  %v4262_v9 = vand.u32 4294901760, %v3804_v12  ;;  %v3822_v55 = vsub.f32 %v1488_v63, %v3806_v2  ;;  %v4310_v6 = vand.u32 4294901760, %v3653_v18 }
 0x168   : > { %1593 = vmatmul.mubr.f32.gmra.mxu0 %v1592_v23  ;;  %1758 = vmatprep.subr.mxu1 %v1757_v36  ;;  %v1613_v23 = vsub.f32 %v3776_v15, %v4263_v22  ;;  %v3824_v41 = vand.u32 4294901760, %v1491_v21 }
 0x169   : > { %1896 = vmatprep.subr.mxu0 %v3619_v14  ;;  %1764 = vmatpush1.msra.mxu1 %v1763_v5  ;;  %v1624_v36 = vsub.f32 %v3804_v12, %v4262_v9  ;;  %v1634_v63 = vand.u32 4294901760, %v3822_v55 }
 0x16a   : > { %1899 = vmatpush1.msra.mxu0 %v3631_v50  ;;  %1770 = vmatprep.subr.mxu1 %v1769_v4  ;;  %v4306_v4 = vld [vmem:[#allocation3_spill] sm:$0xff]  ;;  %v3840_v5 = vsub.f32 %v1491_v21, %v3824_v41  ;;  %v4314_v50 = vand.u32 4294901760, %v3691_v35 }
 0x16b   : > { %1902 = vmatprep.subr.mxu0 %v3634_v42  ;;  %1598 = vmatprep.mubr.f32.mxu0 %v4305_v51  ;;  %v1625_v26 = vand.u32 4294901760, %v1624_v36  ;;  %v1635_v21 = vsub.f32 %v3822_v55, %v1634_v63 }
 0x16c   : > { %1776 = vmatpush1.msra.mxu1 %v1775_v44  ;;  %1905 = vmatpush1.msra.mxu0 %v3646_v43  ;;  %v3842_v44 = vand.u32 4294901760, %v1494_v52  ;;  %v1645_v9 = vand.u32 4294901760, %v3840_v5 }
 0x16d   : > { %1604 = vmatmul.mubr.f32.gmra.mxu0 %v1603_v29  ;;  %1811 = vmatmul.mubr.f32.vlgmr.msra.gmra.mxu1 %v4306_v4  ;;  %v1614_v29 = vand.u32 4294901760, %v1613_v23  ;;  %v4307_v23 = vld [vmem:[#allocation12_spill] sm:$0xff] }
 0x16e   : > { %1908 = vmatprep.subr.mxu0 %v3653_v18  ;;  %2044 = vmatprep.subr.mxu1 %v3624_v10  ;;  %v3856_v22 = vsub.f32 %v1494_v52, %v3842_v44  ;;  %v1646_v52 = vsub.f32 %v3840_v5, %v1645_v9 }
 0x16f   : > { %1911 = vmatpush1.msra.mxu0 %v3661_v27  ;;  %2046 = vmatpush1.msra.mxu1 %v3608_v37 }
 0x170   : > { %1914 = vmatprep.subr.mxu0 %v3669_v25  ;;  %2048 = vmatprep.subr.mxu1 %v3598_v53  ;;  %v1656_v36 = vand.u32 4294901760, %v3856_v22 }
 0x171   : > { %1609 = vmatprep.mubr.f32.mxu0 %v4305_v51  ;;  %1816 = vmatprep.mubr.f32.mxu1 %v4305_v51 }
 0x172   : > { %1917 = vmatpush1.msra.mxu0 %v3691_v35  ;;  %2050 = vmatpush1.msra.mxu1 %v3594_v13 }
 0x173   : > { %1615 = vmatmul.mubr.f32.gmra.mxu0 %v1614_v29  ;;  %1818 = vmatmul.mubr.f32.gmra.mxu1 %v4307_v23  ;;  %v1636_v29 = vand.u32 4294901760, %v1635_v21  ;;  %v1657_v21 = vsub.f32 %v3856_v22, %v1656_v36 }
 0x174   : > { %1920 = vmatprep.subr.mxu0 %v3702_v28  ;;  %2052 = vmatprep.subr.mxu1 %v3596_v48 }
 0x175   : > { %1923 = vmatpush1.msra.mxu0 %v3710_v32  ;;  %2054 = vmatpush1.msra.mxu1 %v3601_v31  ;;  %v1658_v1 = vand.u32 4294901760, %v1657_v21 }
 0x176   : > { %1926 = vmatprep.subr.mxu0 %v3718_v47  ;;  %2056 = vmatprep.subr.mxu1 %v3603_v38 }
 0x177   : > { %1620 = vmatprep.mubr.f32.mxu0 %v4305_v51  ;;  %1823 = vmatprep.mubr.f32.mxu1 %v4305_v51 }
 0x178   : > { %1929 = vmatpush1.msra.mxu0 %v3737_v20  ;;  %2058 = vmatpush1.msra.mxu1 %v3611_v61 }
 0x179   : > { %1626 = vmatmul.mubr.f32.gmra.mxu0 %v1625_v26  ;;  %1825 = vmatmul.mubr.f32.gmra.mxu1 %v3535_v0  ;;  %v1647_v26 = vand.u32 4294901760, %v1646_v52 }
 0x17a   : > { %2060 = vmatprep.subr.mxu1 %v3616_v19  ;;  %2199 = vmatprep.subr.mxu0 %v1683_v49  ;;  %v4308_v49 = vld [vmem:[#allocation5_spill] sm:$0xff] }
 0x17b   : > { %2062 = vmatpush1.msra.mxu1 %v3628_v46  ;;  %1631 = vmatprep.mubr.f32.mxu0 %v4305_v51  ;;  %v4311_v14 = vand.u32 4294901760, %v4308_v49 }
 0x17c   : > { %2064 = vmatprep.subr.mxu1 %v3626_v8  ;;  %1830 = vmatprep.mubr.f32.mxu1 %v4305_v51 }
 0x17d   : > { %2066 = vmatpush1.msra.mxu1 %v3650_v34  ;;  %1637 = vmatmul.mubr.f32.gmra.mxu0 %v1636_v29 }
 0x17e   : > { %1832 = vmatmul.mubr.f32.gmra.mxu1 %v3749_v45  ;;  %2068 = vmatprep.subr.mxu1 %v3658_v30 }
 0x17f   : > { %2070 = vmatpush1.msra.mxu1 %v3643_v57  ;;  %1642 = vmatprep.mubr.f32.mxu0 %v4305_v51 }
 0x180   : > { %2072 = vmatprep.subr.mxu1 %v3683_v17  ;;  %1837 = vmatprep.mubr.f32.mxu1 %v4305_v51 }
 0x181   : > { %2074 = vmatpush1.msra.mxu1 %v3681_v62  ;;  %1648 = vmatmul.mubr.f32.gmra.mxu0 %v1647_v26 }
 0x182   : > { %1839 = vmatmul.mubr.f32.gmra.mxu1 %v3789_v16  ;;  %2366 = vmatprep.subr.mxu1 %v3624_v10  ;;  %v4313_v10 = vand.u32 4294901760, %v3669_v25 }
 0x183   : > { %1653 = vmatprep.mubr.f32.mxu0 %v4305_v51  ;;  %1844 = vmatprep.mubr.f32.mxu1 %v4305_v51 }
 0x185   : > { %1659 = vmatmul.mubr.f32.gmra.mxu0 %v1658_v1 }
 0x186   : > { %1846 = vmatmul.mubr.f32.gmra.mxu1 %v3806_v2  ;;  %1962 = vmatprep.mubr.f32.mxu0 %v4305_v51 }
 0x187   : > { %1851 = vmatprep.mubr.f32.mxu1 %v4305_v51 }
 0x189   : > { %1965 = vmatmul.mubr.f32.vlgmr.msra.gmra.mxu0 %v4308_v49 }
 0x18a   : > { %1853 = vmatmul.mubr.f32.gmra.mxu1 %v3824_v41  ;;  %2203 = vmatpush1.msra.mxu0 %v1689_v54 }
 0x18b   : > { %2207 = vmatprep.subr.mxu0 %v1695_v59  ;;  %1858 = vmatprep.mubr.f32.mxu1 %v4305_v51 }
 0x18c   : > { %2211 = vmatpush1.msra.mxu0 %v1701_v60  ;;  %1970 = vmatprep.mubr.f32.mxu0 %v4305_v51 }
 0x18d   : > { %2215 = vmatprep.subr.mxu0 %v1707_v11  ;;  %1973 = vmatmul.mubr.f32.gmra.mxu0 %v3516_v40 }
 0x18e   : > { %1860 = vmatmul.mubr.f32.gmra.mxu1 %v3842_v44  ;;  %2219 = vmatpush1.msra.mxu0 %v1713_v3 }
 0x18f   : > { %2223 = vmatprep.subr.mxu0 %v1719_v58  ;;  %1978 = vmatprep.mubr.f32.mxu0 %v4305_v51 }
 0x190   : > { %2227 = vmatpush1.msra.mxu0 %v4309_v39  ;;  %2107 = vmatprep.mubr.f32.mxu1 %v4305_v51 }
 0x191   : > { %2231 = vmatprep.subr.mxu0 %v4310_v6  ;;  %1981 = vmatmul.mubr.f32.gmra.mxu0 %v3732_v24 }
 0x192   : > { %2111 = vmatmul.mubr.f32.vlgmr.msra.gmra.mxu1 %v4311_v14  ;;  %2235 = vmatpush1.msra.mxu0 %v4312_v56 }
 0x193   : > { %2368 = vmatpush1.msra.mxu1 %v3608_v37  ;;  %2239 = vmatprep.subr.mxu0 %v4313_v10  ;;  %v4315_v37 = vand.u32 4294901760, %v3516_v40  ;;  %v4318_v40 = vand.u32 4294901760, %v3732_v24 }
 0x194   : > { %2370 = vmatprep.subr.mxu1 %v3598_v53  ;;  %2243 = vmatpush1.msra.mxu0 %v4314_v50  ;;  %v4317_v53 = vand.u32 4294901760, %v3737_v20 }
 0x195   : > { %2372 = vmatpush1.msra.mxu1 %v3594_v13  ;;  %1986 = vmatprep.mubr.f32.mxu0 %v4305_v51  ;;  %v4316_v13 = vand.u32 4294901760, %v3718_v47 }
 0x196   : > { %2116 = vmatprep.mubr.f32.mxu1 %v4305_v51  ;;  %2247 = vmatprep.subr.mxu0 %v1755_v7 }
 0x197   : > { %2374 = vmatprep.subr.mxu1 %v3596_v48  ;;  %1989 = vmatmul.mubr.f32.gmra.mxu0 %v3776_v15  ;;  %v4319_v48 = vand.u32 4294901760, %v3776_v15 }
 0x198   : > { %2120 = vmatmul.mubr.f32.gmra.mxu1 %v4315_v37  ;;  %2251 = vmatpush1.msra.mxu0 %v1761_v33 }
 0x199   : > { %2376 = vmatpush1.msra.mxu1 %v3601_v31  ;;  %2255 = vmatprep.subr.mxu0 %v4316_v13  ;;  %v4320_v31 = vand.u32 4294901760, %v3804_v12  ;;  %v1435_v13 = vpop.permute.xlu0 %1434 }
 0x19a   : > { %2378 = vmatprep.subr.mxu1 %v3603_v38  ;;  %2259 = vmatpush1.msra.mxu0 %v4317_v53 }
 0x19b   : > { %2380 = vmatpush1.msra.mxu1 %v3611_v61  ;;  %1994 = vmatprep.mubr.f32.mxu0 %v4305_v51 }
 0x19c   : > { %2125 = vmatprep.mubr.f32.mxu1 %v4305_v51  ;;  %2382 = vmatprep.subr.mxu1 %v3616_v19 }
 0x19d   : > { %1997 = vmatmul.mubr.f32.gmra.mxu0 %v3804_v12  ;;  %2129 = vmatmul.mubr.f32.gmra.mxu1 %v4318_v40 }
 0x19e   : > { %2384 = vmatpush1.msra.mxu1 %v3628_v46  ;;  %2002 = vmatprep.mubr.f32.mxu0 %v4305_v51 }
 0x19f   : > { %2386 = vmatprep.subr.mxu1 %v3626_v8  ;;  %2134 = vmatprep.mubr.f32.mxu1 %v4305_v51 }
 0x1a0   : > { %2388 = vmatpush1.msra.mxu1 %v3650_v34 }
 0x1a1   : > { %2390 = vmatprep.subr.mxu1 %v3658_v30  ;;  %2005 = vmatmul.mubr.f32.gmra.mxu0 %v3822_v55 }
 0x1a2   : > { %2138 = vmatmul.mubr.f32.gmra.mxu1 %v4319_v48  ;;  %2010 = vmatprep.mubr.f32.mxu0 %v4305_v51 }
 0x1a3   : > { %2392 = vmatpush1.msra.mxu1 %v3643_v57  ;;  %2143 = vmatprep.mubr.f32.mxu1 %v4305_v51 }
 0x1a4   : > { %2394 = vmatprep.subr.mxu1 %v3683_v17 }
 0x1a5   : > { %2396 = vmatpush1.msra.mxu1 %v3681_v62  ;;  %2013 = vmatmul.mubr.f32.gmra.mxu0 %v3840_v5 }
 0x1a6   : > { %2147 = vmatmul.mubr.f32.gmra.mxu1 %v4320_v31  ;;  %2018 = vmatprep.mubr.f32.mxu0 %v4305_v51 }
 0x1a7   : > { %2152 = vmatprep.mubr.f32.mxu1 %v4305_v51 }
 0x1a9   : > { %2021 = vmatmul.mubr.f32.gmra.mxu0 %v3856_v22 }
 0x1aa   : > { %2156 = vmatmul.mubr.f32.gmra.mxu1 %v1634_v63  ;;  %2292 = vmatprep.mubr.f32.mxu0 %v4305_v51 }
 0x1ab   : > { %2161 = vmatprep.mubr.f32.mxu1 %v4305_v51 }
 0x1ad   : > { %2294 = vmatmul.mubr.f32.vlgmr.msra.gmra.mxu0 %v4306_v4 }
 0x1ae   : > { %2165 = vmatmul.mubr.f32.gmra.mxu1 %v1645_v9  ;;  %2299 = vmatprep.mubr.f32.mxu0 %v4305_v51 }
 0x1af   : > { %2170 = vmatprep.mubr.f32.mxu1 %v4305_v51 }
 0x1b1   : > { %2301 = vmatmul.mubr.f32.gmra.mxu0 %v4307_v23 }
 0x1b2   : > { %2174 = vmatmul.mubr.f32.gmra.mxu1 %v1656_v36  ;;  %2306 = vmatprep.mubr.f32.mxu0 %v4305_v51 }
 0x1b3   : > { %2429 = vmatprep.mubr.f32.mxu1 %v4305_v51 }
 0x1b5   : > { %2308 = vmatmul.mubr.f32.gmra.mxu0 %v3535_v0 }
 0x1b6   : > { %2431 = vmatmul.mubr.f32.vlgmr.msra.gmra.mxu1 %v4306_v4  ;;  %2313 = vmatprep.mubr.f32.mxu0 %v4305_v51 }
 0x1b7   : > { %2436 = vmatprep.mubr.f32.mxu1 %v4305_v51 }
 0x1b9   : > { %2315 = vmatmul.mubr.f32.gmra.mxu0 %v3749_v45 }
 0x1ba   : > { %2438 = vmatmul.mubr.f32.gmra.mxu1 %v4307_v23  ;;  %2320 = vmatprep.mubr.f32.mxu0 %v4305_v51 }
 0x1bb   : > { %2443 = vmatprep.mubr.f32.mxu1 %v4305_v51 }
 0x1bd   : > { %2322 = vmatmul.mubr.f32.gmra.mxu0 %v3789_v16 }
 0x1be   : > { %2445 = vmatmul.mubr.f32.gmra.mxu1 %v3535_v0  ;;  %2327 = vmatprep.mubr.f32.mxu0 %v4305_v51 }
 0x1bf   : > { %2450 = vmatprep.mubr.f32.mxu1 %v4305_v51 }
 0x1c1   : > { %2329 = vmatmul.mubr.f32.gmra.mxu0 %v3806_v2 }
 0x1c2   : > { %2452 = vmatmul.mubr.f32.gmra.mxu1 %v3749_v45  ;;  %2334 = vmatprep.mubr.f32.mxu0 %v4305_v51 }
 0x1c3   : > { %2457 = vmatprep.mubr.f32.mxu1 %v4305_v51 }
 0x1c5   : > { %2336 = vmatmul.mubr.f32.gmra.mxu0 %v3824_v41 }
 0x1c6   : > { %2459 = vmatmul.mubr.f32.gmra.mxu1 %v3789_v16  ;;  %2341 = vmatprep.mubr.f32.mxu0 %v4305_v51 }
 0x1c7   : > { %2464 = vmatprep.mubr.f32.mxu1 %v4305_v51 }
 0x1c9   : > { %2343 = vmatmul.mubr.f32.gmra.mxu0 %v3842_v44 }
 0x1ca   : > { %2466 = vmatmul.mubr.f32.gmra.mxu1 %v3806_v2 }
 0x1cb   : > { %2471 = vmatprep.mubr.f32.mxu1 %v4305_v51 }
 0x1ce   : > { %2473 = vmatmul.mubr.f32.gmra.mxu1 %v3824_v41 }
 0x1cf   : > { %2478 = vmatprep.mubr.f32.mxu1 %v4305_v51 }
 0x1d2   : > { %2480 = vmatmul.mubr.f32.gmra.mxu1 %v3842_v44 }
 0x223   : > { %v1583_v0 = vpop.f32.mrf.mxu0 }
 0x224   : > { %v1584_v40 = vadd.f32 %v1583_v0, %v1435_v13  ;;  %v1445_v0 = vpop.permute.xlu0 %1444 }
 0x225   : > { %v4013_v38 = vpop.f32.mrf.mxu0 }
 0x228   : > { %v4015_v61 = vpop.f32.mrf.mxu0 }
 0x22a   : > { %v4017_v19 = vpop.f32.mrf.mxu0 }
 0x22d   : > { %v4019_v8 = vpop.f32.mrf.mxu0  ;;  %v1812_v46 = vpop.f32.mrf.mxu1 }
 0x22f   : > { %v4021_v42 = vpop.f32.mrf.mxu0  ;;  %v4023_v54 = vpop.f32.mrf.mxu1 }
 0x233   : > { %v4025_v59 = vpop.f32.mrf.mxu0  ;;  %v4027_v57 = vpop.f32.mrf.mxu1 }
 0x235   : > { %v4029_v43 = vpop.f32.mrf.mxu0  ;;  %v4031_v60 = vpop.f32.mrf.mxu1 }
 0x239   : > { %v4033_v34 = vpop.f32.mrf.mxu0  ;;  %v4035_v18 = vpop.f32.mrf.mxu1 }
 0x23b   : > { %v4037_v11 = vpop.f32.mrf.mxu0  ;;  %v4039_v30 = vpop.f32.mrf.mxu1 }
 0x23d   : > { %v4041_v27 = vpop.f32.mrf.mxu0 }
 0x23e   : > { %v4043_v3 = vpop.f32.mrf.mxu1 }
 0x23f   : > { %v4045_v25 = vpop.f32.mrf.mxu0 }
 0x240   : > { %v4047_v58 = vpop.f32.mrf.mxu1 }
 0x241   : > { %v4049_v62 = vpop.f32.mrf.mxu0 }
 0x242   : > { %v4051_v17 = vpop.f32.mrf.mxu1 }
 0x243   : > { %v4053_v35 = vpop.f32.mrf.mxu0 }
 0x244   : > { %v4055_v28 = vpop.f32.mrf.mxu1 }
 0x245   : > { %v4057_v32 = vpop.f32.mrf.mxu0 }
 0x246   : > { %4321 = vst [vmem:[#allocation2_spill] sm:$0xff] %v4057_v32  ;;  %v4059_v47 = vpop.f32.mrf.mxu1 }
 0x247   : > { %v4061_v24 = vpop.f32.mrf.mxu0 }
 0x248   : > { %4322 = vst [vmem:[#allocation4_spill] sm:$0xff] %v4061_v24  ;;  %v4063_v20 = vpop.f32.mrf.mxu1 }
 0x249   : > { %v1966_v7 = vpop.f32.mrf.mxu0 }
 0x24a   : > { %v4065_v33 = vpop.f32.mrf.mxu1 }
 0x24b   : > { %v1968_v45 = vpop.f32.mrf.mxu0 }
 0x24c   : > { %v4067_v15 = vpop.f32.mrf.mxu1 }
 0x24d   : > { %4323 = vst [vmem:[#allocation10_spill] sm:$0xff] %v4067_v15  ;;  %v1974_v16 = vpop.f32.mrf.mxu0 }
 0x24e   : > { %v4069_v51 = vpop.f32.mrf.mxu1 }
 0x24f   : > { %4324 = vst [vmem:[#allocation13_spill] sm:$0xff] %v4069_v51  ;;  %v1976_v22 = vpop.f32.mrf.mxu0  ;;  %v1586_v51 = vadd.f32 %v4013_v38, %v1435_v13  ;;  %v1606_v13 = vadd.f32 %v4019_v8, %v1445_v0 }
 0x250   : > { %v4071_v12 = vpop.f32.mrf.mxu1 }
 0x251   : > { %4325 = vst [vmem:[#allocation6_spill] sm:$0xff] %v4071_v12  ;;  %v1982_v2 = vpop.f32.mrf.mxu0  ;;  %v1813_v12 = vadd.f32 %v1812_v46, %v1584_v40 }
 0x252   : > { %v2112_v4 = vpop.f32.mrf.mxu1 }
 0x253   : > { %v4073_v9 = vpop.f32.mrf.mxu0  ;;  %v1967_v24 = vadd.f32 %v1966_v7, %v1813_v12  ;;  %v1827_v12 = vadd.f32 %v4035_v18, %v1606_v13 }
 0x254   : > { %v2114_v55 = vpop.f32.mrf.mxu1 }
 0x255   : > { %v2113_v38 = vadd.f32 %v2112_v4, %v1967_v24 }
 0x257   : > { %v4075_v41 = vpop.f32.mrf.mxu0 }
 0x258   : > { %v2121_v63 = vpop.f32.mrf.mxu1 }
 0x259   : > { %v4077_v5 = vpop.f32.mrf.mxu0 }
 0x25a   : > { %v2123_v44 = vpop.f32.mrf.mxu1 }
 0x25d   : > { %v4079_v23 = vpop.f32.mrf.mxu0  ;;  %v2130_v29 = vpop.f32.mrf.mxu1 }
 0x25f   : > { %v4081_v52 = vpop.f32.mrf.mxu0  ;;  %v4083_v36 = vpop.f32.mrf.mxu1 }
 0x261   : > { %v4085_v26 = vpop.f32.mrf.mxu0 }
 0x262   : > { %4326 = vst [vmem:[#allocation7_spill] sm:$0xff] %v4085_v26  ;;  %v4087_v21 = vpop.f32.mrf.mxu1 }
 0x263   : > { %v4089_v1 = vpop.f32.mrf.mxu0 }
 0x264   : > { %v4091_v49 = vpop.f32.mrf.mxu1 }
 0x265   : > { %v4093_v39 = vpop.f32.mrf.mxu0 }
 0x266   : > { %4327 = vst [vmem:[#allocation8_spill] sm:$0xff] %v4093_v39  ;;  %v4095_v6 = vpop.f32.mrf.mxu1 }
 0x267   : > { %v4097_v14 = vpop.f32.mrf.mxu0 }
 0x268   : > { %4328 = vst [vmem:[#allocation9_spill] sm:$0xff] %v4097_v14  ;;  %v4099_v56 = vpop.f32.mrf.mxu1  ;;  %v1440_v14 = vpop.permute.xlu1 %1439 }
 0x269   : > { %v4101_v10 = vpop.f32.mrf.mxu0  ;;  %v1597_v26 = vadd.f32 %v4017_v19, %v1440_v14  ;;  %v1608_v19 = vadd.f32 %v4021_v42, %v1445_v0 }
 0x26a   : > { %4329 = vst [vmem:[#allocation15_spill] sm:$0xff] %v4101_v10  ;;  %v4103_v50 = vpop.f32.mrf.mxu1  ;;  %v1595_v10 = vadd.f32 %v4015_v61, %v1440_v14 }
 0x26b   : > { %4330 = vst [vmem:[#allocation14_spill] sm:$0xff] %v4103_v50  ;;  %v4105_v37 = vpop.f32.mrf.mxu0  ;;  %v1815_v50 = vadd.f32 %v4023_v54, %v1586_v51  ;;  %v1822_v40 = vadd.f32 %v4031_v60, %v1597_v26  ;;  %v1829_v8 = vadd.f32 %v4039_v30, %v1608_v19 }
 0x26c   : > { %4331 = vst [vmem:[#allocation11_spill] sm:$0xff] %v4105_v37  ;;  %v4107_v53 = vpop.f32.mrf.mxu1 }
 0x26d   : > { %4332 = vst [vmem:[#allocation3_spill] sm:$0xff] %v4107_v53  ;;  %v2295_v48 = vpop.f32.mrf.mxu0  ;;  %v1969_v15 = vadd.f32 %v1968_v45, %v1815_v50  ;;  %v1977_v14 = vadd.f32 %v1976_v22, %v1822_v40  ;;  %v1450_v50 = vpop.permute.xlu1 %1449  ;;  %v1985_v42 = vadd.f32 %v4073_v9, %v1829_v8 }
 0x26e   : > { %v4109_v31 = vpop.f32.mrf.mxu1  ;;  %v2296_v7 = vadd.f32 %v2295_v48, %v2113_v38  ;;  %v1619_v48 = vadd.f32 %v4029_v43, %v1450_v50  ;;  %v1617_v30 = vadd.f32 %v4025_v59, %v1450_v50 }
 0x26f   : > { %4333 = vst [vmem:[#allocation12_spill] sm:$0xff] %v4109_v31  ;;  %v2297_v32 = vpop.f32.mrf.mxu0  ;;  %v1820_v31 = vadd.f32 %v4027_v57, %v1595_v10  ;;  %v2115_v54 = vadd.f32 %v2114_v55, %v1969_v15  ;;  %v1983_v10 = vadd.f32 %v1982_v2, %v1827_v12  ;;  %v2124_v60 = vadd.f32 %v2123_v44, %v1977_v14 }
 0x270   : > { %v4112_v39 = vpop.f32.mrf.mxu1  ;;  %v1836_v2 = vadd.f32 %v4047_v58, %v1619_v48  ;;  %v2133_v13 = vadd.f32 %v4083_v36, %v1985_v42 }
 0x271   : > { %4334 = vst [vmem:[#allocation5_spill] sm:$0xff] %v4112_v39  ;;  %v2302_v37 = vpop.f32.mrf.mxu0  ;;  %v1975_v61 = vadd.f32 %v1974_v16, %v1820_v31  ;;  %v2298_v45 = vadd.f32 %v2297_v32, %v2115_v54  ;;  %v2131_v18 = vadd.f32 %v2130_v29, %v1983_v10  ;;  %v1834_v54 = vadd.f32 %v4043_v3, %v1617_v30 }
 0x272   : > { %v4117_v53 = vpop.f32.mrf.mxu1 }
 0x273   : > { %4335 = vst [vmem:[#allocation16_spill] sm:$0xff] %v4117_v53  ;;  %v2304_v46 = vpop.f32.mrf.mxu0  ;;  %v2122_v57 = vadd.f32 %v2121_v63, %v1975_v61 }
 0x274   : > { %v4122_v39 = vpop.f32.mrf.mxu1  ;;  %v2305_v22 = vadd.f32 %v2304_v46, %v2124_v60 }
 0x275   : > { %v2309_v51 = vpop.f32.mrf.mxu0  ;;  %v2303_v16 = vadd.f32 %v2302_v37, %v2122_v57  ;;  %v1455_v37 = vpop.permute.xlu0 %1454 }
 0x276   : > { %v2432_v53 = vpop.f32.mrf.mxu1  ;;  %v2310_v40 = vadd.f32 %v2309_v51, %v2131_v18  ;;  %v1628_v46 = vadd.f32 %v4033_v34, %v1455_v37  ;;  %v1630_v61 = vadd.f32 %v4037_v11, %v1455_v37 }
 0x277   : > { %v2433_v24 = vadd.f32 %v2432_v53, %v2296_v7  ;;  %v2311_v4 = vpop.f32.mrf.mxu0  ;;  %v1993_v7 = vadd.f32 %v4077_v5, %v1836_v2 }
 0x278   : > { %v2434_v26 = vpop.f32.mrf.mxu1  ;;  %v2312_v19 = vadd.f32 %v2311_v4, %v2133_v13  ;;  %v1841_v51 = vadd.f32 %v4051_v17, %v1628_v46  ;;  %v1843_v57 = vadd.f32 %v4055_v28, %v1630_v61  ;;  %v4338_v13 = vld [vmem:[#allocation3_spill] sm:$0xff] }
 0x279   : > { %v2435_v15 = vadd.f32 %v2434_v26, %v2298_v45  ;;  %v2316_v55 = vpop.f32.mrf.mxu0  ;;  %v2519_v63 = vmul.f32 %v2433_v24, %v2433_v24  ;;  %v1991_v45 = vadd.f32 %v4075_v41, %v1834_v54  ;;  %v2142_v11 = vadd.f32 %v4091_v49, %v1993_v7  ;;  %v1465_v18 = vpop.permute.xlu0 %1464  ;;  %v4340_v54 = vld [vmem:[#allocation8_spill] sm:$0xff] }
 0x27a   : > { %v2439_v31 = vpop.f32.mrf.mxu1  ;;  %v1999_v60 = vadd.f32 %v4079_v23, %v1841_v51  ;;  %v2001_v26 = vadd.f32 %v4081_v52, %v1843_v57 }
 0x27b   : > { %v2520_v32 = vmul.f32 %v2435_v15, %v2435_v15  ;;  %v2440_v53 = vadd.f32 %v2439_v31, %v2303_v16  ;;  %v2318_v0 = vpop.f32.mrf.mxu0  ;;  %v2486_v38 = vadd.f32 %v2435_v15, %v2433_v24  ;;  %v1460_v24 = vpop.permute.xlu1 %1459  ;;  %v2140_v17 = vadd.f32 %v4087_v21, %v1991_v45  ;;  %v4343_v45 = vld [vmem:[#allocation2_spill] sm:$0xff] }
 0x27c   : > { %v2441_v44 = vpop.f32.mrf.mxu1  ;;  %v1641_v4 = vadd.f32 %v4045_v25, %v1460_v24  ;;  %v2319_v28 = vadd.f32 %v2318_v0, %v2142_v11  ;;  %v1639_v49 = vadd.f32 %v4041_v27, %v1460_v24  ;;  %v2149_v42 = vadd.f32 %v4095_v6, %v1999_v60  ;;  %v4344_v24 = vld [vmem:[#allocation6_spill] sm:$0xff] }
 0x27d   : > { %v2442_v43 = vadd.f32 %v2441_v44, %v2305_v22  ;;  %2487 = vadd.xlane.f32.xlu0 %v2486_v38  ;;  %v2323_v9 = vpop.f32.mrf.mxu0  ;;  %v2535_v29 = vadd.f32 %v2520_v32, %v2519_v63  ;;  %v2521_v58 = vmul.f32 %v2440_v53, %v2440_v53  ;;  %v2151_v25 = vadd.f32 %v4099_v56, %v2001_v26  ;;  %v4337_v44 = vld [vmem:[#allocation7_spill] sm:$0xff] }
 0x27e   : > { %v2446_v59 = vpop.f32.mrf.mxu1  ;;  %v1850_v48 = vadd.f32 %v4063_v20, %v1641_v4  ;;  %v2317_v52 = vadd.f32 %v2316_v55, %v2140_v17  ;;  %v1650_v32 = vadd.f32 %v4049_v62, %v1465_v18  ;;  %v1848_v0 = vadd.f32 %v4059_v47, %v1639_v49  ;;  %v4336_v55 = vld [vmem:[#allocation10_spill] sm:$0xff]  ;;  %v4348_v49 = vld [vmem:[#allocation11_spill] sm:$0xff] }
 0x27f   : > { %v2522_v12 = vmul.f32 %v2442_v43, %v2442_v43  ;;  %v2447_v14 = vadd.f32 %v2446_v59, %v2310_v40  ;;  %2536 = vadd.xlane.f32.xlu1 %v2535_v29  ;;  %v2325_v36 = vpop.f32.mrf.mxu0  ;;  %v2489_v5 = vadd.f32 %v2442_v43, %v2440_v53  ;;  %v1652_v53 = vadd.f32 %v4053_v35, %v1465_v18  ;;  %v1470_v43 = vpop.permute.xlu1 %1469  ;;  %v4341_v59 = vld [vmem:[#allocation9_spill] sm:$0xff] }
 0x280   : > { %v2448_v34 = vpop.f32.mrf.mxu1  ;;  %v2009_v27 = vadd.f32 %v4089_v1, %v1850_v48  ;;  %v2324_v38 = vadd.f32 %v2323_v9, %v2149_v42  ;;  %v2326_v6 = vadd.f32 %v2325_v36, %v2151_v25  ;;  %v1855_v56 = vadd.f32 %v4065_v33, %v1650_v32  ;;  %v4339_v9 = vld [vmem:[#allocation4_spill] sm:$0xff]  ;;  %v4342_v33 = vld [vmem:[#allocation14_spill] sm:$0xff] }
 0x281   : > { %v2449_v3 = vadd.f32 %v2448_v34, %v2312_v19  ;;  %v2330_v8 = vpop.f32.mrf.mxu0  ;;  %v2538_v10 = vadd.f32 %v2522_v12, %v2521_v58  ;;  %v2523_v16 = vmul.f32 %v2447_v14, %v2447_v14  ;;  %v1857_v2 = vadd.f32 %v4336_v55, %v1652_v53 }
 0x282   : > { %v2453_v50 = vpop.f32.mrf.mxu1  ;;  %v2007_v37 = vadd.f32 %v4337_v44, %v1848_v0  ;;  %v2160_v62 = vadd.f32 %v4338_v13, %v2009_v27  ;;  %v1663_v61 = vadd.f32 %v4339_v9, %v1470_v43  ;;  %v2015_v7 = vadd.f32 %v4340_v54, %v1855_v56 }
 0x283   : > { %v2524_v41 = vmul.f32 %v2449_v3, %v2449_v3  ;;  %2490 = vadd.xlane.f32.xlu1 %v2489_v5  ;;  %2539 = vadd.xlane.f32.xlu0 %v2538_v10  ;;  %v2332_v15 = vpop.f32.mrf.mxu0  ;;  %v2492_v63 = vadd.f32 %v2449_v3, %v2447_v14  ;;  %v2454_v30 = vadd.f32 %v2453_v50, %v2317_v52  ;;  %v4345_v3 = vld [vmem:[#allocation12_spill] sm:$0xff]  ;;  %v4346_v10 = vld [vmem:[#allocation5_spill] sm:$0xff] }
 0x284   : > { %v2455_v23 = vpop.f32.mrf.mxu1  ;;  %v2017_v19 = vadd.f32 %v4341_v59, %v1857_v2  ;;  %v2158_v58 = vadd.f32 %v4342_v33, %v2007_v37  ;;  %v2333_v36 = vadd.f32 %v2332_v15, %v2160_v62  ;;  %v1661_v34 = vadd.f32 %v4343_v45, %v1470_v43 }
 0x285   : > { %v2456_v22 = vadd.f32 %v2455_v23, %v2319_v28  ;;  %v2337_v21 = vpop.f32.mrf.mxu0  ;;  %v2541_v31 = vadd.f32 %v2524_v41, %v2523_v16  ;;  %v2525_v14 = vmul.f32 %v2454_v30, %v2454_v30  ;;  %v1864_v11 = vadd.f32 %v4344_v24, %v1663_v61  ;;  %v4347_v41 = vld [vmem:[#allocation13_spill] sm:$0xff] }
 0x286   : > { %v2460_v20 = vpop.f32.mrf.mxu1  ;;  %v2167_v5 = vadd.f32 %v4345_v3, %v2015_v7  ;;  %v2169_v4 = vadd.f32 %v4346_v10, %v2017_v19  ;;  %v2331_v17 = vadd.f32 %v2330_v8, %v2158_v58  ;;  %v1862_v15 = vadd.f32 %v4347_v41, %v1661_v34 }
 0x287   : > { %2542 = vadd.xlane.f32.xlu1 %v2541_v31  ;;  %2493 = vadd.xlane.f32.xlu0 %v2492_v63  ;;  %v2339_v40 = vpop.f32.mrf.mxu0  ;;  %v2526_v47 = vmul.f32 %v2456_v22, %v2456_v22  ;;  %v2461_v29 = vadd.f32 %v2460_v20, %v2324_v38  ;;  %v2495_v46 = vadd.f32 %v2456_v22, %v2454_v30  ;;  %v4349_v22 = vld [vmem:[#allocation15_spill] sm:$0xff]  ;;  %v4350_v38 = vld [vmem:[#allocation16_spill] sm:$0xff] }
 0x288   : > { %v2462_v35 = vpop.f32.mrf.mxu1  ;;  %v2025_v48 = vadd.f32 %v4348_v49, %v1864_v11  ;;  %v2338_v25 = vadd.f32 %v2337_v21, %v2167_v5  ;;  %v2340_v23 = vadd.f32 %v2339_v40, %v2169_v4  ;;  %v2023_v31 = vadd.f32 %v4349_v22, %v1862_v15 }
 0x289   : > { %v2463_v1 = vadd.f32 %v2462_v35, %v2326_v6  ;;  %v2344_v60 = vpop.f32.mrf.mxu0  ;;  %v2527_v50 = vmul.f32 %v2461_v29, %v2461_v29  ;;  %v2544_v16 = vadd.f32 %v2526_v47, %v2525_v14 }
 0x28a   : > { %v2467_v12 = vpop.f32.mrf.mxu1  ;;  %v2178_v63 = vadd.f32 %v4122_v39, %v2025_v48  ;;  %v2176_v6 = vadd.f32 %v4350_v38, %v2023_v31 }
 0x28b   : > { %v2528_v51 = vmul.f32 %v2463_v1, %v2463_v1  ;;  %2496 = vadd.xlane.f32.xlu0 %v2495_v46  ;;  %v2498_v57 = vadd.f32 %v2463_v1, %v2461_v29  ;;  %v2468_v18 = vadd.f32 %v2467_v12, %v2331_v17  ;;  %v2346_v32 = vpop.f32.mrf.mxu0 }
 0x28c   : > { %v2469_v26 = vpop.f32.mrf.mxu1  ;;  %v2347_v21 = vadd.f32 %v2346_v32, %v2178_v63  ;;  %v2345_v37 = vadd.f32 %v2344_v60, %v2176_v6 }
 0x28d   : > { %v2470_v28 = vadd.f32 %v2469_v26, %v2333_v36  ;;  %2499 = vadd.xlane.f32.xlu1 %v2498_v57  ;;  %v2547_v52 = vadd.f32 %v2528_v51, %v2527_v50  ;;  %v2529_v56 = vmul.f32 %v2468_v18, %v2468_v18 }
 0x28e   : > { %v2474_v42 = vpop.f32.mrf.mxu1 }
 0x28f   : > { %2545 = vadd.xlane.f32.xlu0 %v2544_v16  ;;  %v2530_v53 = vmul.f32 %v2470_v28, %v2470_v28  ;;  %v2475_v0 = vadd.f32 %v2474_v42, %v2338_v25  ;;  %v2501_v20 = vadd.f32 %v2470_v28, %v2468_v18 }
 0x290   : > { %v2476_v8 = vpop.f32.mrf.mxu1 }
 0x291   : > { %v2477_v27 = vadd.f32 %v2476_v8, %v2340_v23  ;;  %2548 = vadd.xlane.f32.xlu1 %v2547_v52  ;;  %v2531_v13 = vmul.f32 %v2475_v0, %v2475_v0  ;;  %v2550_v62 = vadd.f32 %v2530_v53, %v2529_v56 }
 0x292   : > { %v2481_v30 = vpop.f32.mrf.mxu1 }
 0x293   : > { %v2532_v55 = vmul.f32 %v2477_v27, %v2477_v27  ;;  %2502 = vadd.xlane.f32.xlu0 %v2501_v20  ;;  %v2504_v2 = vadd.f32 %v2477_v27, %v2475_v0  ;;  %v2482_v40 = vadd.f32 %v2481_v30, %v2345_v37 }
 0x294   : > { %v2483_v44 = vpop.f32.mrf.mxu1 }
 0x295   : > { %v2484_v39 = vadd.f32 %v2483_v44, %v2347_v21  ;;  %2505 = vadd.xlane.f32.xlu1 %v2504_v2  ;;  %v2553_v35 = vadd.f32 %v2532_v55, %v2531_v13  ;;  %v2533_v29 = vmul.f32 %v2482_v40, %v2482_v40 }
 0x297   : > { %2551 = vadd.xlane.f32.xlu0 %v2550_v62  ;;  %v2534_v43 = vmul.f32 %v2484_v39, %v2484_v39  ;;  %v2507_v47 = vadd.f32 %v2484_v39, %v2482_v40 }
 0x299   : > { %2554 = vadd.xlane.f32.xlu1 %v2553_v35  ;;  %v2556_v1 = vadd.f32 %v2534_v43, %v2533_v29 }
 0x29b   : > { %2508 = vadd.xlane.f32.xlu0 %v2507_v47 }
 0x29f   : > { %2557 = vadd.xlane.f32.xlu0 %v2556_v1 }
 0x306   : > { %v2488_v46 = vpop.xlane.xlu0 %2487 }
 0x307   : > { %2511 = vst.msk [vmem:[%s4173_s12] sm:$0xff] %vm2510_vm1, %v2488_v46 }
 0x308   : > { %v2537_v9 = vpop.xlane.xlu1 %2536 }
 0x309   : > { %2559 = vst.msk [vmem:[%s4178_s15] sm:$0xff] %vm2510_vm1, %v2537_v9 }
 0x30c   : > { %v2491_v61 = vpop.xlane.xlu1 %2490  ;;  %v2540_v54 = vpop.xlane.xlu0 %2539 }
 0x30d   : > { %2512 = vst.msk [vmem:[%s4173_s12 + $0x8] sm:$0xff] %vm2510_vm1, %v2491_v61  ;;  %2560 = vst.msk [vmem:[%s4178_s15 + $0x8] sm:$0xff] %vm2510_vm1, %v2540_v54 }
 0x310   : > { %v2543_v7 = vpop.xlane.xlu1 %2542  ;;  %v2494_v59 = vpop.xlane.xlu0 %2493 }
 0x311   : > { %2561 = vst.msk [vmem:[%s4178_s15 + $0x10] sm:$0xff] %vm2510_vm1, %v2543_v7  ;;  %2513 = vst.msk [vmem:[%s4173_s12 + $0x10] sm:$0xff] %vm2510_vm1, %v2494_v59 }
 0x314   : > { %v2497_v19 = vpop.xlane.xlu0 %2496 }
 0x315   : > { %2514 = vst.msk [vmem:[%s4173_s12 + $0x18] sm:$0xff] %vm2510_vm1, %v2497_v19 }
 0x316   : > { %v2500_v33 = vpop.xlane.xlu1 %2499 }
 0x317   : > { %2515 = vst.msk [vmem:[%s4173_s12 + $0x20] sm:$0xff] %vm2510_vm1, %v2500_v33 }
 0x318   : > { %v2546_v58 = vpop.xlane.xlu0 %2545 }
 0x319   : > { %2562 = vst.msk [vmem:[%s4178_s15 + $0x18] sm:$0xff] %vm2510_vm1, %v2546_v58 }
 0x31a   : > { %v2549_v12 = vpop.xlane.xlu1 %2548 }
 0x31b   : > { %2563 = vst.msk [vmem:[%s4178_s15 + $0x20] sm:$0xff] %vm2510_vm1, %v2549_v12 }
 0x31c   : > { %v2503_v14 = vpop.xlane.xlu0 %2502 }
 0x31d   : > { %2516 = vst.msk [vmem:[%s4173_s12 + $0x28] sm:$0xff] %vm2510_vm1, %v2503_v14 }
 0x31e   : > { %v2506_v36 = vpop.xlane.xlu1 %2505 }
 0x31f   : > { %2517 = vst.msk [vmem:[%s4173_s12 + $0x30] sm:$0xff] %vm2510_vm1, %v2506_v36 }
 0x320   : > { %v2552_v51 = vpop.xlane.xlu0 %2551 }
 0x321   : > { %2564 = vst.msk [vmem:[%s4178_s15 + $0x28] sm:$0xff] %vm2510_vm1, %v2552_v51 }
 0x322   : > { %v2555_v57 = vpop.xlane.xlu1 %2554 }
 0x323   : > { %2565 = vst.msk [vmem:[%s4178_s15 + $0x30] sm:$0xff] %vm2510_vm1, %v2555_v57 }
 0x324   : > { %v2509_v45 = vpop.xlane.xlu0 %2508 }
 0x325   : > { %2518 = vst.msk [vmem:[%s4173_s12 + $0x38] sm:$0xff] %vm2510_vm1, %v2509_v45 }
 0x328   : > { %v2558_v34 = vpop.xlane.xlu0 %2557 }
 0x329   : > { %2566 = vst.msk [vmem:[%s4178_s15 + $0x38] sm:$0xff] %vm2510_vm1, %v2558_v34 }
 0x32a PF: > { %s17_s23 = sadd.s32 1, %s2775_s23   ;;  %s4351_s21 = smov %s2771_s22 }
 0x32b   : > { %p14_p5 = scmp.ge.s32.totalorder %s17_s23, 6   ;;  %s4352_s22 = smov %s4354_s24 }
 0x32d   :  { %16 = sbr.rel (!%p14_p5) target bundleno = 2 (0x2), region = 82 }

// kernel: ms_cam_forward.7
= control target key start
LH: loop header
LB: loop body
LE: loop exit
PB: predicated region body
PF: predicated region fallthrough
CT: control target
= control target key end

     0   :  { %s2960_s21 = smov 0   ;;  %s2962_s22 = smov 0   ;;  %s4402_s0 = inlined_call_operand.vmem [shape: f32[4,64,256], index: 0, kind: input, shape index: {}]   ;;  %s4403_s1 = inlined_call_operand.vmem [shape: f32[64,64], index: 1, kind: input, shape index: {}]   ;;  %s4404_s2 = inlined_call_operand.vmem [shape: f32[64,1], index: 2, kind: input, shape index: {}]   ;;  %s4405_s3 = inlined_call_operand.vmem [shape: f32[64,64], index: 3, kind: input, shape index: {}]   ;;  %s4406_s4 = inlined_call_operand.vmem [shape: f32[64,1], index: 4, kind: input, shape index: {}]   ;;  %s4407_s5 = inlined_call_operand.vmem [shape: f32[4,64,1], index: 5, kind: input, shape index: {}]   ;;  %s4408_s6 = inlined_call_operand.vmem [shape: f32[4,64,256], index: 6, kind: output, shape index: {}]  }
   0x1   :  { %s2964_s23 = smov 0  }
   0x2 LB: > { %s28_s24 = sadd.s32 1, %s2917_s22  ;;  %p2779_p0 = scmp.ge.s32.totalorder %s2921_s23, 1  ;;  %s2921_s23 = sphi %s2964_s23, %s16_s23   ;;  %s2917_s22 = sphi %s2962_s22, %s4531_s22   ;;  %s2913_s21 = sphi %s2960_s21, %s4530_s21  }
   0x3   : > { %p30_p1 = scmp.ge.s32.totalorder %s28_s24, 4  ;;  %p243_p2 = scmp.lt.s32.totalorder %s2921_s23, 5 }
   0x5   : > { %s4533_s24 = smov (%p30_p1, %s28_s24), 0  ;;  %p244_p3 = pnand %p2779_p0, %p243_p2 }
   0x7   : > { %247 = sbr.rel (%p244_p3) target bundleno = 703 (0x2bf), region = 44 }
   0xc   : > { %p287_p4 = scmp.lt.s32.totalorder %s2913_s21, 3  ;;  %v327_v0 = vld [vmem:[%s4403_s1] sm:$0xff]  ;;  %vm383_vm0 = vcmask 523264   ;;  %v328_v1 = vld [vmem:[%s4403_s1 + $0x8] sm:$0xff]  ;;  %v329_v2 = vld [vmem:[%s4403_s1 + $0x10] sm:$0xff]  ;;  %v4425_v3 = vmov 0.0  }
   0xd   : > { %488 = vmatprep.mubr.f32.mxu0 %v4425_v3  ;;  %v385_v4 = vsel %vm383_vm0, %v327_v0, 0  ;;  %v388_v5 = vsel %vm383_vm0, %v328_v1, 0  ;;  %721 = vmatprep.mubr.f32.mxu1 %v4425_v3  ;;  %v391_v6 = vsel %vm383_vm0, %v329_v2, 0  ;;  %v330_v7 = vld [vmem:[%s4403_s1 + $0x18] sm:$0xff]  ;;  %v331_v8 = vld [vmem:[%s4403_s1 + $0x20] sm:$0xff]  ;;  %v332_v9 = vld [vmem:[%s4403_s1 + $0x28] sm:$0xff] }
   0xe   : > { %s4535_s21 = smov (!%p287_p4, %s2913_s21), 3  ;;  %v3004_v10 = vand.u32 4294901760, %v385_v4  ;;  %v3006_v11 = vand.u32 4294901760, %v388_v5  ;;  %v3008_v12 = vand.u32 4294901760, %v391_v6  ;;  %v394_v13 = vsel %vm383_vm0, %v330_v7, 0  ;;  %v333_v14 = vld [vmem:[%s4403_s1 + $0x30] sm:$0xff] }
   0xf   : > { %v3014_v15 = vand.u32 4294901760, %v394_v13  ;;  %v397_v16 = vsel %vm383_vm0, %v331_v8, 0  ;;  %v3018_v17 = vsel %vm383_vm0, %v332_v9, 0  ;;  %s2788_s15 = sshll.u32 %s4535_s21, 7  ;;  %v3043_v23 = vsel %vm383_vm0, %v333_v14, 0  ;;  %s2789_s11 = sshll.u32 %s4535_s21, 6 }
  0x10   : > { %v3022_v18 = vsub.f32 %v385_v4, %v3004_v10  ;;  %v3025_v19 = vsub.f32 %v388_v5, %v3006_v11  ;;  %v3028_v20 = vsub.f32 %v391_v6, %v3008_v12  ;;  %v3030_v21 = vand.u32 4294901760, %v397_v16  ;;  %s3037_s18 = scalar_lea.vmem %s4402_s0, %s2788_s15  ;;  %s300_s17 = scalar_lea.vmem %s4407_s5, %s2789_s11 }
  0x11   : > { %v3040_v22 = vand.u32 4294901760, %v3018_v17  ;;  %v326_v24 = vld [vmem:[%s3037_s18 + $0x78] sm:$0xff]  ;;  %v325_v25 = vld [vmem:[%s3037_s18 + $0x70] sm:$0xff]  ;;  %v324_v26 = vld [vmem:[%s3037_s18 + $0x68] sm:$0xff]  ;;  %v3052_v30 = vsub.f32 %v394_v13, %v3014_v15  ;;  %s4359_s25 = scalar_lea.vmem %s4408_s6, %s2788_s15 }
  0x12   : > { %v4409_v27 = vand.u32 4294901760, %v3022_v18  ;;  %v4417_v28 = vand.u32 4294901760, %v3025_v19  ;;  %v513_v29 = vand.u32 4294901760, %v3028_v20  ;;  %v3054_v31 = vand.u32 4294901760, %v326_v24  ;;  %v323_v34 = vld [vmem:[%s3037_s18 + $0x60] sm:$0xff]  ;;  %v322_v35 = vld [vmem:[%s3037_s18 + $0x58] sm:$0xff] }
  0x13   : > { %v3056_v32 = vand.u32 4294901760, %v325_v25  ;;  %v3058_v33 = vand.u32 4294901760, %v324_v26  ;;  %v321_v36 = vld [vmem:[%s3037_s18 + $0x50] sm:$0xff]  ;;  %v3064_v37 = vsub.f32 %v397_v16, %v3030_v21  ;;  %v3066_v38 = vand.u32 4294901760, %v323_v34  ;;  %v320_v41 = vld [vmem:[%s3037_s18 + $0x48] sm:$0xff]  ;;  %v319_v42 = vld [vmem:[%s3037_s18 + $0x40] sm:$0xff] }
  0x14   : > { %v3068_v39 = vand.u32 4294901760, %v322_v35  ;;  %v3070_v40 = vand.u32 4294901760, %v321_v36  ;;  %v318_v43 = vld [vmem:[%s3037_s18 + $0x38] sm:$0xff]  ;;  %v3078_v44 = vsub.f32 %v3022_v18, %v4409_v27  ;;  %425 = vmatprep.subr.mxu0 %v3054_v31  ;;  %v3081_v45 = vand.u32 4294901760, %v320_v41  ;;  %v317_v49 = vld [vmem:[%s3037_s18 + $0x30] sm:$0xff]  ;;  %v316_v50 = vld [vmem:[%s3037_s18 + $0x28] sm:$0xff] }
  0x15   : > { %v3083_v46 = vand.u32 4294901760, %v319_v42  ;;  %v3085_v47 = vand.u32 4294901760, %v318_v43  ;;  %v3088_v48 = vsub.f32 %v326_v24, %v3054_v31  ;;  %v315_v51 = vld [vmem:[%s3037_s18 + $0x20] sm:$0xff]  ;;  %427 = vmatpush1.msra.mxu0 %v3056_v32  ;;  %v3094_v52 = vand.u32 4294901760, %v317_v49  ;;  %v3105_v56 = vld [vmem:[%s3037_s18 + $0x18] sm:$0xff]  ;;  %v3108_v57 = vld [vmem:[%s3037_s18 + $0x10] sm:$0xff] }
  0x16   : > { %v3097_v53 = vsub.f32 %v325_v25, %v3056_v32  ;;  %v3099_v54 = vand.u32 4294901760, %v316_v50  ;;  %v3102_v55 = vsub.f32 %v324_v26, %v3058_v33  ;;  %v3111_v58 = vld [vmem:[%s3037_s18 + $0x8] sm:$0xff]  ;;  %429 = vmatprep.subr.mxu0 %v3058_v33  ;;  %v3115_v60 = vand.u32 4294901760, %v315_v51  ;;  %v3133_v4 = vld [vmem:[%s3037_s18] sm:$0xff] }
  0x17   : > { %v595_v59 = vand.u32 4294901760, %v3088_v48  ;;  %v3118_v61 = vsub.f32 %v323_v34, %v3066_v38  ;;  %v3121_v62 = vand.u32 4294901760, %v3105_v56  ;;  %431 = vmatpush1.msra.mxu0 %v3066_v38  ;;  %v3127_v1 = vsub.f32 %v322_v35, %v3068_v39 }
  0x18   : > { %v4421_v63 = vand.u32 4294901760, %v3097_v53  ;;  %v4411_v0 = vand.u32 4294901760, %v3102_v55  ;;  %v3130_v2 = vand.u32 4294901760, %v3108_v57  ;;  %433 = vmatprep.subr.mxu0 %v3068_v39  ;;  %v3141_v7 = vsub.f32 %v321_v36, %v3070_v40 }
  0x19   : > { %v596_v5 = vsub.f32 %v3088_v48, %v595_v59  ;;  %v4410_v6 = vand.u32 4294901760, %v3118_v61  ;;  %v3144_v8 = vand.u32 4294901760, %v3111_v58  ;;  %435 = vmatpush1.msra.mxu0 %v3070_v40  ;;  %v4412_v14 = vand.u32 4294901760, %v3127_v1 }
  0x1a   : > { %v602_v9 = vsub.f32 %v3097_v53, %v4421_v63  ;;  %v608_v13 = vsub.f32 %v3102_v55, %v4411_v0  ;;  %v3155_v16 = vsub.f32 %v320_v41, %v3081_v45  ;;  %437 = vmatprep.subr.mxu0 %v3081_v45  ;;  %v4413_v26 = vand.u32 4294901760, %v3141_v7 }
  0x1b   : > { %v597_v24 = vand.u32 4294901760, %v596_v5  ;;  %v614_v25 = vsub.f32 %v3118_v61, %v4410_v6  ;;  %v3163_v34 = vand.u32 4294901760, %v3133_v4  ;;  %439 = vmatpush1.msra.mxu0 %v3083_v46  ;;  %v620_v41 = vsub.f32 %v3127_v1, %v4412_v14 }
  0x1c   : > { %v603_v35 = vand.u32 4294901760, %v602_v9  ;;  %v609_v36 = vand.u32 4294901760, %v608_v13  ;;  %v4415_v27 = vand.u32 4294901760, %v3155_v16  ;;  %441 = vmatprep.subr.mxu0 %v3085_v47  ;;  %v626_v6 = vsub.f32 %v3141_v7, %v4413_v26 }
  0x1d   : > { %598 = vmatprep.subr.mxu1 %v597_v24  ;;  %v615_v5 = vand.u32 4294901760, %v614_v25  ;;  %v3175_v0 = vsub.f32 %v319_v42, %v3083_v46  ;;  %v493_v9 = vand.u32 4294901760, %v3078_v44  ;;  %443 = vmatpush1.msra.mxu0 %v3094_v52  ;;  %v621_v13 = vand.u32 4294901760, %v620_v41 }
  0x1e   : > { %604 = vmatpush1.msra.mxu1 %v603_v35  ;;  %v632_v14 = vsub.f32 %v3155_v16, %v4415_v27  ;;  %v3183_v24 = vsub.f32 %v318_v43, %v3085_v47  ;;  %v3186_v25 = vsub.f32 %v317_v49, %v3094_v52  ;;  %445 = vmatprep.subr.mxu0 %v3099_v54  ;;  %v627_v42 = vand.u32 4294901760, %v626_v6 }
  0x1f   : > { %610 = vmatprep.subr.mxu1 %v609_v36  ;;  %v4414_v44 = vand.u32 4294901760, %v3175_v0  ;;  %v3191_v26 = vsub.f32 %v316_v50, %v3099_v54  ;;  %v3194_v35 = vsub.f32 %v315_v51, %v3115_v60  ;;  %447 = vmatpush1.msra.mxu0 %v3115_v60  ;;  %v503_v6 = vsub.f32 %v3025_v19, %v4417_v28 }
  0x20   : > { %616 = vmatpush1.msra.mxu1 %v615_v5  ;;  %v633_v43 = vand.u32 4294901760, %v632_v14  ;;  %v4416_v41 = vand.u32 4294901760, %v3183_v24  ;;  %v4418_v49 = vand.u32 4294901760, %v3186_v25  ;;  %449 = vmatprep.subr.mxu0 %v3121_v62  ;;  %v3210_v14 = vsub.f32 %v3105_v56, %v3121_v62 }
  0x21   : > { %622 = vmatprep.subr.mxu1 %v621_v13  ;;  %v638_v50 = vsub.f32 %v3175_v0, %v4414_v44  ;;  %v4419_v51 = vand.u32 4294901760, %v3191_v26  ;;  %v4420_v36 = vand.u32 4294901760, %v3194_v35  ;;  %451 = vmatpush1.msra.mxu0 %v3130_v2  ;;  %v504_v44 = vand.u32 4294901760, %v503_v6 }
  0x22   : > { %628 = vmatpush1.msra.mxu1 %v627_v42  ;;  %v644_v5 = vsub.f32 %v3183_v24, %v4416_v41  ;;  %v650_v13 = vsub.f32 %v3186_v25, %v4418_v49  ;;  %v3221_v27 = vsub.f32 %v3108_v57, %v3130_v2  ;;  %453 = vmatprep.subr.mxu0 %v3144_v8  ;;  %v4424_v28 = vand.u32 4294901760, %v3210_v14 }
  0x23   : > { %634 = vmatprep.subr.mxu1 %v633_v43  ;;  %v639_v56 = vand.u32 4294901760, %v638_v50  ;;  %v656_v42 = vsub.f32 %v3191_v26, %v4419_v51  ;;  %v662_v41 = vsub.f32 %v3194_v35, %v4420_v36  ;;  %455 = vmatpush1.msra.mxu0 %v3163_v34  ;;  %v3235_v43 = vsub.f32 %v3111_v58, %v3144_v8 }
  0x24   : > { %v645_v6 = vand.u32 4294901760, %v644_v5  ;;  %v651_v49 = vand.u32 4294901760, %v650_v13  ;;  %v4423_v57 = vand.u32 4294901760, %v3221_v27  ;;  %494 = vmatmul.mubr.f32.vlgmr.msra.gmra.mxu0 %v493_v9  ;;  %v668_v36 = vsub.f32 %v3210_v14, %v4424_v28  ;;  %796 = vmatprep.subr.mxu0 %v3088_v48 }
  0x25   : > { %640 = vmatpush1.msra.mxu1 %v639_v56  ;;  %v657_v50 = vand.u32 4294901760, %v656_v42  ;;  %v663_v51 = vand.u32 4294901760, %v662_v41  ;;  %v3242_v63 = vsub.f32 %v3133_v4, %v3163_v34  ;;  %499 = vmatprep.mubr.f32.mxu0 %v4425_v3  ;;  %v4422_v5 = vand.u32 4294901760, %v3235_v43  ;;  %v334_v56 = vld [vmem:[%s4403_s1 + $0x38] sm:$0xff] }
  0x26   : > { %646 = vmatprep.subr.mxu1 %v645_v6  ;;  %v674_v58 = vsub.f32 %v3221_v27, %v4423_v57  ;;  %v514_v9 = vsub.f32 %v3028_v20, %v513_v29  ;;  %v524_v41 = vand.u32 4294901760, %v3052_v30  ;;  %v669_v13 = vand.u32 4294901760, %v668_v36  ;;  %799 = vmatpush1.msra.mxu0 %v3097_v53 }
  0x27   : > { %652 = vmatpush1.msra.mxu1 %v651_v49  ;;  %v685_v4 = vand.u32 4294901760, %v3242_v63  ;;  %v680_v6 = vsub.f32 %v3235_v43, %v4422_v5  ;;  %v3264_v49 = vsub.f32 %v3018_v17, %v3040_v22  ;;  %v3267_v36 = vand.u32 4294901760, %v3043_v23  ;;  %802 = vmatprep.subr.mxu0 %v3102_v55 }
  0x28   : > { %658 = vmatprep.subr.mxu1 %v657_v50  ;;  %v675_v42 = vand.u32 4294901760, %v674_v58  ;;  %505 = vmatmul.mubr.f32.gmra.mxu0 %v504_v44  ;;  %v515_v58 = vand.u32 4294901760, %v514_v9  ;;  %v525_v5 = vsub.f32 %v3052_v30, %v524_v41  ;;  %v535_v57 = vand.u32 4294901760, %v3064_v37 }
  0x29   : > { %664 = vmatpush1.msra.mxu1 %v663_v51  ;;  %v686_v50 = vsub.f32 %v3242_v63, %v685_v4  ;;  %v681_v28 = vand.u32 4294901760, %v680_v6  ;;  %510 = vmatprep.mubr.f32.mxu0 %v4425_v3  ;;  %v406_v17 = vsel %vm383_vm0, %v334_v56, 0  ;;  %v546_v44 = vand.u32 4294901760, %v3264_v49 }
  0x2a   : > { %670 = vmatprep.subr.mxu1 %v669_v13  ;;  %805 = vmatpush1.msra.mxu0 %v3118_v61  ;;  %v526_v9 = vand.u32 4294901760, %v525_v5  ;;  %v536_v13 = vsub.f32 %v3064_v37, %v535_v57  ;;  %v3286_v6 = vsub.f32 %v3043_v23, %v3267_v36  ;;  %v3288_v56 = vand.u32 4294901760, %v406_v17 }
  0x2b   : > { %676 = vmatpush1.msra.mxu1 %v675_v42  ;;  %v687_v51 = vand.u32 4294901760, %v686_v50  ;;  %808 = vmatprep.subr.mxu0 %v3127_v1  ;;  %v547_v23 = vsub.f32 %v3264_v49, %v546_v44  ;;  %v4446_v48 = vand.u32 4294901760, %v3102_v55  ;;  %v4452_v55 = vand.u32 4294901760, %v3155_v16 }
  0x2c   : > { %682 = vmatprep.subr.mxu1 %v681_v28  ;;  %516 = vmatmul.mubr.f32.gmra.mxu0 %v515_v58  ;;  %v537_v28 = vand.u32 4294901760, %v536_v13  ;;  %v557_v5 = vand.u32 4294901760, %v3286_v6  ;;  %v3302_v42 = vsub.f32 %v406_v17, %v3288_v56 }
  0x2d   : > { %688 = vmatpush1.msra.mxu1 %v687_v51  ;;  %521 = vmatprep.mubr.f32.mxu0 %v4425_v3  ;;  %v548_v50 = vand.u32 4294901760, %v547_v23  ;;  %v4449_v23 = vand.u32 4294901760, %v3127_v1  ;;  %v2485_v1 = vld [vmem:[%s300_s17 + $0x8] sm:$0xff] }
  0x2e   : > { %723 = vmatmul.mubr.f32.vlgmr.msra.gmra.mxu1 %v3004_v10  ;;  %811 = vmatpush1.msra.mxu0 %v3141_v7  ;;  %v558_v58 = vsub.f32 %v3286_v6, %v557_v5  ;;  %v568_v17 = vand.u32 4294901760, %v3302_v42 }
  0x2f   : > { %728 = vmatprep.mubr.f32.mxu1 %v4425_v3  ;;  %956 = vmatprep.subr.mxu1 %v3054_v31 }
  0x30   : > { %527 = vmatmul.mubr.f32.gmra.mxu0 %v526_v9  ;;  %814 = vmatprep.subr.mxu0 %v3155_v16  ;;  %v559_v51 = vand.u32 4294901760, %v558_v58  ;;  %v569_v9 = vsub.f32 %v3302_v42, %v568_v17  ;;  %v2491_v16 = vld [vmem:[%s300_s17 + $0x38] sm:$0xff] }
  0x31   : > { %532 = vmatprep.mubr.f32.mxu0 %v4425_v3  ;;  %817 = vmatpush1.msra.mxu0 %v3175_v0 }
  0x32   : > { %730 = vmatmul.mubr.f32.gmra.mxu1 %v3006_v11  ;;  %820 = vmatprep.subr.mxu0 %v3183_v24  ;;  %v570_v13 = vand.u32 4294901760, %v569_v9 }
  0x33   : > { %735 = vmatprep.mubr.f32.mxu1 %v4425_v3  ;;  %958 = vmatpush1.msra.mxu1 %v3056_v32 }
  0x34   : > { %538 = vmatmul.mubr.f32.gmra.mxu0 %v537_v28  ;;  %960 = vmatprep.subr.mxu1 %v3058_v33  ;;  %v4445_v28 = vand.u32 4294901760, %v3097_v53  ;;  %v4447_v53 = vand.u32 4294901760, %v3022_v18 }
  0x35   : > { %543 = vmatprep.mubr.f32.mxu0 %v4425_v3  ;;  %823 = vmatpush1.msra.mxu0 %v3186_v25 }
  0x36   : > { %737 = vmatmul.mubr.f32.gmra.mxu1 %v3008_v12  ;;  %826 = vmatprep.subr.mxu0 %v3191_v26 }
  0x37   : > { %742 = vmatprep.mubr.f32.mxu1 %v4425_v3  ;;  %962 = vmatpush1.msra.mxu1 %v3066_v38 }
  0x38   : > { %549 = vmatmul.mubr.f32.gmra.mxu0 %v548_v50  ;;  %964 = vmatprep.subr.mxu1 %v3068_v39 }
  0x39   : > { %554 = vmatprep.mubr.f32.mxu0 %v4425_v3  ;;  %829 = vmatpush1.msra.mxu0 %v3194_v35 }
  0x3a   : > { %744 = vmatmul.mubr.f32.gmra.mxu1 %v3014_v15  ;;  %832 = vmatprep.subr.mxu0 %v3210_v14 }
  0x3b   : > { %749 = vmatprep.mubr.f32.mxu1 %v4425_v3  ;;  %966 = vmatpush1.msra.mxu1 %v3070_v40 }
  0x3c   : > { %560 = vmatmul.mubr.f32.gmra.mxu0 %v559_v51  ;;  %968 = vmatprep.subr.mxu1 %v3081_v45 }
  0x3d   : > { %565 = vmatprep.mubr.f32.mxu0 %v4425_v3  ;;  %835 = vmatpush1.msra.mxu0 %v3221_v27 }
  0x3e   : > { %751 = vmatmul.mubr.f32.gmra.mxu1 %v3030_v21  ;;  %838 = vmatprep.subr.mxu0 %v3235_v43 }
  0x3f   : > { %756 = vmatprep.mubr.f32.mxu1 %v4425_v3  ;;  %970 = vmatpush1.msra.mxu1 %v3083_v46 }
  0x40   : > { %571 = vmatmul.mubr.f32.gmra.mxu0 %v570_v13  ;;  %972 = vmatprep.subr.mxu1 %v3085_v47 }
  0x41   : > { %841 = vmatpush1.msra.mxu0 %v3242_v63  ;;  %874 = vmatprep.mubr.f32.mxu0 %v4425_v3  ;;  %v1427_v63 = vld [vmem:[%s4406_s4 + $0x28] sm:$0xff] }
  0x42   : > { %758 = vmatmul.mubr.f32.gmra.mxu1 %v3040_v22  ;;  %1111 = vmatprep.subr.mxu0 %v595_v59  ;;  %v4448_v59 = vand.u32 4294901760, %v3118_v61  ;;  %v1423_v61 = vld [vmem:[%s4406_s4 + $0x8] sm:$0xff] }
  0x43   : > { %763 = vmatprep.mubr.f32.mxu1 %v4425_v3  ;;  %974 = vmatpush1.msra.mxu1 %v3094_v52 }
  0x44   : > { %877 = vmatmul.mubr.f32.vlgmr.msra.gmra.mxu0 %v3022_v18  ;;  %976 = vmatprep.subr.mxu1 %v3099_v54  ;;  %v4451_v18 = vand.u32 4294901760, %v3141_v7  ;;  %v2486_v7 = vld [vmem:[%s300_s17 + $0x10] sm:$0xff] }
  0x45   : > { %882 = vmatprep.mubr.f32.mxu0 %v4425_v3  ;;  %978 = vmatpush1.msra.mxu1 %v3115_v60 }
  0x46   : > { %765 = vmatmul.mubr.f32.gmra.mxu1 %v3267_v36  ;;  %980 = vmatprep.subr.mxu1 %v3121_v62 }
  0x47   : > { %770 = vmatprep.mubr.f32.mxu1 %v4425_v3  ;;  %1115 = vmatpush1.msra.mxu0 %v4445_v28 }
  0x48   : > { %885 = vmatmul.mubr.f32.gmra.mxu0 %v3025_v19  ;;  %982 = vmatpush1.msra.mxu1 %v3130_v2 }
  0x49   : > { %984 = vmatprep.subr.mxu1 %v3144_v8  ;;  %890 = vmatprep.mubr.f32.mxu0 %v4425_v3 }
  0x4a   : > { %772 = vmatmul.mubr.f32.gmra.mxu1 %v3288_v56  ;;  %1119 = vmatprep.subr.mxu0 %v4446_v48 }
  0x4b   : > { %986 = vmatpush1.msra.mxu1 %v3163_v34  ;;  %1019 = vmatprep.mubr.f32.mxu1 %v4425_v3 }
  0x4c   : > { %893 = vmatmul.mubr.f32.gmra.mxu0 %v3028_v20  ;;  %1278 = vmatprep.subr.mxu1 %v3054_v31  ;;  %v4450_v31 = vand.u32 4294901760, %v3025_v19  ;;  %v4453_v19 = vand.u32 4294901760, %v3175_v0  ;;  %v340_v20 = vld [vmem:[%s4404_s2 + $0x28] sm:$0xff]  ;;  %v1429_v0 = vld [vmem:[%s4406_s4 + $0x38] sm:$0xff] }
  0x4d   : > { %898 = vmatprep.mubr.f32.mxu0 %v4425_v3  ;;  %1123 = vmatpush1.msra.mxu0 %v4448_v59 }
  0x4e   : > { %1023 = vmatmul.mubr.f32.vlgmr.msra.gmra.mxu1 %v4447_v53  ;;  %1127 = vmatprep.subr.mxu0 %v4449_v23 }
  0x4f   : > { %1028 = vmatprep.mubr.f32.mxu1 %v4425_v3  ;;  %1280 = vmatpush1.msra.mxu1 %v3056_v32  ;;  %v4454_v32 = vand.u32 4294901760, %v3183_v24 }
  0x50   : > { %901 = vmatmul.mubr.f32.gmra.mxu0 %v3052_v30  ;;  %1282 = vmatprep.subr.mxu1 %v3058_v33  ;;  %v2924_v33 = vmov 0   ;;  %v4457_v30 = vand.u32 4294901760, %v3194_v35 }
  0x51   : > { %906 = vmatprep.mubr.f32.mxu0 %v4425_v3  ;;  %1131 = vmatpush1.msra.mxu0 %v4451_v18 }
  0x52   : > { %1032 = vmatmul.mubr.f32.gmra.mxu1 %v4450_v31  ;;  %1135 = vmatprep.subr.mxu0 %v4452_v55 }
  0x53   : > { %1037 = vmatprep.mubr.f32.mxu1 %v4425_v3  ;;  %1284 = vmatpush1.msra.mxu1 %v3066_v38  ;;  %v4456_v38 = vand.u32 4294901760, %v3191_v26  ;;  %v2490_v26 = vld [vmem:[%s300_s17 + $0x30] sm:$0xff] }
  0x54   : > { %909 = vmatmul.mubr.f32.gmra.mxu0 %v3064_v37  ;;  %1286 = vmatprep.subr.mxu1 %v3068_v39  ;;  %v4458_v39 = vand.u32 4294901760, %v3210_v14  ;;  %v4459_v37 = vand.u32 4294901760, %v3221_v27  ;;  %v339_v27 = vld [vmem:[%s4404_s2 + $0x20] sm:$0xff] }
  0x55   : > { %914 = vmatprep.mubr.f32.mxu0 %v4425_v3  ;;  %1139 = vmatpush1.msra.mxu0 %v4453_v19 }
  0x56   : > { %1041 = vmatmul.mubr.f32.gmra.mxu1 %v513_v29  ;;  %1143 = vmatprep.subr.mxu0 %v4454_v32  ;;  %v4455_v29 = vand.u32 4294901760, %v3186_v25 }
  0x57   : > { %1046 = vmatprep.mubr.f32.mxu1 %v4425_v3  ;;  %1288 = vmatpush1.msra.mxu1 %v3070_v40  ;;  %v4460_v40 = vand.u32 4294901760, %v3235_v43 }
  0x58   : > { %917 = vmatmul.mubr.f32.gmra.mxu0 %v3264_v49  ;;  %2818 = vset.pattern.permute.xlu1 %v2924_v33 }
  0x59   : > { %922 = vmatprep.mubr.f32.mxu0 %v4425_v3  ;;  %1147 = vmatpush1.msra.mxu0 %v4455_v29 }
  0x5a   : > { %1050 = vmatmul.mubr.f32.gmra.mxu1 %v524_v41  ;;  %1151 = vmatprep.subr.mxu0 %v4456_v38 }
  0x5b   : > { %1055 = vmatprep.mubr.f32.mxu1 %v4425_v3  ;;  %1290 = vmatprep.subr.mxu1 %v3081_v45  ;;  %v342_v45 = vld [vmem:[%s4404_s2 + $0x38] sm:$0xff] }
  0x5c   : > { %925 = vmatmul.mubr.f32.gmra.mxu0 %v3286_v6  ;;  %370 = vperm.xlu1 %2818, %v340_v20  }
  0x5d   : > { %930 = vmatprep.mubr.f32.mxu0 %v4425_v3  ;;  %1155 = vmatpush1.msra.mxu0 %v4457_v30 }
  0x5e   : > { %1059 = vmatmul.mubr.f32.gmra.mxu1 %v535_v57  ;;  %1159 = vmatprep.subr.mxu0 %v4458_v39 }
  0x5f   : > { %1064 = vmatprep.mubr.f32.mxu1 %v4425_v3  ;;  %1292 = vmatpush1.msra.mxu1 %v3083_v46  ;;  %v341_v46 = vld [vmem:[%s4404_s2 + $0x30] sm:$0xff] }
  0x60   : > { %933 = vmatmul.mubr.f32.gmra.mxu0 %v3302_v42  ;;  %1294 = vmatprep.subr.mxu1 %v3085_v47  ;;  %v337_v47 = vld [vmem:[%s4404_s2 + $0x10] sm:$0xff] }
  0x61   : > { %1163 = vmatpush1.msra.mxu0 %v4459_v37  ;;  %1204 = vmatprep.mubr.f32.mxu0 %v4425_v3 }
  0x62   : > { %1068 = vmatmul.mubr.f32.gmra.mxu1 %v546_v44  ;;  %1167 = vmatprep.subr.mxu0 %v4460_v40 }
  0x63   : > { %1073 = vmatprep.mubr.f32.mxu1 %v4425_v3  ;;  %1171 = vmatpush1.msra.mxu0 %v685_v4 }
  0x64   : > { %1206 = vmatmul.mubr.f32.vlgmr.msra.gmra.mxu0 %v3004_v10  ;;  %1296 = vmatpush1.msra.mxu1 %v3094_v52  ;;  %v338_v52 = vld [vmem:[%s4404_s2 + $0x18] sm:$0xff] }
  0x65   : > { %2817 = vset.pattern.permute.xlu0 %v2924_v33  ;;  %1298 = vmatprep.subr.mxu1 %v3099_v54  ;;  %v335_v54 = vld [vmem:[%s4404_s2] sm:$0xff] }
  0x66   : > { %1077 = vmatmul.mubr.f32.gmra.mxu1 %v557_v5  ;;  %380 = vperm.xlu0 %2817, %v342_v45  }
  0x67   : > { %365 = vperm.xlu1 %2818, %v339_v27   ;;  %1082 = vmatprep.mubr.f32.mxu1 %v4425_v3 }
  0x68   : > { %1211 = vmatprep.mubr.f32.mxu0 %v4425_v3  ;;  %1300 = vmatpush1.msra.mxu1 %v3115_v60  ;;  %v336_v60 = vld [vmem:[%s4404_s2 + $0x8] sm:$0xff] }
  0x69   : > { %1213 = vmatmul.mubr.f32.gmra.mxu0 %v3006_v11  ;;  %1302 = vmatprep.subr.mxu1 %v3121_v62  ;;  %v1425_v62 = vld [vmem:[%s4406_s4 + $0x18] sm:$0xff] }
  0x6a   : > { %1086 = vmatmul.mubr.f32.gmra.mxu1 %v568_v17  ;;  %375 = vperm.xlu0 %2817, %v341_v46  }
  0x6b   : > { %1304 = vmatpush1.msra.mxu1 %v3130_v2  ;;  %355 = vperm.xlu1 %2818, %v337_v47   ;;  %v2487_v2 = vld [vmem:[%s300_s17 + $0x18] sm:$0xff] }
  0x6c   : > { %1306 = vmatprep.subr.mxu1 %v3144_v8  ;;  %1218 = vmatprep.mubr.f32.mxu0 %v4425_v3  ;;  %v2489_v8 = vld [vmem:[%s300_s17 + $0x28] sm:$0xff] }
  0x6d   : > { %1308 = vmatpush1.msra.mxu1 %v3163_v34  ;;  %1341 = vmatprep.mubr.f32.mxu1 %v4425_v3 }
  0x6e   : > { %1220 = vmatmul.mubr.f32.gmra.mxu0 %v3008_v12  ;;  %1343 = vmatmul.mubr.f32.vlgmr.msra.gmra.mxu1 %v3004_v10  ;;  %v1422_v10 = vld [vmem:[%s4406_s4] sm:$0xff] }
  0x6f   : > { %360 = vperm.xlu0 %2817, %v338_v52   ;;  %345 = vperm.xlu1 %2818, %v335_v54  }
  0x70   : > { %1225 = vmatprep.mubr.f32.mxu0 %v4425_v3  ;;  %1348 = vmatprep.mubr.f32.mxu1 %v4425_v3 }
  0x72   : > { %1227 = vmatmul.mubr.f32.gmra.mxu0 %v3014_v15  ;;  %1350 = vmatmul.mubr.f32.gmra.mxu1 %v3006_v11  ;;  %v1424_v11 = vld [vmem:[%s4406_s4 + $0x10] sm:$0xff] }
  0x73   : > { %350 = vperm.xlu0 %2817, %v336_v60   ;;  %1232 = vmatprep.mubr.f32.mxu0 %v4425_v3 }
  0x74   : > { %1355 = vmatprep.mubr.f32.mxu1 %v4425_v3  ;;  %1437 = vperm.xlu1 %2818, %v1423_v61  }
  0x76   : > { %1234 = vmatmul.mubr.f32.gmra.mxu0 %v3030_v21  ;;  %1357 = vmatmul.mubr.f32.gmra.mxu1 %v3008_v12  ;;  %v1426_v12 = vld [vmem:[%s4406_s4 + $0x20] sm:$0xff] }
  0x77   : > { %1239 = vmatprep.mubr.f32.mxu0 %v4425_v3  ;;  %1362 = vmatprep.mubr.f32.mxu1 %v4425_v3 }
  0x78   : > { %1432 = vperm.xlu0 %2817, %v1422_v10   ;;  %1447 = vperm.xlu1 %2818, %v1425_v62  }
  0x7a   : > { %1241 = vmatmul.mubr.f32.gmra.mxu0 %v3040_v22  ;;  %1364 = vmatmul.mubr.f32.gmra.mxu1 %v3014_v15  ;;  %v1428_v15 = vld [vmem:[%s4406_s4 + $0x30] sm:$0xff] }
  0x7b   : > { %1246 = vmatprep.mubr.f32.mxu0 %v4425_v3  ;;  %1369 = vmatprep.mubr.f32.mxu1 %v4425_v3 }
  0x7c   : > { %1442 = vperm.xlu0 %2817, %v1424_v11   ;;  %1457 = vperm.xlu1 %2818, %v1427_v63  }
  0x7e   : > { %1248 = vmatmul.mubr.f32.gmra.mxu0 %v3267_v36  ;;  %1371 = vmatmul.mubr.f32.gmra.mxu1 %v3030_v21  ;;  %v2484_v21 = vld [vmem:[%s300_s17] sm:$0xff] }
  0x7f   : > { %1253 = vmatprep.mubr.f32.mxu0 %v4425_v3  ;;  %1376 = vmatprep.mubr.f32.mxu1 %v4425_v3 }
  0x80   : > { %1452 = vperm.xlu0 %2817, %v1426_v12   ;;  %1467 = vperm.xlu1 %2818, %v1429_v0  }
  0x82   : > { %1255 = vmatmul.mubr.f32.gmra.mxu0 %v3288_v56  ;;  %1378 = vmatmul.mubr.f32.gmra.mxu1 %v3040_v22  ;;  %v2488_v22 = vld [vmem:[%s300_s17 + $0x20] sm:$0xff] }
  0x83   : > { %1383 = vmatprep.mubr.f32.mxu1 %v4425_v3  ;;  %1574 = vmatprep.mubr.f32.mxu0 %v4425_v3 }
  0x84   : > { %1462 = vperm.xlu0 %2817, %v1428_v15   ;;  %2499 = vperm.xlu1 %2818, %v2485_v1  }
  0x86   : > { %1385 = vmatmul.mubr.f32.gmra.mxu1 %v3267_v36 }
  0x87   : > { %1390 = vmatprep.mubr.f32.mxu1 %v4425_v3 }
  0x88   : > { %2494 = vperm.xlu0 %2817, %v2484_v21   ;;  %2509 = vperm.xlu1 %2818, %v2487_v2  }
  0x8a   : > { %1392 = vmatmul.mubr.f32.gmra.mxu1 %v3288_v56 }
  0x8b   : > { %1807 = vmatprep.mubr.f32.mxu1 %v4425_v3 }
  0x8c   : > { %2504 = vperm.xlu0 %2817, %v2486_v7   ;;  %2519 = vperm.xlu1 %2818, %v2489_v8  }
  0x90   : > { %2514 = vperm.xlu0 %2817, %v2488_v22   ;;  %2529 = vperm.xlu1 %2818, %v2491_v16  }
  0x94   : > { %2524 = vperm.xlu0 %2817, %v2490_v26  }
  0xd7   : > { %v371_v34 = vpop.permute.xlu1 %370 }
  0xe1   : > { %v3526_v24 = vpop.permute.xlu0 %380 }
  0xe2   : > { %v366_v25 = vpop.permute.xlu1 %365 }
  0xe4   : > { %v495_v35 = vpop.f32.mrf.mxu0 }
  0xe5   : > { %v3528_v14 = vpop.permute.xlu0 %375 }
  0xe6   : > { %v356_v57 = vpop.permute.xlu1 %355  ;;  %v497_v43 = vpop.f32.mrf.mxu0 }
  0xe8   : > { %v506_v41 = vpop.f32.mrf.mxu0 }
  0xea   : > { %v361_v4 = vpop.permute.xlu0 %360  ;;  %v346_v49 = vpop.permute.xlu1 %345 }
  0xeb   : > { %v496_v36 = vadd.f32 %v495_v35, %v346_v49  ;;  %v508_v44 = vpop.f32.mrf.mxu0  ;;  %v498_v5 = vadd.f32 %v497_v43, %v346_v49 }
  0xed   : > { %v517_v6 = vpop.f32.mrf.mxu0 }
  0xee   : > { %v724_v56 = vpop.f32.mrf.mxu1  ;;  %v351_v50 = vpop.permute.xlu0 %350  ;;  %v518_v48 = vadd.f32 %v517_v6, %v356_v57 }
  0xef   : > { %v725_v42 = vadd.f32 %v724_v56, %v496_v36  ;;  %v507_v58 = vadd.f32 %v506_v41, %v351_v50  ;;  %v519_v17 = vpop.f32.mrf.mxu0  ;;  %v509_v53 = vadd.f32 %v508_v44, %v351_v50 }
  0xf0   : > { %v726_v51 = vpop.f32.mrf.mxu1  ;;  %v520_v32 = vadd.f32 %v519_v17, %v356_v57 }
  0xf1   : > { %v727_v9 = vadd.f32 %v726_v51, %v498_v5  ;;  %v528_v13 = vpop.f32.mrf.mxu0 }
  0xf2   : > { %v731_v28 = vpop.f32.mrf.mxu1  ;;  %v529_v33 = vadd.f32 %v528_v13, %v361_v4 }
  0xf3   : > { %v732_v59 = vadd.f32 %v731_v28, %v507_v58  ;;  %v530_v23 = vpop.f32.mrf.mxu0 }
  0xf4   : > { %v733_v31 = vpop.f32.mrf.mxu1  ;;  %v531_v40 = vadd.f32 %v530_v23, %v361_v4 }
  0xf5   : > { %v734_v18 = vadd.f32 %v733_v31, %v509_v53  ;;  %v539_v55 = vpop.f32.mrf.mxu0 }
  0xf6   : > { %v738_v19 = vpop.f32.mrf.mxu1  ;;  %v540_v45 = vadd.f32 %v539_v55, %v366_v25 }
  0xf7   : > { %v3530_v20 = vadd.f32 %v738_v19, %v518_v48  ;;  %v541_v29 = vpop.f32.mrf.mxu0 }
  0xf8   : > { %v740_v38 = vpop.f32.mrf.mxu1  ;;  %v542_v61 = vadd.f32 %v541_v29, %v366_v25 }
  0xf9   : > { %v3532_v30 = vadd.f32 %v740_v38, %v520_v32  ;;  %v550_v39 = vpop.f32.mrf.mxu0 }
  0xfa   : > { %v745_v37 = vpop.f32.mrf.mxu1  ;;  %v551_v10 = vadd.f32 %v550_v39, %v371_v34 }
  0xfb   : > { %v3534_v27 = vadd.f32 %v745_v37, %v529_v33  ;;  %v552_v46 = vpop.f32.mrf.mxu0 }
  0xfc   : > { %v747_v47 = vpop.f32.mrf.mxu1  ;;  %v553_v1 = vadd.f32 %v552_v46, %v371_v34 }
  0xfd   : > { %v3536_v52 = vadd.f32 %v747_v47, %v531_v40  ;;  %v561_v54 = vpop.f32.mrf.mxu0 }
  0xfe   : > { %v752_v60 = vpop.f32.mrf.mxu1  ;;  %v562_v21 = vadd.f32 %v561_v54, %v3528_v14 }
  0xff   : > { %v3538_v62 = vadd.f32 %v752_v60, %v540_v45  ;;  %v3540_v11 = vpop.f32.mrf.mxu0 }
 0x100   : > { %v754_v63 = vpop.f32.mrf.mxu1 }
 0x101   : > { %v3542_v12 = vadd.f32 %v754_v63, %v542_v61  ;;  %v3544_v0 = vpop.f32.mrf.mxu0  ;;  %v1414_v61 = vld [vmem:[%s4405_s3] sm:$0xff] }
 0x102   : > { %v759_v15 = vpop.f32.mrf.mxu1 }
 0x103   : > { %v3547_v2 = vadd.f32 %v759_v15, %v551_v10  ;;  %v3549_v7 = vpop.f32.mrf.mxu0  ;;  %v1471_v15 = vsel %vm383_vm0, %v1414_v61, 0 }
 0x104   : > { %v761_v8 = vpop.f32.mrf.mxu1 }
 0x105   : > { %v3551_v22 = vadd.f32 %v761_v8, %v553_v1  ;;  %v878_v26 = vpop.f32.mrf.mxu0 }
 0x106   : > { %v766_v16 = vpop.f32.mrf.mxu1  ;;  %v879_v35 = vadd.f32 %v878_v26, %v725_v42  ;;  %v3627_v26 = vand.u32 4294901760, %v1471_v15 }
 0x107   : > { %v3553_v25 = vadd.f32 %v766_v16, %v562_v21  ;;  %v880_v43 = vpop.f32.mrf.mxu0 }
 0x108   : > { %v3555_v57 = vpop.f32.mrf.mxu1  ;;  %v881_v41 = vadd.f32 %v880_v43, %v727_v9  ;;  %4462 = vst [vmem:[#allocation3_spill] sm:$0xff] %v3627_v26 }
 0x109   : > { %v886_v34 = vpop.f32.mrf.mxu0 }
 0x10a   : > { %v3557_v4 = vpop.f32.mrf.mxu1  ;;  %v887_v49 = vadd.f32 %v886_v34, %v732_v59  ;;  %v3635_v34 = vsub.f32 %v1471_v15, %v3627_v26 }
 0x10b   : > { %v888_v44 = vpop.f32.mrf.mxu0 }
 0x10c   : > { %v3559_v36 = vpop.f32.mrf.mxu1  ;;  %v889_v6 = vadd.f32 %v888_v44, %v734_v18  ;;  %4464 = vst [vmem:[#allocation5_spill] sm:$0xff] %v3635_v34 }
 0x10d   : > { %v3561_v56 = vpop.f32.mrf.mxu0 }
 0x10e   : > { %v1024_v5 = vpop.f32.mrf.mxu1 }
 0x10f   : > { %v3563_v50 = vadd.f32 %v1024_v5, %v879_v35  ;;  %v3565_v58 = vpop.f32.mrf.mxu0 }
 0x110   : > { %v1026_v42 = vpop.f32.mrf.mxu1 }
 0x111   : > { %v3567_v17 = vadd.f32 %v1026_v42, %v881_v41  ;;  %v3569_v51 = vpop.f32.mrf.mxu0  ;;  %v1415_v41 = vld [vmem:[%s4405_s3 + $0x8] sm:$0xff] }
 0x112   : > { %v1033_v9 = vpop.f32.mrf.mxu1 }
 0x113   : > { %v3571_v13 = vadd.f32 %v1033_v9, %v887_v49  ;;  %v3573_v28 = vpop.f32.mrf.mxu0  ;;  %v4429_v9 = vand.u32 4294901760, %v3635_v34 }
 0x114   : > { %v1035_v48 = vpop.f32.mrf.mxu1 }
 0x115   : > { %v3575_v53 = vadd.f32 %v1035_v48, %v889_v6  ;;  %v3577_v59 = vpop.f32.mrf.mxu0  ;;  %v1474_v6 = vsel %vm383_vm0, %v1415_v41, 0  ;;  %v1416_v41 = vld [vmem:[%s4405_s3 + $0x10] sm:$0xff] }
 0x116   : > { %v3579_v23 = vpop.f32.mrf.mxu1  ;;  %v3651_v3 = vand.u32 4294901760, %v1474_v6 }
 0x117   : > { %v3581_v31 = vpop.f32.mrf.mxu0 }
 0x118   : > { %v3583_v18 = vpop.f32.mrf.mxu1  ;;  %4471 = vst [vmem:[#allocation12_spill] sm:$0xff] %v3651_v3 }
 0x119   : > { %v3585_v55 = vpop.f32.mrf.mxu0 }
 0x11a   : > { %v3587_v19 = vpop.f32.mrf.mxu1 }
 0x11b   : > { %v3589_v32 = vpop.f32.mrf.mxu0 }
 0x11c   : > { %v3591_v33 = vpop.f32.mrf.mxu1 }
 0x11d   : > { %v3593_v29 = vpop.f32.mrf.mxu0 }
 0x11e   : > { %v3595_v38 = vpop.f32.mrf.mxu1 }
 0x11f   : > { %v3597_v39 = vpop.f32.mrf.mxu0 }
 0x120   : > { %v3599_v37 = vpop.f32.mrf.mxu1 }
 0x121   : > { %v3601_v40 = vpop.f32.mrf.mxu0 }
 0x122   : > { %v3603_v45 = vpop.f32.mrf.mxu1 }
 0x123   : > { %v3605_v46 = vpop.f32.mrf.mxu0 }
 0x124   : > { %v3607_v47 = vpop.f32.mrf.mxu1 }
 0x125   : > { %v1207_v60 = vpop.f32.mrf.mxu0 }
 0x126   : > { %v3609_v54 = vpop.f32.mrf.mxu1 }
 0x127   : > { %v3616_v63 = vpop.f32.mrf.mxu0 }
 0x128   : > { %v3614_v10 = vpop.f32.mrf.mxu1 }
 0x129   : > { %v3621_v21 = vpop.f32.mrf.mxu0 }
 0x12a   : > { %v3619_v1 = vpop.f32.mrf.mxu1 }
 0x12b   : > { %v3625_v16 = vpop.f32.mrf.mxu0 }
 0x12c   : > { %v3623_v8 = vpop.f32.mrf.mxu1  ;;  %4461 = vst [vmem:[#allocation2_spill] sm:$0xff] %v3625_v16 }
 0x12e   : > { %v3629_v35 = vpop.f32.mrf.mxu0  ;;  %v1344_v43 = vpop.f32.mrf.mxu1 }
 0x12f   : > { %4463 = vst [vmem:[#allocation4_spill] sm:$0xff] %v3629_v35 }
 0x130   : > { %v3637_v49 = vpop.f32.mrf.mxu0  ;;  %v3639_v44 = vpop.f32.mrf.mxu1 }
 0x131   : > { %4465 = vst [vmem:[#allocation6_spill] sm:$0xff] %v3637_v49  ;;  %4466 = vst [vmem:[#allocation7_spill] sm:$0xff] %v3639_v44  ;;  %v573_v49 = vadd.f32 %v3544_v0, %v3526_v24 }
 0x132   : > { %v3642_v5 = vpop.f32.mrf.mxu0  ;;  %v3644_v42 = vpop.f32.mrf.mxu1 }
 0x133   : > { %4467 = vst [vmem:[#allocation8_spill] sm:$0xff] %v3642_v5  ;;  %4468 = vst [vmem:[#allocation9_spill] sm:$0xff] %v3644_v42  ;;  %v3663_v42 = vsub.f32 %v3635_v34, %v4429_v9  ;;  %v575_v9 = vadd.f32 %v3549_v7, %v3526_v24  ;;  %v897_v24 = vadd.f32 %v3565_v58, %v3532_v30 }
 0x134   : > { %v3647_v48 = vpop.f32.mrf.mxu0  ;;  %v3649_v61 = vpop.f32.mrf.mxu1  ;;  %v903_v7 = vadd.f32 %v3569_v51, %v3534_v27  ;;  %v919_v30 = vadd.f32 %v3585_v55, %v3547_v2  ;;  %v1208_v58 = vadd.f32 %v1207_v60, %v3563_v50 }
 0x135   : > { %4469 = vst [vmem:[#allocation10_spill] sm:$0xff] %v3647_v48  ;;  %4470 = vst [vmem:[#allocation11_spill] sm:$0xff] %v3649_v61  ;;  %v3668_v61 = vsub.f32 %v1474_v6, %v3651_v3  ;;  %v1579_v34 = vand.u32 4294901760, %v3663_v42  ;;  %v895_v3 = vadd.f32 %v3561_v56, %v3530_v20  ;;  %v905_v20 = vadd.f32 %v3573_v28, %v3536_v52 }
 0x136   : > { %v3653_v15 = vpop.f32.mrf.mxu0  ;;  %v3655_v26 = vpop.f32.mrf.mxu1  ;;  %v1052_v27 = vadd.f32 %v3587_v19, %v903_v7  ;;  %v921_v52 = vadd.f32 %v3589_v32, %v3551_v22  ;;  %v1070_v50 = vadd.f32 %v3603_v45, %v919_v30  ;;  %v1210_v32 = vadd.f32 %v3616_v63, %v3567_v17 }
 0x137   : > { %4472 = vst [vmem:[#allocation13_spill] sm:$0xff] %v3653_v15  ;;  %4473 = vst [vmem:[#allocation14_spill] sm:$0xff] %v3655_v26  ;;  %v3673_v26 = vsel %vm383_vm0, %v1416_v41, 0  ;;  %v564_v15 = vadd.f32 %v3540_v11, %v3528_v14  ;;  %v4438_v41 = vand.u32 4294901760, %v3668_v61  ;;  %v774_v14 = vadd.f32 %v3557_v4, %v573_v49 }
 0x138   : > { %v1237_v5 = vpop.f32.mrf.mxu0  ;;  %v3665_v44 = vpop.f32.mrf.mxu1  ;;  %v3687_v16 = vand.u32 4294901760, %v3673_v26  ;;  %v776_v11 = vadd.f32 %v3559_v36, %v575_v9  ;;  %v1043_v56 = vadd.f32 %v3579_v23, %v895_v3  ;;  %v1045_v36 = vadd.f32 %v3583_v18, %v897_v24  ;;  %v4480_v24 = vld [vmem:[#allocation7_spill] sm:$0xff] }
 0x139   : > { %4474 = vst [vmem:[#allocation15_spill] sm:$0xff] %v3665_v44  ;;  %v769_v6 = vadd.f32 %v3555_v57, %v564_v15  ;;  %v911_v57 = vadd.f32 %v3577_v59, %v3538_v62  ;;  %v913_v15 = vadd.f32 %v3581_v31, %v3542_v12  ;;  %v1054_v62 = vadd.f32 %v3591_v33, %v905_v20 }
 0x13a   : > { %v1242_v48 = vpop.f32.mrf.mxu0  ;;  %v3677_v35 = vpop.f32.mrf.mxu1  ;;  %v927_v3 = vadd.f32 %v3593_v29, %v3553_v25  ;;  %v935_v23 = vadd.f32 %v3601_v40, %v774_v14  ;;  %v3716_v31 = vadd.f32 %v1344_v43, %v1208_v58  ;;  %v937_v22 = vadd.f32 %v3605_v46, %v776_v11  ;;  %v4479_v14 = vld [vmem:[#allocation6_spill] sm:$0xff]  ;;  %v4481_v20 = vld [vmem:[#allocation8_spill] sm:$0xff] }
 0x13b   : > { %v1061_v12 = vadd.f32 %v3595_v38, %v911_v57  ;;  %v929_v59 = vadd.f32 %v3597_v39, %v769_v6  ;;  %v1063_v2 = vadd.f32 %v3599_v37, %v913_v15  ;;  %v1072_v18 = vadd.f32 %v3607_v47, %v921_v52  ;;  %v4475_v39 = vld [vmem:[#allocation2_spill] sm:$0xff] }
 0x13c   : > { %v1244_v0 = vpop.f32.mrf.mxu0  ;;  %v1367_v44 = vpop.f32.mrf.mxu1  ;;  %v1079_v25 = vadd.f32 %v3609_v54, %v927_v3  ;;  %v1088_v33 = vadd.f32 %v3619_v1, %v935_v23  ;;  %v1215_v29 = vadd.f32 %v3621_v21, %v3571_v13  ;;  %v1090_v38 = vadd.f32 %v3623_v8, %v937_v22  ;;  %v4476_v54 = vld [vmem:[#allocation4_spill] sm:$0xff]  ;;  %v4477_v63 = vld [vmem:[#allocation10_spill] sm:$0xff]  ;;  %v4482_v3 = vld [vmem:[#allocation9_spill] sm:$0xff] }
 0x13d   : > { %v1081_v19 = vadd.f32 %v3614_v10, %v929_v59  ;;  %v1217_v37 = vadd.f32 %v4475_v39, %v3575_v53  ;;  %v1243_v40 = vadd.f32 %v1242_v48, %v1070_v50  ;;  %v1245_v45 = vadd.f32 %v1244_v0, %v1072_v18 }
 0x13e   : > { %v1249_v4 = vpop.f32.mrf.mxu0  ;;  %v1372_v49 = vpop.f32.mrf.mxu1  ;;  %v1222_v60 = vadd.f32 %v4476_v54, %v1043_v56  ;;  %v1398_v10 = vmax.f32 %v3716_v31, 0.0  ;;  %v1238_v43 = vadd.f32 %v1237_v5, %v1063_v2  ;;  %v1231_v1 = vadd.f32 %v4477_v63, %v1054_v62  ;;  %v4478_v9 = vld [vmem:[#allocation13_spill] sm:$0xff] }
 0x13f   : > { %v1250_v17 = vadd.f32 %v1249_v4, %v1079_v25  ;;  %v1236_v6 = vadd.f32 %v4478_v9, %v1061_v12  ;;  %v1224_v11 = vadd.f32 %v4479_v14, %v1045_v36  ;;  %v3737_v7 = vadd.f32 %v4480_v24, %v1210_v32 }
 0x140   : > { %v1251_v51 = vpop.f32.mrf.mxu0  ;;  %v1374_v28 = vpop.f32.mrf.mxu1  ;;  %v1229_v57 = vadd.f32 %v4481_v20, %v1052_v27  ;;  %v1368_v56 = vadd.f32 %v1367_v44, %v1231_v1  ;;  %v3741_v12 = vadd.f32 %v4482_v3, %v1215_v29  ;;  %v4483_v36 = vld [vmem:[#allocation15_spill] sm:$0xff] }
 0x141   : > { %v1252_v53 = vadd.f32 %v1251_v51, %v1081_v19  ;;  %v1375_v48 = vadd.f32 %v1374_v28, %v1238_v43  ;;  %v1373_v5 = vadd.f32 %v1372_v49, %v1236_v6  ;;  %v1361_v51 = vadd.f32 %v4483_v36, %v1224_v11  ;;  %v4484_v49 = vld [vmem:[#allocation14_spill] sm:$0xff] }
 0x142   : > { %v1379_v55 = vpop.f32.mrf.mxu1  ;;  %v1256_v46 = vpop.f32.mrf.mxu0  ;;  %v1366_v28 = vadd.f32 %v3677_v35, %v1229_v57  ;;  %v1359_v22 = vadd.f32 %v4484_v49, %v1222_v60  ;;  %v1405_v18 = vmax.f32 %v1368_v56, 0.0  ;;  %v4485_v35 = vld [vmem:[#allocation11_spill] sm:$0xff]  ;;  %v1399_v57 = vmax.f32 %v3737_v7, 0.0 }
 0x143   : > { %v1380_v13 = vadd.f32 %v1379_v55, %v1243_v40  ;;  %v1257_v30 = vadd.f32 %v1256_v46, %v1088_v33  ;;  %v1407_v23 = vmax.f32 %v1375_v48, 0.0  ;;  %v1406_v25 = vmax.f32 %v1373_v5, 0.0 }
 0x144   : > { %v1381_v47 = vpop.f32.mrf.mxu1  ;;  %v1258_v15 = vpop.f32.mrf.mxu0  ;;  %v1354_v40 = vadd.f32 %v4485_v35, %v1217_v37  ;;  %v1404_v46 = vmax.f32 %v1366_v28, 0.0  ;;  %v1402_v63 = vmax.f32 %v1359_v22, 0.0  ;;  %v3768_v37 = vand.u32 4294901760, %v1405_v18 }
 0x145   : > { %v1382_v21 = vadd.f32 %v1381_v47, %v1245_v45  ;;  %v1408_v59 = vmax.f32 %v1380_v13, 0.0  ;;  %v1259_v50 = vadd.f32 %v1258_v15, %v1090_v38  ;;  %v1403_v45 = vmax.f32 %v1361_v51, 0.0 }
 0x146   : > { %v1386_v8 = vpop.f32.mrf.mxu1  ;;  %v3755_v47 = vand.u32 4294901760, %v1407_v23  ;;  %v3763_v1 = vand.u32 4294901760, %v1406_v25  ;;  %v3780_v11 = vand.u32 4294901760, %v1404_v46 }
 0x147   : > { %v1387_v0 = vadd.f32 %v1386_v8, %v1250_v17  ;;  %v1409_v58 = vmax.f32 %v1382_v21, 0.0  ;;  %v3753_v38 = vand.u32 4294901760, %v1408_v59  ;;  %v1400_v17 = vmax.f32 %v3741_v12, 0.0 }
 0x148   : > { %v1388_v4 = vpop.f32.mrf.mxu1  ;;  %v1401_v8 = vmax.f32 %v1354_v40, 0.0  ;;  %v3778_v14 = vand.u32 4294901760, %v1403_v45  ;;  %v3786_v48 = vsub.f32 %v1407_v23, %v3755_v47  ;;  %v3798_v5 = vsub.f32 %v1406_v25, %v3763_v1  ;;  %v1417_v25 = vld [vmem:[%s4405_s3 + $0x18] sm:$0xff] }
 0x149   : > { %v1410_v52 = vmax.f32 %v1387_v0, 0.0  ;;  %v1389_v62 = vadd.f32 %v1388_v4, %v1252_v53  ;;  %v3748_v32 = vand.u32 4294901760, %v1409_v58  ;;  %v3783_v53 = vsub.f32 %v1408_v59, %v3753_v38 }
 0x14a   : > { %v1393_v2 = vpop.f32.mrf.mxu1  ;;  %v3795_v56 = vand.u32 4294901760, %v1400_v17  ;;  %v3802_v4 = vand.u32 4294901760, %v1402_v63  ;;  %v3821_v36 = vsub.f32 %v1403_v45, %v3778_v14  ;;  %v1717_v59 = vand.u32 4294901760, %v3786_v48 }
 0x14b   : > { %v1411_v27 = vmax.f32 %v1389_v62, 0.0  ;;  %v1394_v44 = vadd.f32 %v1393_v2, %v1257_v30  ;;  %v3746_v55 = vand.u32 4294901760, %v1410_v52  ;;  %v3771_v6 = vsub.f32 %v1409_v58, %v3748_v32 }
 0x14c   : > { %v1395_v19 = vpop.f32.mrf.mxu1  ;;  %v3805_v30 = vsub.f32 %v1405_v18, %v3768_v37  ;;  %v3813_v62 = vsub.f32 %v1404_v46, %v3780_v11  ;;  %v1711_v3 = vand.u32 4294901760, %v3783_v53  ;;  %v3833_v2 = vand.u32 4294901760, %v1398_v10 }
 0x14d   : > { %v3750_v33 = vand.u32 4294901760, %v1411_v27  ;;  %v1412_v29 = vmax.f32 %v1394_v44, 0.0  ;;  %v1396_v39 = vadd.f32 %v1395_v19, %v1259_v50  ;;  %v3766_v9 = vsub.f32 %v1410_v52, %v3746_v55 }
 0x14e   : > { %v1705_v7 = vand.u32 4294901760, %v3771_v6  ;;  %v3810_v52 = vand.u32 4294901760, %v1401_v8  ;;  %v3835_v23 = vand.u32 4294901760, %v1399_v57  ;;  %v4437_v50 = vand.u32 4294901760, %v3798_v5 }
 0x14f   : > { %v3758_v54 = vsub.f32 %v1411_v27, %v3750_v33  ;;  %v3760_v60 = vand.u32 4294901760, %v1412_v29  ;;  %v1413_v43 = vmax.f32 %v1396_v39, 0.0  ;;  %v1699_v15 = vand.u32 4294901760, %v3766_v9 }
 0x150   : > { %v3843_v44 = vsub.f32 %v1402_v63, %v3802_v4  ;;  %v1706_v22 = vsub.f32 %v3771_v6, %v1705_v7  ;;  %v4436_v18 = vand.u32 4294901760, %v3805_v30  ;;  %v3854_v19 = vsub.f32 %v1401_v8, %v3810_v52 }
 0x151   : > { %v3774_v13 = vsub.f32 %v1412_v29, %v3760_v60  ;;  %v3776_v21 = vand.u32 4294901760, %v1413_v43  ;;  %v1693_v20 = vand.u32 4294901760, %v3758_v54  ;;  %v1700_v27 = vsub.f32 %v3766_v9, %v1699_v15 }
 0x152   : > { %v4434_v29 = vand.u32 4294901760, %v3813_v62  ;;  %v1712_v39 = vsub.f32 %v3783_v53, %v1711_v3  ;;  %v3862_v40 = vsub.f32 %v1400_v17, %v3795_v56  ;;  %v1718_v46 = vsub.f32 %v3786_v48, %v1717_v59 }
 0x153   : > { %v1687_v0 = vand.u32 4294901760, %v3774_v13  ;;  %v3790_v24 = vsub.f32 %v1413_v43, %v3776_v21  ;;  %1511 = vmatprep.subr.mxu0 %v3776_v21  ;;  %v1694_v28 = vsub.f32 %v3758_v54, %v1693_v20  ;;  %v4435_v43 = vand.u32 4294901760, %v3821_v36 }
 0x154   : > { %1513 = vmatpush1.msra.mxu0 %v3760_v60  ;;  %v3870_v63 = vsub.f32 %v1399_v57, %v3835_v23  ;;  %v1724_v8 = vsub.f32 %v3798_v5, %v4437_v50  ;;  %v1701_v17 = vand.u32 4294901760, %v1700_v27  ;;  %v1730_v57 = vsub.f32 %v3805_v30, %v4436_v18 }
 0x155   : > { %1515 = vmatprep.subr.mxu0 %v3750_v33  ;;  %v1681_v58 = vand.u32 4294901760, %v3790_v24  ;;  %v1688_v12 = vsub.f32 %v3774_v13, %v1687_v0  ;;  %v1695_v45 = vand.u32 4294901760, %v1694_v28  ;;  %v1707_v28 = vand.u32 4294901760, %v1706_v22 }
 0x156   : > { %1517 = vmatpush1.msra.mxu0 %v3746_v55  ;;  %v3889_v27 = vsub.f32 %v1398_v10, %v3833_v2  ;;  %v1713_v22 = vand.u32 4294901760, %v1712_v39  ;;  %v1742_v31 = vsub.f32 %v3821_v36, %v4435_v43  ;;  %v1725_v39 = vand.u32 4294901760, %v1724_v8 }
 0x157   : > { %1519 = vmatprep.subr.mxu0 %v3748_v32  ;;  %v1682_v51 = vsub.f32 %v3790_v24, %v1681_v58  ;;  %v1689_v35 = vand.u32 4294901760, %v1688_v12  ;;  %v1480_v12 = vsel %vm383_vm0, %v1417_v25, 0  ;;  %v1736_v25 = vsub.f32 %v3813_v62, %v4434_v29  ;;  %v1418_v29 = vld [vmem:[%s4405_s3 + $0x20] sm:$0xff] }
 0x158   : > { %1521 = vmatpush1.msra.mxu0 %v3753_v38  ;;  %v3901_v10 = vand.u32 4294901760, %v1480_v12  ;;  %v1731_v43 = vand.u32 4294901760, %v1730_v57  ;;  %v4441_v50 = vand.u32 4294901760, %v3889_v27  ;;  %v1743_v57 = vand.u32 4294901760, %v1742_v31 }
 0x159   : > { %1523 = vmatprep.subr.mxu0 %v3755_v47  ;;  %v1683_v49 = vand.u32 4294901760, %v1682_v51  ;;  %v4439_v51 = vand.u32 4294901760, %v3843_v44  ;;  %v1737_v8 = vand.u32 4294901760, %v1736_v25  ;;  %v1419_v25 = vld [vmem:[%s4405_s3 + $0x28] sm:$0xff]  ;;  %v4486_v31 = vmov 0.0  }
 0x15a   : > { %1525 = vmatpush1.msra.mxu0 %v3763_v1 }
 0x15b   : > { %1527 = vmatprep.subr.mxu0 %v3768_v37  ;;  %1684 = vmatprep.subr.mxu1 %v1683_v49  ;;  %v3884_v49 = vsub.f32 %v3673_v26, %v3687_v16  ;;  %v1719_v26 = vand.u32 4294901760, %v1718_v46  ;;  %v4442_v46 = vand.u32 4294901760, %v3870_v63 }
 0x15c   : > { %1529 = vmatpush1.msra.mxu0 %v3780_v11  ;;  %1690 = vmatpush1.msra.mxu1 %v1689_v35  ;;  %v1753_v35 = vand.u32 4294901760, %v3854_v19 }
 0x15d   : > { %1531 = vmatprep.subr.mxu0 %v3778_v14  ;;  %1696 = vmatprep.subr.mxu1 %v1695_v45  ;;  %v1759_v45 = vand.u32 4294901760, %v3862_v40  ;;  %v4440_v18 = vand.u32 4294901760, %v3884_v49 }
 0x15e   : > { %1533 = vmatpush1.msra.mxu0 %v3802_v4  ;;  %1702 = vmatpush1.msra.mxu1 %v1701_v17  ;;  %v1589_v17 = vsub.f32 %v3668_v61, %v4438_v41  ;;  %v1483_v41 = vsel %vm383_vm0, %v1418_v29, 0 }
 0x15f   : > { %1535 = vmatprep.subr.mxu0 %v3810_v52  ;;  %1708 = vmatprep.subr.mxu1 %v1707_v28  ;;  %v1748_v28 = vsub.f32 %v3843_v44, %v4439_v51  ;;  %v1760_v51 = vsub.f32 %v3862_v40, %v1759_v45  ;;  %v1600_v42 = vsub.f32 %v3884_v49, %v4440_v18  ;;  %v1420_v18 = vld [vmem:[%s4405_s3 + $0x30] sm:$0xff] }
 0x160   : > { %1537 = vmatpush1.msra.mxu0 %v3795_v56  ;;  %1714 = vmatpush1.msra.mxu1 %v1713_v22  ;;  %v1754_v22 = vsub.f32 %v3854_v19, %v1753_v35  ;;  %v1590_v29 = vand.u32 4294901760, %v1589_v17 }
 0x161   : > { %1539 = vmatprep.subr.mxu0 %v3835_v23  ;;  %1720 = vmatprep.subr.mxu1 %v1719_v26  ;;  %v3928_v26 = vsub.f32 %v1480_v12, %v3901_v10  ;;  %v1772_v12 = vsub.f32 %v3889_v27, %v4441_v50 }
 0x162   : > { %1541 = vmatpush1.msra.mxu0 %v3833_v2  ;;  %1726 = vmatpush1.msra.mxu1 %v1725_v39  ;;  %v1766_v39 = vsub.f32 %v3870_v63, %v4442_v46  ;;  %v1755_v17 = vand.u32 4294901760, %v1754_v22  ;;  %v1601_v46 = vand.u32 4294901760, %v1600_v42 }
 0x163   : > { %1580 = vmatmul.mubr.f32.vlgmr.msra.gmra.mxu0 %v1579_v34  ;;  %1732 = vmatprep.subr.mxu1 %v1731_v43  ;;  %v1749_v34 = vand.u32 4294901760, %v1748_v28  ;;  %v3941_v43 = vand.u32 4294901760, %v1483_v41  ;;  %v1761_v28 = vand.u32 4294901760, %v1760_v51  ;;  %v1773_v51 = vand.u32 4294901760, %v1772_v12 }
 0x164   : > { %1882 = vmatprep.subr.mxu0 %v3790_v24  ;;  %1738 = vmatpush1.msra.mxu1 %v1737_v8  ;;  %v1486_v8 = vsel %vm383_vm0, %v1419_v25, 0  ;;  %v1767_v50 = vand.u32 4294901760, %v1766_v39 }
 0x165   : > { %1885 = vmatpush1.msra.mxu0 %v3774_v13  ;;  %1744 = vmatprep.subr.mxu1 %v1743_v57  ;;  %v4444_v57 = vand.u32 4294901760, %v3928_v26  ;;  %v3956_v22 = vsub.f32 %v1483_v41, %v3941_v43  ;;  %v3958_v25 = vand.u32 4294901760, %v1486_v8  ;;  %v1421_v41 = vld [vmem:[%s4405_s3 + $0x38] sm:$0xff]  ;;  %v4493_v13 = vand.u32 4294901760, %v3813_v62 }
 0x166   : > { %1888 = vmatprep.subr.mxu0 %v3758_v54  ;;  %1585 = vmatprep.mubr.f32.mxu0 %v4486_v31  ;;  %v1492_v12 = vsel %vm383_vm0, %v1421_v41, 0  ;;  %v4490_v54 = vand.u32 4294901760, %v3798_v5 }
 0x167   : > { %1750 = vmatpush1.msra.mxu1 %v1749_v34  ;;  %1891 = vmatpush1.msra.mxu0 %v3766_v9  ;;  %v1489_v34 = vsel %vm383_vm0, %v1420_v18, 0  ;;  %v4443_v18 = vand.u32 4294901760, %v3956_v22  ;;  %v3974_v39 = vsub.f32 %v1486_v8, %v3958_v25  ;;  %v4491_v9 = vand.u32 4294901760, %v3805_v30 }
 0x168   : > { %1591 = vmatmul.mubr.f32.gmra.mxu0 %v1590_v29  ;;  %1756 = vmatprep.subr.mxu1 %v1755_v17  ;;  %v1611_v29 = vsub.f32 %v3928_v26, %v4444_v57  ;;  %v3976_v42 = vand.u32 4294901760, %v1489_v34 }
 0x169   : > { %1894 = vmatprep.subr.mxu0 %v3771_v6  ;;  %1762 = vmatpush1.msra.mxu1 %v1761_v28  ;;  %v1622_v17 = vsub.f32 %v3956_v22, %v4443_v18  ;;  %v1632_v8 = vand.u32 4294901760, %v3974_v39 }
 0x16a   : > { %1897 = vmatpush1.msra.mxu0 %v3783_v53  ;;  %1768 = vmatprep.subr.mxu1 %v1767_v50  ;;  %v4487_v50 = vld [vmem:[#allocation3_spill] sm:$0xff]  ;;  %v3992_v28 = vsub.f32 %v1489_v34, %v3976_v42  ;;  %v4495_v53 = vand.u32 4294901760, %v3843_v44 }
 0x16b   : > { %1900 = vmatprep.subr.mxu0 %v3786_v48  ;;  %1596 = vmatprep.mubr.f32.mxu0 %v4486_v31  ;;  %v1623_v41 = vand.u32 4294901760, %v1622_v17  ;;  %v1633_v34 = vsub.f32 %v3974_v39, %v1632_v8 }
 0x16c   : > { %1774 = vmatpush1.msra.mxu1 %v1773_v51  ;;  %1903 = vmatpush1.msra.mxu0 %v3798_v5  ;;  %v3994_v51 = vand.u32 4294901760, %v1492_v12  ;;  %v1643_v18 = vand.u32 4294901760, %v3992_v28 }
 0x16d   : > { %1602 = vmatmul.mubr.f32.gmra.mxu0 %v1601_v46  ;;  %1809 = vmatmul.mubr.f32.vlgmr.msra.gmra.mxu1 %v4487_v50  ;;  %v1612_v46 = vand.u32 4294901760, %v1611_v29  ;;  %v4488_v29 = vld [vmem:[#allocation12_spill] sm:$0xff] }
 0x16e   : > { %1906 = vmatprep.subr.mxu0 %v3805_v30  ;;  %2042 = vmatprep.subr.mxu1 %v3776_v21  ;;  %v4008_v57 = vsub.f32 %v1492_v12, %v3994_v51  ;;  %v1644_v12 = vsub.f32 %v3992_v28, %v1643_v18 }
 0x16f   : > { %1909 = vmatpush1.msra.mxu0 %v3813_v62  ;;  %2044 = vmatpush1.msra.mxu1 %v3760_v60 }
 0x170   : > { %1912 = vmatprep.subr.mxu0 %v3821_v36  ;;  %2046 = vmatprep.subr.mxu1 %v3750_v33  ;;  %v1654_v17 = vand.u32 4294901760, %v4008_v57 }
 0x171   : > { %1607 = vmatprep.mubr.f32.mxu0 %v4486_v31  ;;  %1814 = vmatprep.mubr.f32.mxu1 %v4486_v31 }
 0x172   : > { %1915 = vmatpush1.msra.mxu0 %v3843_v44  ;;  %2048 = vmatpush1.msra.mxu1 %v3746_v55 }
 0x173   : > { %1613 = vmatmul.mubr.f32.gmra.mxu0 %v1612_v46  ;;  %1816 = vmatmul.mubr.f32.gmra.mxu1 %v4488_v29  ;;  %v1634_v46 = vand.u32 4294901760, %v1633_v34  ;;  %v1655_v34 = vsub.f32 %v4008_v57, %v1654_v17 }
 0x174   : > { %1918 = vmatprep.subr.mxu0 %v3854_v19  ;;  %2050 = vmatprep.subr.mxu1 %v3748_v32 }
 0x175   : > { %1921 = vmatpush1.msra.mxu0 %v3862_v40  ;;  %2052 = vmatpush1.msra.mxu1 %v3753_v38  ;;  %v1656_v24 = vand.u32 4294901760, %v1655_v34 }
 0x176   : > { %1924 = vmatprep.subr.mxu0 %v3870_v63  ;;  %2054 = vmatprep.subr.mxu1 %v3755_v47 }
 0x177   : > { %1618 = vmatprep.mubr.f32.mxu0 %v4486_v31  ;;  %1821 = vmatprep.mubr.f32.mxu1 %v4486_v31 }
 0x178   : > { %1927 = vmatpush1.msra.mxu0 %v3889_v27  ;;  %2056 = vmatpush1.msra.mxu1 %v3763_v1 }
 0x179   : > { %1624 = vmatmul.mubr.f32.gmra.mxu0 %v1623_v41  ;;  %1823 = vmatmul.mubr.f32.gmra.mxu1 %v3687_v16  ;;  %v1645_v41 = vand.u32 4294901760, %v1644_v12 }
 0x17a   : > { %2058 = vmatprep.subr.mxu1 %v3768_v37  ;;  %2197 = vmatprep.subr.mxu0 %v1681_v58  ;;  %v4489_v58 = vld [vmem:[#allocation5_spill] sm:$0xff] }
 0x17b   : > { %2060 = vmatpush1.msra.mxu1 %v3780_v11  ;;  %1629 = vmatprep.mubr.f32.mxu0 %v4486_v31  ;;  %v4492_v6 = vand.u32 4294901760, %v4489_v58 }
 0x17c   : > { %2062 = vmatprep.subr.mxu1 %v3778_v14  ;;  %1828 = vmatprep.mubr.f32.mxu1 %v4486_v31 }
 0x17d   : > { %2064 = vmatpush1.msra.mxu1 %v3802_v4  ;;  %1635 = vmatmul.mubr.f32.gmra.mxu0 %v1634_v46 }
 0x17e   : > { %1830 = vmatmul.mubr.f32.gmra.mxu1 %v3901_v10  ;;  %2066 = vmatprep.subr.mxu1 %v3810_v52 }
 0x17f   : > { %2068 = vmatpush1.msra.mxu1 %v3795_v56  ;;  %1640 = vmatprep.mubr.f32.mxu0 %v4486_v31 }
 0x180   : > { %2070 = vmatprep.subr.mxu1 %v3835_v23  ;;  %1835 = vmatprep.mubr.f32.mxu1 %v4486_v31 }
 0x181   : > { %2072 = vmatpush1.msra.mxu1 %v3833_v2  ;;  %1646 = vmatmul.mubr.f32.gmra.mxu0 %v1645_v41  ;;  %v1433_v41 = vpop.permute.xlu0 %1432 }
 0x182   : > { %1837 = vmatmul.mubr.f32.gmra.mxu1 %v3941_v43  ;;  %2364 = vmatprep.subr.mxu1 %v3776_v21  ;;  %v4494_v21 = vand.u32 4294901760, %v3821_v36 }
 0x183   : > { %1651 = vmatprep.mubr.f32.mxu0 %v4486_v31  ;;  %1842 = vmatprep.mubr.f32.mxu1 %v4486_v31 }
 0x185   : > { %1657 = vmatmul.mubr.f32.gmra.mxu0 %v1656_v24 }
 0x186   : > { %1844 = vmatmul.mubr.f32.gmra.mxu1 %v3958_v25  ;;  %1960 = vmatprep.mubr.f32.mxu0 %v4486_v31 }
 0x187   : > { %1849 = vmatprep.mubr.f32.mxu1 %v4486_v31 }
 0x189   : > { %1963 = vmatmul.mubr.f32.vlgmr.msra.gmra.mxu0 %v4489_v58  ;;  %v1438_v58 = vpop.permute.xlu1 %1437 }
 0x18a   : > { %1851 = vmatmul.mubr.f32.gmra.mxu1 %v3976_v42  ;;  %2201 = vmatpush1.msra.mxu0 %v1687_v0 }
 0x18b   : > { %2205 = vmatprep.subr.mxu0 %v1693_v20  ;;  %1856 = vmatprep.mubr.f32.mxu1 %v4486_v31 }
 0x18c   : > { %2209 = vmatpush1.msra.mxu0 %v1699_v15  ;;  %1968 = vmatprep.mubr.f32.mxu0 %v4486_v31 }
 0x18d   : > { %2213 = vmatprep.subr.mxu0 %v1705_v7  ;;  %1971 = vmatmul.mubr.f32.gmra.mxu0 %v3668_v61 }
 0x18e   : > { %1858 = vmatmul.mubr.f32.gmra.mxu1 %v3994_v51  ;;  %2217 = vmatpush1.msra.mxu0 %v1711_v3 }
 0x18f   : > { %2221 = vmatprep.subr.mxu0 %v1717_v59  ;;  %1976 = vmatprep.mubr.f32.mxu0 %v4486_v31 }
 0x190   : > { %2225 = vmatpush1.msra.mxu0 %v4490_v54  ;;  %2105 = vmatprep.mubr.f32.mxu1 %v4486_v31 }
 0x191   : > { %2229 = vmatprep.subr.mxu0 %v4491_v9  ;;  %1979 = vmatmul.mubr.f32.gmra.mxu0 %v3884_v49 }
 0x192   : > { %2109 = vmatmul.mubr.f32.vlgmr.msra.gmra.mxu1 %v4492_v6  ;;  %2233 = vmatpush1.msra.mxu0 %v4493_v13  ;;  %v1443_v13 = vpop.permute.xlu0 %1442 }
 0x193   : > { %2366 = vmatpush1.msra.mxu1 %v3760_v60  ;;  %2237 = vmatprep.subr.mxu0 %v4494_v21  ;;  %v4496_v60 = vand.u32 4294901760, %v3668_v61  ;;  %v4499_v61 = vand.u32 4294901760, %v3884_v49 }
 0x194   : > { %2368 = vmatprep.subr.mxu1 %v3750_v33  ;;  %2241 = vmatpush1.msra.mxu0 %v4495_v53  ;;  %v4498_v33 = vand.u32 4294901760, %v3889_v27 }
 0x195   : > { %2370 = vmatpush1.msra.mxu1 %v3746_v55  ;;  %1984 = vmatprep.mubr.f32.mxu0 %v4486_v31  ;;  %v4497_v55 = vand.u32 4294901760, %v3870_v63 }
 0x196   : > { %2114 = vmatprep.mubr.f32.mxu1 %v4486_v31  ;;  %2245 = vmatprep.subr.mxu0 %v1753_v35 }
 0x197   : > { %2372 = vmatprep.subr.mxu1 %v3748_v32  ;;  %1987 = vmatmul.mubr.f32.gmra.mxu0 %v3928_v26  ;;  %v4500_v32 = vand.u32 4294901760, %v3928_v26 }
 0x198   : > { %2118 = vmatmul.mubr.f32.gmra.mxu1 %v4496_v60  ;;  %2249 = vmatpush1.msra.mxu0 %v1759_v45 }
 0x199   : > { %2374 = vmatpush1.msra.mxu1 %v3753_v38  ;;  %2253 = vmatprep.subr.mxu0 %v4497_v55  ;;  %v4501_v38 = vand.u32 4294901760, %v3956_v22  ;;  %v1448_v55 = vpop.permute.xlu1 %1447 }
 0x19a   : > { %2376 = vmatprep.subr.mxu1 %v3755_v47  ;;  %2257 = vmatpush1.msra.mxu0 %v4498_v33 }
 0x19b   : > { %2378 = vmatpush1.msra.mxu1 %v3763_v1  ;;  %1992 = vmatprep.mubr.f32.mxu0 %v4486_v31 }
 0x19c   : > { %2123 = vmatprep.mubr.f32.mxu1 %v4486_v31  ;;  %2380 = vmatprep.subr.mxu1 %v3768_v37 }
 0x19d   : > { %1995 = vmatmul.mubr.f32.gmra.mxu0 %v3956_v22  ;;  %2127 = vmatmul.mubr.f32.gmra.mxu1 %v4499_v61 }
 0x19e   : > { %2382 = vmatpush1.msra.mxu1 %v3780_v11  ;;  %2000 = vmatprep.mubr.f32.mxu0 %v4486_v31 }
 0x19f   : > { %2384 = vmatprep.subr.mxu1 %v3778_v14  ;;  %2132 = vmatprep.mubr.f32.mxu1 %v4486_v31 }
 0x1a0   : > { %2386 = vmatpush1.msra.mxu1 %v3802_v4 }
 0x1a1   : > { %2388 = vmatprep.subr.mxu1 %v3810_v52  ;;  %2003 = vmatmul.mubr.f32.gmra.mxu0 %v3974_v39 }
 0x1a2   : > { %2136 = vmatmul.mubr.f32.gmra.mxu1 %v4500_v32  ;;  %2008 = vmatprep.mubr.f32.mxu0 %v4486_v31 }
 0x1a3   : > { %2390 = vmatpush1.msra.mxu1 %v3795_v56  ;;  %2141 = vmatprep.mubr.f32.mxu1 %v4486_v31 }
 0x1a4   : > { %2392 = vmatprep.subr.mxu1 %v3835_v23 }
 0x1a5   : > { %2394 = vmatpush1.msra.mxu1 %v3833_v2  ;;  %2011 = vmatmul.mubr.f32.gmra.mxu0 %v3992_v28 }
 0x1a6   : > { %2145 = vmatmul.mubr.f32.gmra.mxu1 %v4501_v38  ;;  %2016 = vmatprep.mubr.f32.mxu0 %v4486_v31  ;;  %v1453_v38 = vpop.permute.xlu0 %1452 }
 0x1a7   : > { %2150 = vmatprep.mubr.f32.mxu1 %v4486_v31 }
 0x1a9   : > { %2019 = vmatmul.mubr.f32.gmra.mxu0 %v4008_v57 }
 0x1aa   : > { %2154 = vmatmul.mubr.f32.gmra.mxu1 %v1632_v8  ;;  %2290 = vmatprep.mubr.f32.mxu0 %v4486_v31 }
 0x1ab   : > { %2159 = vmatprep.mubr.f32.mxu1 %v4486_v31 }
 0x1ad   : > { %2292 = vmatmul.mubr.f32.vlgmr.msra.gmra.mxu0 %v4487_v50 }
 0x1ae   : > { %2163 = vmatmul.mubr.f32.gmra.mxu1 %v1643_v18  ;;  %2297 = vmatprep.mubr.f32.mxu0 %v4486_v31 }
 0x1af   : > { %2168 = vmatprep.mubr.f32.mxu1 %v4486_v31 }
 0x1b1   : > { %2299 = vmatmul.mubr.f32.gmra.mxu0 %v4488_v29 }
 0x1b2   : > { %2172 = vmatmul.mubr.f32.gmra.mxu1 %v1654_v17  ;;  %2304 = vmatprep.mubr.f32.mxu0 %v4486_v31 }
 0x1b3   : > { %2427 = vmatprep.mubr.f32.mxu1 %v4486_v31 }
 0x1b5   : > { %2306 = vmatmul.mubr.f32.gmra.mxu0 %v3687_v16 }
 0x1b6   : > { %2429 = vmatmul.mubr.f32.vlgmr.msra.gmra.mxu1 %v4487_v50  ;;  %2311 = vmatprep.mubr.f32.mxu0 %v4486_v31 }
 0x1b7   : > { %2434 = vmatprep.mubr.f32.mxu1 %v4486_v31 }
 0x1b9   : > { %2313 = vmatmul.mubr.f32.gmra.mxu0 %v3901_v10 }
 0x1ba   : > { %2436 = vmatmul.mubr.f32.gmra.mxu1 %v4488_v29  ;;  %2318 = vmatprep.mubr.f32.mxu0 %v4486_v31 }
 0x1bb   : > { %2441 = vmatprep.mubr.f32.mxu1 %v4486_v31 }
 0x1bd   : > { %2320 = vmatmul.mubr.f32.gmra.mxu0 %v3941_v43 }
 0x1be   : > { %2443 = vmatmul.mubr.f32.gmra.mxu1 %v3687_v16  ;;  %2325 = vmatprep.mubr.f32.mxu0 %v4486_v31 }
 0x1bf   : > { %2448 = vmatprep.mubr.f32.mxu1 %v4486_v31 }
 0x1c1   : > { %2327 = vmatmul.mubr.f32.gmra.mxu0 %v3958_v25 }
 0x1c2   : > { %2450 = vmatmul.mubr.f32.gmra.mxu1 %v3901_v10  ;;  %2332 = vmatprep.mubr.f32.mxu0 %v4486_v31 }
 0x1c3   : > { %2455 = vmatprep.mubr.f32.mxu1 %v4486_v31 }
 0x1c5   : > { %2334 = vmatmul.mubr.f32.gmra.mxu0 %v3976_v42 }
 0x1c6   : > { %2457 = vmatmul.mubr.f32.gmra.mxu1 %v3941_v43  ;;  %2339 = vmatprep.mubr.f32.mxu0 %v4486_v31 }
 0x1c7   : > { %2462 = vmatprep.mubr.f32.mxu1 %v4486_v31 }
 0x1c9   : > { %2341 = vmatmul.mubr.f32.gmra.mxu0 %v3994_v51 }
 0x1ca   : > { %2464 = vmatmul.mubr.f32.gmra.mxu1 %v3958_v25 }
 0x1cb   : > { %2469 = vmatprep.mubr.f32.mxu1 %v4486_v31 }
 0x1ce   : > { %2471 = vmatmul.mubr.f32.gmra.mxu1 %v3976_v42 }
 0x1cf   : > { %2476 = vmatprep.mubr.f32.mxu1 %v4486_v31 }
 0x1d2   : > { %2478 = vmatmul.mubr.f32.gmra.mxu1 %v3994_v51 }
 0x223   : > { %v4165_v16 = vpop.f32.mrf.mxu0 }
 0x225   : > { %v4167_v47 = vpop.f32.mrf.mxu0 }
 0x228   : > { %v4169_v1 = vpop.f32.mrf.mxu0 }
 0x22a   : > { %v4171_v37 = vpop.f32.mrf.mxu0 }
 0x22d   : > { %v4173_v14 = vpop.f32.mrf.mxu0  ;;  %v4175_v11 = vpop.f32.mrf.mxu1 }
 0x22f   : > { %v4177_v48 = vpop.f32.mrf.mxu0  ;;  %v4179_v0 = vpop.f32.mrf.mxu1 }
 0x233   : > { %v4181_v20 = vpop.f32.mrf.mxu0  ;;  %v4183_v56 = vpop.f32.mrf.mxu1 }
 0x235   : > { %v4185_v5 = vpop.f32.mrf.mxu0  ;;  %v4187_v15 = vpop.f32.mrf.mxu1 }
 0x239   : > { %v4189_v4 = vpop.f32.mrf.mxu0  ;;  %v4191_v30 = vpop.f32.mrf.mxu1 }
 0x23b   : > { %v4193_v7 = vpop.f32.mrf.mxu0  ;;  %v4195_v52 = vpop.f32.mrf.mxu1 }
 0x23d   : > { %v4197_v62 = vpop.f32.mrf.mxu0 }
 0x23e   : > { %v4199_v3 = vpop.f32.mrf.mxu1 }
 0x23f   : > { %v4201_v36 = vpop.f32.mrf.mxu0 }
 0x240   : > { %v4203_v59 = vpop.f32.mrf.mxu1 }
 0x241   : > { %v4205_v2 = vpop.f32.mrf.mxu0 }
 0x242   : > { %v4207_v23 = vpop.f32.mrf.mxu1 }
 0x243   : > { %v4209_v44 = vpop.f32.mrf.mxu0 }
 0x244   : > { %v4211_v19 = vpop.f32.mrf.mxu1 }
 0x245   : > { %v4213_v40 = vpop.f32.mrf.mxu0 }
 0x246   : > { %v4215_v63 = vpop.f32.mrf.mxu1 }
 0x247   : > { %v4217_v49 = vpop.f32.mrf.mxu0 }
 0x248   : > { %v4219_v27 = vpop.f32.mrf.mxu1 }
 0x249   : > { %v1964_v35 = vpop.f32.mrf.mxu0 }
 0x24a   : > { %v4221_v45 = vpop.f32.mrf.mxu1 }
 0x24b   : > { %v1966_v10 = vpop.f32.mrf.mxu0 }
 0x24c   : > { %v4223_v26 = vpop.f32.mrf.mxu1 }
 0x24d   : > { %v4225_v43 = vpop.f32.mrf.mxu0 }
 0x24e   : > { %v4227_v31 = vpop.f32.mrf.mxu1 }
 0x24f   : > { %v4229_v57 = vpop.f32.mrf.mxu0 }
 0x250   : > { %v4231_v22 = vpop.f32.mrf.mxu1 }
 0x251   : > { %v4233_v25 = vpop.f32.mrf.mxu0 }
 0x252   : > { %v2110_v50 = vpop.f32.mrf.mxu1 }
 0x253   : > { %v4235_v18 = vpop.f32.mrf.mxu0 }
 0x254   : > { %v4237_v39 = vpop.f32.mrf.mxu1 }
 0x257   : > { %v4239_v42 = vpop.f32.mrf.mxu0 }
 0x258   : > { %v4241_v8 = vpop.f32.mrf.mxu1 }
 0x259   : > { %v4243_v28 = vpop.f32.mrf.mxu0 }
 0x25a   : > { %v4245_v51 = vpop.f32.mrf.mxu1 }
 0x25d   : > { %v4247_v29 = vpop.f32.mrf.mxu0  ;;  %v4249_v46 = vpop.f32.mrf.mxu1 }
 0x25f   : > { %v4251_v12 = vpop.f32.mrf.mxu0  ;;  %v4253_v17 = vpop.f32.mrf.mxu1 }
 0x260   : > { %4502 = vst [vmem:[#allocation2_spill] sm:$0xff] %v4251_v12  ;;  %4503 = vst [vmem:[#allocation4_spill] sm:$0xff] %v4253_v17  ;;  %v1606_v12 = vadd.f32 %v4177_v48, %v1443_v13  ;;  %v1628_v48 = vadd.f32 %v4193_v7, %v1453_v38 }
 0x261   : > { %v4255_v34 = vpop.f32.mrf.mxu0 }
 0x262   : > { %4504 = vst [vmem:[#allocation10_spill] sm:$0xff] %v4255_v34  ;;  %v4257_v24 = vpop.f32.mrf.mxu1  ;;  %v1584_v34 = vadd.f32 %v4167_v47, %v1433_v41 }
 0x263   : > { %4505 = vst [vmem:[#allocation13_spill] sm:$0xff] %v4257_v24  ;;  %v4259_v54 = vpop.f32.mrf.mxu0  ;;  %v1595_v24 = vadd.f32 %v4171_v37, %v1438_v58 }
 0x264   : > { %4506 = vst [vmem:[#allocation6_spill] sm:$0xff] %v4259_v54  ;;  %v4261_v9 = vpop.f32.mrf.mxu1 }
 0x265   : > { %4507 = vst [vmem:[#allocation7_spill] sm:$0xff] %v4261_v9  ;;  %v4263_v6 = vpop.f32.mrf.mxu0  ;;  %v1582_v9 = vadd.f32 %v4165_v16, %v1433_v41  ;;  %v1615_v16 = vadd.f32 %v4181_v20, %v1448_v55  ;;  %v1617_v41 = vadd.f32 %v4185_v5, %v1448_v55 }
 0x266   : > { %4508 = vst [vmem:[#allocation8_spill] sm:$0xff] %v4263_v6  ;;  %v4265_v21 = vpop.f32.mrf.mxu1 }
 0x267   : > { %4509 = vst [vmem:[#allocation9_spill] sm:$0xff] %v4265_v21  ;;  %v4267_v53 = vpop.f32.mrf.mxu0 }
 0x268   : > { %4510 = vst [vmem:[#allocation15_spill] sm:$0xff] %v4267_v53  ;;  %v4269_v60 = vpop.f32.mrf.mxu1  ;;  %v1458_v53 = vpop.permute.xlu1 %1457 }
 0x269   : > { %4511 = vst [vmem:[#allocation14_spill] sm:$0xff] %v4269_v60  ;;  %v4271_v33 = vpop.f32.mrf.mxu0  ;;  %v1593_v60 = vadd.f32 %v4169_v1, %v1438_v58  ;;  %v1820_v1 = vadd.f32 %v4187_v15, %v1595_v24  ;;  %v1834_v24 = vadd.f32 %v4203_v59, %v1617_v41 }
 0x26a   : > { %4512 = vst [vmem:[#allocation11_spill] sm:$0xff] %v4271_v33  ;;  %v4273_v61 = vpop.f32.mrf.mxu1  ;;  %v1811_v33 = vadd.f32 %v4175_v11, %v1582_v9  ;;  %v1463_v11 = vpop.permute.xlu0 %1462  ;;  %v1626_v9 = vadd.f32 %v4189_v4, %v1453_v38 }
 0x26b   : > { %4513 = vst [vmem:[#allocation3_spill] sm:$0xff] %v4273_v61  ;;  %v4275_v32 = vpop.f32.mrf.mxu0  ;;  %v1818_v47 = vadd.f32 %v4183_v56, %v1593_v60  ;;  %v1832_v56 = vadd.f32 %v4199_v3, %v1615_v16  ;;  %v1648_v4 = vadd.f32 %v4205_v2, %v1463_v11 }
 0x26c   : > { %4514 = vst [vmem:[#allocation12_spill] sm:$0xff] %v4275_v32  ;;  %v4277_v54 = vpop.f32.mrf.mxu1  ;;  %v1604_v32 = vadd.f32 %v4173_v14, %v1443_v13  ;;  %v1965_v37 = vadd.f32 %v1964_v35, %v1811_v33  ;;  %v1639_v35 = vadd.f32 %v4201_v36, %v1458_v53 }
 0x26d   : > { %4515 = vst [vmem:[#allocation5_spill] sm:$0xff] %v4277_v54  ;;  %v2293_v6 = vpop.f32.mrf.mxu0  ;;  %v1813_v54 = vadd.f32 %v4179_v0, %v1584_v34  ;;  %v1827_v0 = vadd.f32 %v4195_v52, %v1606_v12  ;;  %v1637_v34 = vadd.f32 %v4197_v62, %v1458_v53  ;;  %v1468_v52 = vpop.permute.xlu1 %1467  ;;  %v1650_v12 = vadd.f32 %v4209_v44, %v1463_v11 }
 0x26e   : > { %v4281_v21 = vpop.f32.mrf.mxu1  ;;  %v1825_v14 = vadd.f32 %v4191_v30, %v1604_v32  ;;  %v2111_v13 = vadd.f32 %v2110_v50, %v1965_v37  ;;  %v1839_v30 = vadd.f32 %v4207_v23, %v1626_v9  ;;  %v1973_v62 = vadd.f32 %v4225_v43, %v1818_v47  ;;  %v2495_v33 = vpop.permute.xlu0 %2494  ;;  %v4516_v9 = vld [vmem:[#allocation4_spill] sm:$0xff] }
 0x26f   : > { %v2295_v61 = vpop.f32.mrf.mxu0  ;;  %v1967_v5 = vadd.f32 %v1966_v10, %v1813_v54  ;;  %v1841_v54 = vadd.f32 %v4211_v19, %v1628_v48  ;;  %v1659_v36 = vadd.f32 %v4213_v40, %v1468_v52  ;;  %v1846_v59 = vadd.f32 %v4215_v63, %v1637_v34 }
 0x270   : > { %v4290_v17 = vpop.f32.mrf.mxu1  ;;  %v2294_v10 = vadd.f32 %v2293_v6, %v2111_v13  ;;  %v1661_v2 = vadd.f32 %v4217_v49, %v1468_v52  ;;  %v1975_v53 = vadd.f32 %v4229_v57, %v1820_v1  ;;  %v2120_v60 = vadd.f32 %v4241_v8, %v1973_v62  ;;  %v4518_v13 = vld [vmem:[#allocation13_spill] sm:$0xff]  ;;  %v4520_v62 = vld [vmem:[#allocation7_spill] sm:$0xff] }
 0x271   : > { %v2300_v58 = vpop.f32.mrf.mxu0  ;;  %v2113_v3 = vadd.f32 %v4237_v39, %v1967_v5  ;;  %v1848_v39 = vadd.f32 %v4219_v27, %v1639_v35  ;;  %v1853_v6 = vadd.f32 %v4221_v45, %v1648_v4  ;;  %v1855_v19 = vadd.f32 %v4223_v26, %v1650_v12 }
 0x272   : > { %v4299_v20 = vpop.f32.mrf.mxu1  ;;  %v4322_v40 = vadd.f32 %v4227_v31, %v1659_v36  ;;  %v2122_v49 = vadd.f32 %v4245_v51, %v1975_v53  ;;  %v2301_v32 = vadd.f32 %v2300_v58, %v2120_v60  ;;  %v1981_v16 = vadd.f32 %v4233_v25, %v1825_v14  ;;  %v2500_v51 = vpop.permute.xlu1 %2499 }
 0x273   : > { %v2302_v15 = vpop.f32.mrf.mxu0  ;;  %v2296_v44 = vadd.f32 %v2295_v61, %v2113_v3  ;;  %v4326_v61 = vadd.f32 %v4231_v22, %v1661_v2  ;;  %v1983_v27 = vadd.f32 %v4235_v18, %v1827_v0  ;;  %v1989_v45 = vadd.f32 %v4239_v42, %v1832_v56  ;;  %v4517_v56 = vld [vmem:[#allocation2_spill] sm:$0xff] }
 0x274   : > { %v4307_v7 = vpop.f32.mrf.mxu1  ;;  %v2303_v47 = vadd.f32 %v2302_v15, %v2122_v49  ;;  %v1991_v58 = vadd.f32 %v4243_v28, %v1834_v24  ;;  %v1997_v11 = vadd.f32 %v4247_v29, %v1839_v30  ;;  %v2129_v22 = vadd.f32 %v4249_v46, %v1981_v16  ;;  %v4519_v30 = vld [vmem:[#allocation10_spill] sm:$0xff] }
 0x275   : > { %v2307_v50 = vpop.f32.mrf.mxu0  ;;  %v2131_v48 = vadd.f32 %v4516_v9, %v1983_v27  ;;  %v1999_v5 = vadd.f32 %v4517_v56, %v1841_v54  ;;  %v2138_v15 = vadd.f32 %v4518_v13, %v1989_v45  ;;  %v2005_v12 = vadd.f32 %v4519_v30, %v1846_v59  ;;  %v4523_v27 = vld [vmem:[#allocation8_spill] sm:$0xff]  ;;  %v4526_v9 = vld [vmem:[#allocation11_spill] sm:$0xff] }
 0x276   : > { %v2430_v23 = vpop.f32.mrf.mxu1  ;;  %v2308_v35 = vadd.f32 %v2307_v50, %v2129_v22  ;;  %v2140_v3 = vadd.f32 %v4520_v62, %v1991_v58  ;;  %v2510_v16 = vpop.permute.xlu1 %2509  ;;  %v2013_v45 = vadd.f32 %v4523_v27, %v1853_v6 }
 0x277   : > { %v2431_v55 = vadd.f32 %v2430_v23, %v2294_v10  ;;  %v2309_v43 = vpop.f32.mrf.mxu0  ;;  %v2505_v23 = vpop.permute.xlu0 %2504 }
 0x278   : > { %v2432_v63 = vpop.f32.mrf.mxu1  ;;  %v2310_v4 = vadd.f32 %v2309_v43, %v2131_v48  ;;  %v4522_v43 = vld [vmem:[#allocation9_spill] sm:$0xff]  ;;  %v2021_v48 = vadd.f32 %v4526_v9, %v4322_v40 }
 0x279   : > { %v2532_v57 = vadd.f32 %v2495_v33, %v2431_v55  ;;  %v2433_v38 = vadd.f32 %v2432_v63, %v2296_v44  ;;  %v2314_v8 = vpop.f32.mrf.mxu0  ;;  %v4521_v44 = vld [vmem:[#allocation6_spill] sm:$0xff] }
 0x27a   : > { %v2437_v26 = vpop.f32.mrf.mxu1  ;;  %v2315_v10 = vadd.f32 %v2314_v8, %v2138_v15  ;;  %v2007_v55 = vadd.f32 %v4521_v44, %v1848_v39  ;;  %v4528_v15 = vld [vmem:[#allocation12_spill] sm:$0xff] }
 0x27b   : > { %v2548_v31 = vsub.f32 0.0, %v2532_v57  ;;  %v2533_v41 = vadd.f32 %v2495_v33, %v2433_v38  ;;  %v2438_v1 = vadd.f32 %v2437_v26, %v2301_v32  ;;  %v2316_v37 = vpop.f32.mrf.mxu0  ;;  %v2147_v33 = vadd.f32 %v4522_v43, %v1997_v11  ;;  %v4524_v26 = vld [vmem:[#allocation15_spill] sm:$0xff]  ;;  %v4525_v11 = vld [vmem:[#allocation14_spill] sm:$0xff]  ;;  %v2515_v13 = vpop.permute.xlu0 %2514 }
 0x27c   : > { %v2439_v25 = vpop.f32.mrf.mxu1  ;;  %v2317_v63 = vadd.f32 %v2316_v37, %v2140_v3  ;;  %v2149_v22 = vadd.f32 %v4525_v11, %v1999_v5 }
 0x27d   : > { %v2564_v14 = vmul.f32 1.442695, %v2548_v31  ;;  %v2549_v18 = vsub.f32 0.0, %v2533_v41  ;;  %v2534_v0 = vadd.f32 %v2500_v51, %v2438_v1  ;;  %v2440_v42 = vadd.f32 %v2439_v25, %v2303_v47  ;;  %v2321_v34 = vpop.f32.mrf.mxu0  ;;  %v4527_v25 = vld [vmem:[#allocation3_spill] sm:$0xff] }
 0x27e   : > { %v2444_v52 = vpop.f32.mrf.mxu1  ;;  %v2015_v47 = vadd.f32 %v4524_v26, %v1855_v19  ;;  %v2322_v31 = vadd.f32 %v2321_v34, %v2147_v33 }
 0x27f   : > { %2819 = vpow2.f32 %v2564_v14  ;;  %v2566_v28 = vmul.f32 1.442695, %v2549_v18  ;;  %v2550_v29 = vsub.f32 0.0, %v2534_v0  ;;  %v2535_v24 = vadd.f32 %v2500_v51, %v2440_v42  ;;  %v2323_v46 = vpop.f32.mrf.mxu0 }
 0x280   : > { %v2445_v36 = vadd.f32 %v2444_v52, %v2308_v35  ;;  %v2446_v2 = vpop.f32.mrf.mxu1  ;;  %v2156_v14 = vadd.f32 %v4527_v25, %v2005_v12  ;;  %v2023_v35 = vadd.f32 %v4528_v15, %v4326_v61  ;;  %v2165_v12 = vadd.f32 %v4281_v21, %v2013_v45  ;;  %v2525_v45 = vpop.permute.xlu0 %2524 }
 0x281   : > { %2821 = vpow2.f32 %v2566_v28  ;;  %v2568_v54 = vmul.f32 1.442695, %v2550_v29  ;;  %v2551_v53 = vsub.f32 0.0, %v2535_v24  ;;  %v2447_v60 = vadd.f32 %v2446_v2, %v2310_v4  ;;  %v2328_v50 = vpop.f32.mrf.mxu0  ;;  %v4529_v24 = vld [vmem:[#allocation5_spill] sm:$0xff] }
 0x282   : > { %v2536_v49 = vadd.f32 %v2505_v23, %v2445_v36  ;;  %v2451_v32 = vpop.f32.mrf.mxu1  ;;  %v2324_v4 = vadd.f32 %v2323_v46, %v2149_v22  ;;  %v2329_v52 = vadd.f32 %v2328_v50, %v2156_v14  ;;  %v2158_v30 = vadd.f32 %v4529_v24, %v2007_v55 }
 0x283   : > { %2823 = vpow2.f32 %v2568_v54  ;;  %v2570_v59 = vmul.f32 1.442695, %v2551_v53  ;;  %v2537_v57 = vadd.f32 %v2505_v23, %v2447_v60  ;;  %v2452_v38 = vadd.f32 %v2451_v32, %v2315_v10  ;;  %v2330_v8 = vpop.f32.mrf.mxu0  ;;  %v2520_v54 = vpop.permute.xlu1 %2519 }
 0x284   : > { %v2552_v41 = vsub.f32 0.0, %v2536_v49  ;;  %v2453_v1 = vpop.f32.mrf.mxu1  ;;  %v2167_v62 = vadd.f32 %v4290_v17, %v2015_v47  ;;  %v2174_v53 = vadd.f32 %v4299_v20, %v2021_v48  ;;  %v2331_v60 = vadd.f32 %v2330_v8, %v2158_v30 }
 0x285   : > { %2825 = vpow2.f32 %v2570_v59  ;;  %v2553_v39 = vsub.f32 0.0, %v2537_v57  ;;  %v2538_v51 = vadd.f32 %v2510_v16, %v2452_v38  ;;  %v2454_v58 = vadd.f32 %v2453_v1, %v2317_v63  ;;  %v2335_v37 = vpop.f32.mrf.mxu0 }
 0x286   : > { %v2572_v18 = vmul.f32 1.442695, %v2552_v41  ;;  %v2458_v0 = vpop.f32.mrf.mxu1  ;;  %v2336_v50 = vadd.f32 %v2335_v37, %v2165_v12  ;;  %v2176_v63 = vadd.f32 %v4307_v7, %v2023_v35 }
 0x287   : > { %v2574_v6 = vmul.f32 1.442695, %v2553_v39  ;;  %v2554_v42 = vsub.f32 0.0, %v2538_v51  ;;  %v2539_v19 = vadd.f32 %v2510_v16, %v2454_v58  ;;  %v2459_v34 = vadd.f32 %v2458_v0, %v2322_v31  ;;  %v2337_v56 = vpop.f32.mrf.mxu0  ;;  %v2530_v14 = vpop.permute.xlu1 %2529 }
 0x288   : > { %2827 = vpow2.f32 %v2572_v18  ;;  %v2460_v5 = vpop.f32.mrf.mxu1  ;;  %v2338_v49 = vadd.f32 %v2337_v56, %v2167_v62 }
 0x289   : > { %2829 = vpow2.f32 %v2574_v6  ;;  %v2576_v28 = vmul.f32 1.442695, %v2554_v42  ;;  %v2555_v40 = vsub.f32 0.0, %v2539_v19  ;;  %v2540_v29 = vadd.f32 %v2515_v13, %v2459_v34  ;;  %v2342_v61 = vpop.f32.mrf.mxu0 }
 0x28a   : > { %v2461_v3 = vadd.f32 %v2460_v5, %v2324_v4  ;;  %v2465_v10 = vpop.f32.mrf.mxu1  ;;  %v2343_v47 = vadd.f32 %v2342_v61, %v2174_v53  ;;  %v2884_v53 = vld [vmem:[%s3037_s18 + $0x8] sm:$0xff] }
 0x28b   : > { %2831 = vpow2.f32 %v2576_v28  ;;  %v2578_v36 = vmul.f32 1.442695, %v2555_v40  ;;  %v2556_v2 = vsub.f32 0.0, %v2540_v29  ;;  %v2466_v23 = vadd.f32 %v2465_v10, %v2329_v52  ;;  %v2344_v27 = vpop.f32.mrf.mxu0 }
 0x28c   : > { %v2820_v46 = vpop.eup %2819  ;;  %v2541_v44 = vadd.f32 %v2515_v13, %v2461_v3  ;;  %v2467_v43 = vpop.f32.mrf.mxu1  ;;  %v2345_v58 = vadd.f32 %v2344_v27, %v2176_v63 }
 0x28d   : > { %v2596_v55 = vadd.f32 1.0, %v2820_v46  ;;  %2833 = vpow2.f32 %v2578_v36  ;;  %v2580_v21 = vmul.f32 1.442695, %v2556_v2  ;;  %v2542_v33 = vadd.f32 %v2520_v54, %v2466_v23  ;;  %v2883_v2 = vld [vmem:[%s3037_s18] sm:$0xff] }
 0x28e   : > { %v2822_v17 = vpop.eup %2821  ;;  %v2557_v32 = vsub.f32 0.0, %v2541_v44  ;;  %v2468_v59 = vadd.f32 %v2467_v43, %v2331_v60  ;;  %v2472_v57 = vpop.f32.mrf.mxu1 }
 0x28f   : > { %2835 = vrcp.f32 %v2596_v55  ;;  %v2597_v38 = vadd.f32 1.0, %v2822_v17  ;;  %v2558_v16 = vsub.f32 0.0, %v2542_v33  ;;  %v2473_v20 = vadd.f32 %v2472_v57, %v2336_v50  ;;  %v2885_v55 = vld [vmem:[%s3037_s18 + $0x10] sm:$0xff] }
 0x290   : > { %v2824_v8 = vpop.eup %2823  ;;  %2837 = vpow2.f32 %v2580_v21  ;;  %v2582_v26 = vmul.f32 1.442695, %v2557_v32  ;;  %v2543_v31 = vadd.f32 %v2520_v54, %v2468_v59  ;;  %v2474_v41 = vpop.f32.mrf.mxu1 }
 0x291   : > { %2839 = vrcp.f32 %v2597_v38  ;;  %v2598_v1 = vadd.f32 1.0, %v2824_v8  ;;  %v2584_v39 = vmul.f32 1.442695, %v2558_v16  ;;  %v2544_v7 = vadd.f32 %v2525_v45, %v2473_v20  ;;  %v2887_v20 = vld [vmem:[%s3037_s18 + $0x20] sm:$0xff] }
 0x292   : > { %v2826_v51 = vpop.eup %2825  ;;  %2841 = vpow2.f32 %v2582_v26  ;;  %v2559_v37 = vsub.f32 0.0, %v2543_v31  ;;  %v2475_v11 = vadd.f32 %v2474_v41, %v2338_v49  ;;  %v2479_v22 = vpop.f32.mrf.mxu1  ;;  %v2886_v49 = vld [vmem:[%s3037_s18 + $0x18] sm:$0xff]  ;;  %v2888_v26 = vld [vmem:[%s3037_s18 + $0x28] sm:$0xff] }
 0x293   : > { %2843 = vrcp.f32 %v2598_v1  ;;  %v2599_v9 = vadd.f32 1.0, %v2826_v51  ;;  %v2560_v48 = vsub.f32 0.0, %v2544_v7  ;;  %v2480_v25 = vadd.f32 %v2479_v22, %v2343_v47 }
 0x294   : > { %2845 = vpow2.f32 %v2584_v39  ;;  %v2586_v18 = vmul.f32 1.442695, %v2559_v37  ;;  %v2545_v0 = vadd.f32 %v2525_v45, %v2475_v11  ;;  %v2481_v6 = vpop.f32.mrf.mxu1  ;;  %v2889_v39 = vld [vmem:[%s3037_s18 + $0x30] sm:$0xff]  ;;  %v2890_v11 = vld [vmem:[%s3037_s18 + $0x38] sm:$0xff] }
 0x295   : > { %v2828_v42 = vpop.eup %2827  ;;  %2847 = vrcp.f32 %v2599_v9  ;;  %v2588_v19 = vmul.f32 1.442695, %v2560_v48  ;;  %v2546_v34 = vadd.f32 %v2530_v14, %v2480_v25  ;;  %v2482_v56 = vadd.f32 %v2481_v6, %v2345_v58  ;;  %v2891_v25 = vld [vmem:[%s3037_s18 + $0x40] sm:$0xff] }
 0x296   : > { %v2830_v13 = vpop.eup %2829  ;;  %v2600_v15 = vadd.f32 1.0, %v2828_v42  ;;  %2849 = vpow2.f32 %v2586_v18  ;;  %v2561_v35 = vsub.f32 0.0, %v2545_v0  ;;  %v2892_v0 = vld [vmem:[%s3037_s18 + $0x48] sm:$0xff] }
 0x297   : > { %v2601_v4 = vadd.f32 1.0, %v2830_v13  ;;  %2851 = vpow2.f32 %v2588_v19  ;;  %v2562_v52 = vsub.f32 0.0, %v2546_v34  ;;  %v2547_v5 = vadd.f32 %v2530_v14, %v2482_v56  ;;  %v2893_v19 = vld [vmem:[%s3037_s18 + $0x50] sm:$0xff] }
 0x298   : > { %v2832_v28 = vpop.eup %2831  ;;  %2853 = vrcp.f32 %v2600_v15  ;;  %v2590_v40 = vmul.f32 1.442695, %v2561_v35  ;;  %v2894_v15 = vld [vmem:[%s3037_s18 + $0x58] sm:$0xff] }
 0x299   : > { %2855 = vrcp.f32 %v2601_v4  ;;  %v2602_v29 = vadd.f32 1.0, %v2832_v28  ;;  %v2592_v24 = vmul.f32 1.442695, %v2562_v52  ;;  %v2563_v30 = vsub.f32 0.0, %v2547_v5  ;;  %v2895_v4 = vld [vmem:[%s3037_s18 + $0x60] sm:$0xff]  ;;  %v2896_v28 = vld [vmem:[%s3037_s18 + $0x68] sm:$0xff] }
 0x29a   : > { %v2834_v12 = vpop.eup %2833  ;;  %2857 = vpow2.f32 %v2590_v40 }
 0x29b   : > { %2859 = vrcp.f32 %v2602_v29  ;;  %v2603_v62 = vadd.f32 1.0, %v2834_v12  ;;  %v2594_v3 = vmul.f32 1.442695, %v2563_v30 }
 0x29c   : > { %v2836_v10 = vpop.eup %2835  ;;  %2861 = vpow2.f32 %v2592_v24  ;;  %v2897_v24 = vld [vmem:[%s3037_s18 + $0x70] sm:$0xff] }
 0x29d   : > { %v2838_v36 = vpop.eup %2837  ;;  %v2644_v61 = vmul.f32 %v2883_v2, %v2836_v10  ;;  %2863 = vrcp.f32 %v2603_v62  ;;  %v2898_v62 = vld [vmem:[%s3037_s18 + $0x78] sm:$0xff] }
 0x29e   : > { %v2840_v23 = vpop.eup %2839  ;;  %v2604_v46 = vadd.f32 1.0, %v2838_v36  ;;  %2865 = vpow2.f32 %v2594_v3 }
 0x29f   : > { %v2842_v54 = vpop.eup %2841  ;;  %2660 = vst [vmem:[%s4359_s25] sm:$0xff] %v2644_v61  ;;  %v2645_v60 = vmul.f32 %v2884_v53, %v2840_v23 }
 0x2a0   : > { %v2844_v50 = vpop.eup %2843  ;;  %2867 = vrcp.f32 %v2604_v46  ;;  %v2605_v44 = vadd.f32 1.0, %v2842_v54 }
 0x2a1   : > { %v2846_v43 = vpop.eup %2845  ;;  %2661 = vst [vmem:[%s4359_s25 + $0x8] sm:$0xff] %v2645_v60  ;;  %v2646_v21 = vmul.f32 %v2885_v55, %v2844_v50 }
 0x2a2   : > { %v2848_v33 = vpop.eup %2847  ;;  %2869 = vrcp.f32 %v2605_v44  ;;  %v2606_v17 = vadd.f32 1.0, %v2846_v43 }
 0x2a3   : > { %v2850_v63 = vpop.eup %2849  ;;  %2662 = vst [vmem:[%s4359_s25 + $0x10] sm:$0xff] %v2646_v21  ;;  %v2647_v32 = vmul.f32 %v2886_v49, %v2848_v33 }
 0x2a4   : > { %v2852_v59 = vpop.eup %2851  ;;  %2871 = vrcp.f32 %v2606_v17  ;;  %v2607_v57 = vadd.f32 1.0, %v2850_v63 }
 0x2a5   : > { %v2854_v38 = vpop.eup %2853  ;;  %2663 = vst [vmem:[%s4359_s25 + $0x18] sm:$0xff] %v2647_v32  ;;  %v2608_v16 = vadd.f32 1.0, %v2852_v59 }
 0x2a6   : > { %v2856_v27 = vpop.eup %2855  ;;  %v2648_v8 = vmul.f32 %v2887_v20, %v2854_v38  ;;  %2873 = vrcp.f32 %v2607_v57 }
 0x2a7   : > { %v2858_v45 = vpop.eup %2857  ;;  %v2649_v47 = vmul.f32 %v2888_v26, %v2856_v27  ;;  %2875 = vrcp.f32 %v2608_v16 }
 0x2a8   : > { %v2860_v31 = vpop.eup %2859  ;;  %2664 = vst [vmem:[%s4359_s25 + $0x20] sm:$0xff] %v2648_v8  ;;  %v2609_v41 = vadd.f32 1.0, %v2858_v45 }
 0x2a9   : > { %v2862_v1 = vpop.eup %2861  ;;  %2665 = vst [vmem:[%s4359_s25 + $0x28] sm:$0xff] %v2649_v47  ;;  %v2650_v7 = vmul.f32 %v2889_v39, %v2860_v31 }
 0x2aa   : > { %v2864_v51 = vpop.eup %2863  ;;  %2877 = vrcp.f32 %v2609_v41  ;;  %v2610_v58 = vadd.f32 1.0, %v2862_v1 }
 0x2ab   : > { %v2866_v37 = vpop.eup %2865  ;;  %2666 = vst [vmem:[%s4359_s25 + $0x30] sm:$0xff] %v2650_v7  ;;  %v2651_v22 = vmul.f32 %v2890_v11, %v2864_v51 }
 0x2ac   : > { %2879 = vrcp.f32 %v2610_v58  ;;  %v2611_v9 = vadd.f32 1.0, %v2866_v37 }
 0x2ad   : > { %v2868_v48 = vpop.eup %2867  ;;  %2667 = vst [vmem:[%s4359_s25 + $0x38] sm:$0xff] %v2651_v22 }
 0x2ae   : > { %v2652_v14 = vmul.f32 %v2891_v25, %v2868_v48  ;;  %2881 = vrcp.f32 %v2611_v9 }
 0x2af   : > { %v2870_v18 = vpop.eup %2869 }
 0x2b0   : > { %2668 = vst [vmem:[%s4359_s25 + $0x40] sm:$0xff] %v2652_v14  ;;  %v2653_v6 = vmul.f32 %v2892_v0, %v2870_v18 }
 0x2b1   : > { %v2872_v42 = vpop.eup %2871 }
 0x2b2   : > { %2669 = vst [vmem:[%s4359_s25 + $0x48] sm:$0xff] %v2653_v6  ;;  %v2654_v34 = vmul.f32 %v2893_v19, %v2872_v42 }
 0x2b3   : > { %v2874_v56 = vpop.eup %2873 }
 0x2b4   : > { %v2876_v13 = vpop.eup %2875  ;;  %2670 = vst [vmem:[%s4359_s25 + $0x50] sm:$0xff] %v2654_v34  ;;  %v2655_v35 = vmul.f32 %v2894_v15, %v2874_v56 }
 0x2b5   : > { %v2656_v52 = vmul.f32 %v2895_v4, %v2876_v13 }
 0x2b6   : > { %2671 = vst [vmem:[%s4359_s25 + $0x58] sm:$0xff] %v2655_v35 }
 0x2b7   : > { %v2878_v5 = vpop.eup %2877  ;;  %2672 = vst [vmem:[%s4359_s25 + $0x60] sm:$0xff] %v2656_v52 }
 0x2b8   : > { %v2657_v40 = vmul.f32 %v2896_v28, %v2878_v5 }
 0x2b9   : > { %v2880_v29 = vpop.eup %2879 }
 0x2ba   : > { %2673 = vst [vmem:[%s4359_s25 + $0x68] sm:$0xff] %v2657_v40  ;;  %v2658_v30 = vmul.f32 %v2897_v24, %v2880_v29 }
 0x2bb   : > { %v2882_v12 = vpop.eup %2881 }
 0x2bc   : > { %2674 = vst [vmem:[%s4359_s25 + $0x70] sm:$0xff] %v2658_v30  ;;  %v2659_v3 = vmul.f32 %v2898_v62, %v2882_v12 }
 0x2be   : > { %2675 = vst [vmem:[%s4359_s25 + $0x78] sm:$0xff] %v2659_v3 }
 0x2bf PF: > { %s16_s23 = sadd.s32 1, %s2921_s23   ;;  %s4530_s21 = smov %s2917_s22 }
 0x2c0   : > { %p13_p5 = scmp.ge.s32.totalorder %s16_s23, 6   ;;  %s4531_s22 = smov %s4533_s24 }
 0x2c2   :  { %15 = sbr.rel (!%p13_p5) target bundleno = 2 (0x2), region = 77 }

</bundles_post_ra>
